<compile_context>
chip_gen: v6e
topology: v6e:2x2x1
jax: 0.10.0
libtpu: 0.0.40
codegen_flags: <defaults>
</compile_context>

<pallas_src>
import functools

import jax
import jax.numpy as jnp
from jax.experimental import pallas as pl
from jax.experimental.pallas import tpu as pltpu


# ----------------------------- Pallas kernel ------------------------------ #
def moe_kernel(counts_ref, fetch_ref, x_ref, w_ref, gate_ref, up_ref, down_ref,
               w1t_ref, w3t_ref, w2t_ref, out_ref, acc_ref):
    """Grid = (token_tiles [parallel], experts [arbitrary, innermost]).

    counts_ref : (nT*E,)  i32 SMEM  tokens of tile t routed to expert e
    fetch_ref  : (nT*E,)  i32 SMEM  expert block to hold at step (t, e) (used
                                    only by the index_maps; unused here)
    x_ref      : (TM, D)   bf16  token tile
    w_ref      : (TM, E)   f32   dense routing weights for this token tile
    gate_ref   : (D, Ed)   bf16  gate_proj[fetch[t,e]]   (expert dim squeezed)
    up_ref     : (D, Ed)   bf16  up_proj[fetch[t,e]]
    down_ref   : (Ed, D)   bf16  down_proj[fetch[t,e]]
    w1t_ref    : (D, H)    bf16  shared-expert w1^T
    w3t_ref    : (D, H)    bf16  shared-expert w3^T
    w2t_ref    : (H, D)    bf16  shared-expert w2^T
    out_ref    : (TM, D)   x.dtype  written once at e == E-1
    acc_ref    : (TM, D)   f32   VMEM scratch accumulator
    """
    del fetch_ref
    t = pl.program_id(0)
    e = pl.program_id(1)
    n_e = pl.num_programs(1)
    x = x_ref[...]                                   # (TM, D) bf16

    # Shared-expert FeedForward initializes the accumulator at e == 0 (overlaps
    # with the first expert-weight prefetch instead of running as a tail).
    @pl.when(e == 0)
    def _():
        h1 = jnp.dot(x, w1t_ref[...], preferred_element_type=jnp.float32)
        h3 = jnp.dot(x, w3t_ref[...], preferred_element_type=jnp.float32)
        hs = (h1 * jax.nn.sigmoid(h1)) * h3          # SiLU(h1) * h3, f32
        # NOTE: hs is downcast to bf16 for the MXU down-projection; f32
        # accumulation keeps the error well inside tolerance.
        acc_ref[...] = jnp.dot(hs.astype(w2t_ref.dtype), w2t_ref[...],
                               preferred_element_type=jnp.float32)

    # Expert e only contributes if any token in this tile routed to it; with
    # top_k << E most steps skip both the MXU work and (via the index_map) the
    # weight DMA.
    cnt = counts_ref[t * n_e + e]

    @pl.when(cnt > 0)
    def _():
        gate = jnp.dot(x, gate_ref[...], preferred_element_type=jnp.float32)
        up = jnp.dot(x, up_ref[...], preferred_element_type=jnp.float32)
        h = (gate * jax.nn.sigmoid(gate)) * up       # f32 elementwise
        out_e = jnp.dot(h.astype(down_ref.dtype), down_ref[...],
                        preferred_element_type=jnp.float32)   # (TM, D) f32

        # Select routing-weight column e from the lane-dense (TM, E) block.
        # TODO(synk): with grouped dispatch this select (and the E->128 lane
        #             padding of w_ref) disappears entirely.
        w_all = w_ref[...]                                    # (TM, E) f32
        eidx = jax.lax.broadcasted_iota(jnp.int32, w_all.shape, 1)
        w_col = jnp.sum(jnp.where(eidx == e, w_all, 0.0),
                        axis=1, keepdims=True)                # (TM, 1) f32
        acc_ref[...] += w_col * out_e

    # Single writeback per token tile, in the output dtype.
    @pl.when(e == n_e - 1)
    def _():
        out_ref[...] = acc_ref[...].astype(out_ref.dtype)


def moe_pallas(x, w_dense, counts, fetch, gate_proj, up_proj, down_proj,
               w1t, w3t, w2t, *, tm=256, out_dtype=None, approx_active=None):
    T, D = x.shape
    E, _, Ed = gate_proj.shape
    H = w1t.shape[1]
    out_dtype = x.dtype if out_dtype is None else out_dtype
    tm = min(tm, T)
    assert T % tm == 0, "pad T to a multiple of the token tile"
    nT = T // tm
    k_est = E if approx_active is None else approx_active

    cost = pl.CostEstimate(
        flops=int(6 * T * D * Ed * k_est + 6 * T * D * H),
        transcendentals=int(T * Ed * k_est + T * H),
        bytes_accessed=int(T * D * x.dtype.itemsize
                           + T * E * w_dense.dtype.itemsize
                           + nT * k_est * 3 * D * Ed * gate_proj.dtype.itemsize
                           + 3 * D * H * w1t.dtype.itemsize
                           + T * D * jnp.dtype(out_dtype).itemsize))

    grid_spec = pltpu.PrefetchScalarGridSpec(
        num_scalar_prefetch=2,          # counts, fetch (both SMEM, 1-D i32)
        grid=(nT, E),
        in_specs=[
            pl.BlockSpec((tm, D), lambda t, e, c, f: (t, 0)),        # x tile
            pl.BlockSpec((tm, E), lambda t, e, c, f: (t, 0)),        # routing w
            # Expert weights: fetch[] repeats the previously-loaded expert for
            # inactive steps so no new DMA is issued when cnt == 0.
            pl.BlockSpec((None, D, Ed),
                         lambda t, e, c, f: (f[t * E + e], 0, 0)),   # gate
            pl.BlockSpec((None, D, Ed),
                         lambda t, e, c, f: (f[t * E + e], 0, 0)),   # up
            pl.BlockSpec((None, Ed, D),
                         lambda t, e, c, f: (f[t * E + e], 0, 0)),   # down
            pl.BlockSpec((D, H), lambda t, e, c, f: (0, 0)),         # shared w1^T
            pl.BlockSpec((D, H), lambda t, e, c, f: (0, 0)),         # shared w3^T
            pl.BlockSpec((H, D), lambda t, e, c, f: (0, 0)),         # shared w2^T
        ],
        out_specs=pl.BlockSpec((tm, D), lambda t, e, c, f: (t, 0)),
        scratch_shapes=[pltpu.VMEM((tm, D), jnp.float32)],
    )

    return pl.pallas_call(
        moe_kernel,
        out_shape=jax.ShapeDtypeStruct((T, D), out_dtype),
        grid_spec=grid_spec,
        compiler_params=pltpu.CompilerParams(
            dimension_semantics=("parallel", "arbitrary"),
            vmem_limit_bytes=64 * 1024 * 1024),
        cost_estimate=cost,
    )(counts, fetch, x, w_dense, gate_proj, up_proj, down_proj, w1t, w3t, w2t)


# ------------------------------ JAX glue ----------------------------------- #
def router(x, gate_w, top_k):
    """TopKRouter: gate linear -> topk -> softmax over the selected experts."""
    logits = jnp.dot(x, gate_w.T).astype(jnp.float32)      # (T, E)
    top_vals, top_idx = jax.lax.top_k(logits, top_k)       # (T, k)
    scores = jax.nn.softmax(top_vals, axis=-1)             # f32
    return scores, top_idx


def dense_combine_weights(scores, top_idx, T, E):
    """Dense (T, E) combine weights equivalent to dispatch+combine."""
    return jnp.zeros((T, E), jnp.float32).at[
        jnp.arange(T)[:, None], top_idx].add(scores)


def expert_schedule(w_dense, nT, tm, E):
    """Per-(tile, expert) token counts + forward-filled fetch indices."""
    counts2d = (w_dense.reshape(nT, tm, E) > 0).astype(jnp.int32).sum(axis=1)
    active = (counts2d > 0).reshape(-1)                       # (nT*E,)
    e_flat = jnp.tile(jnp.arange(E, dtype=jnp.int32), nT)     # (nT*E,)

    def _ffill(carry, a_e):
        a, ei = a_e
        nxt = jnp.where(a, ei, carry)
        return nxt, nxt

    _, fetch = jax.lax.scan(_ffill, jnp.int32(0), (active, e_flat))
    return counts2d.reshape(-1), fetch


def moe_layer(x, params, top_k, *, tm=256, compute_dtype=jnp.bfloat16):
    T, D = x.shape
    E = params["gate_proj"].shape[0]
    scores, top_idx = router(x, params["router_gate"], top_k)
    w_dense = dense_combine_weights(scores, top_idx, T, E)

    tm = min(tm, T)
    assert T % tm == 0, "pad T to a multiple of the token tile"
    nT = T // tm
    counts, fetch = expert_schedule(w_dense, nT, tm, E)

    cd = compute_dtype
    out = moe_pallas(
        x.astype(cd), w_dense, counts, fetch,
        params["gate_proj"].astype(cd),
        params["up_proj"].astype(cd),
        params["down_proj"].astype(cd),
        params["w1"].T.astype(cd),      # nn.Linear weight is (out, in) -> transpose
        params["w3"].T.astype(cd),
        params["w2"].T.astype(cd),
        tm=tm, out_dtype=x.dtype, approx_active=top_k)
    return out


def moe_layer_ref(x, params, top_k):
    """Pure-JAX f32 reference reproducing the PyTorch semantics."""
    scores, top_idx = router(x, params["router_gate"], top_k)
    T = x.shape[0]
    E = params["gate_proj"].shape[0]
    w_dense = dense_combine_weights(scores, top_idx, T, E)

    sparse = jnp.zeros_like(x)
    for e in range(E):  # static Python loop -> static slicing
        g = x @ params["gate_proj"][e]
        u = x @ params["up_proj"][e]
        o = (jax.nn.silu(g) * u) @ params["down_proj"][e]
        sparse = sparse + w_dense[:, e:e + 1] * o

    h = jax.nn.silu(x @ params["w1"].T) * (x @ params["w3"].T)
    shared = h @ params["w2"].T
    return sparse + shared


# ------------------------------ main --------------------------------------- #
if __name__ == "__main__":
    # Small, TPU-tile-friendly config (analogue of ModelArgs):
    dim = 128
    moe_expert_dim = 128
    num_experts = 8
    top_k = 2
    moe_num_shared_experts = 2
    multiple_of = 128
    hidden = moe_num_shared_experts * moe_expert_dim
    hidden = multiple_of * ((hidden + multiple_of - 1) // multiple_of)   # 256
    batch, seq = 4, 128
    T = batch * seq                                                      # 512
    TM = 256            # T // TM == 2 -> even, both v7x TCs busy; MXU-bound on v5e

    key = jax.random.PRNGKey(0)
    keys = jax.random.split(key, 8)
    init_std = 0.02
    params = {
        "router_gate": jax.random.normal(keys[0], (num_experts, dim), jnp.float32) * init_std,
        "gate_proj": jax.random.normal(keys[1], (num_experts, dim, moe_expert_dim), jnp.float32) * init_std,
        "up_proj": jax.random.normal(keys[2], (num_experts, dim, moe_expert_dim), jnp.float32) * init_std,
        "down_proj": jax.random.normal(keys[3], (num_experts, moe_expert_dim, dim), jnp.float32) * init_std,
        "w1": jax.random.normal(keys[4], (hidden, dim), jnp.float32) * init_std,  # nn.Linear (out, in)
        "w2": jax.random.normal(keys[5], (dim, hidden), jnp.float32) * init_std,
        "w3": jax.random.normal(keys[6], (hidden, dim), jnp.float32) * init_std,
    }

    x = jax.random.normal(keys[7], (T, dim), jnp.float32)   # [T, D] tokens

    fn = jax.jit(functools.partial(moe_layer, top_k=top_k, tm=TM))
    out = jax.block_until_ready(fn(x, params))

    ref = moe_layer_ref(x, params, top_k)
    assert out.shape == (T, dim)
    assert out.dtype == x.dtype
    assert jnp.allclose(out, ref, atol=2e-2, rtol=2e-2), float(jnp.max(jnp.abs(out - ref)))

    print("KERNEL_OK")
</pallas_src>

<mosaic_0001>
module attributes {stable_mosaic.version = 11 : i64} {
  func.func private @main(%arg0: i32) attributes {dimension_semantics = [#tpu.dimension_semantics<core_parallel>], iteration_bounds = array<i64: 2>, tpu.core_type = #tpu.core_type<sc_scalar_subcore>, window_params = []} {
    return
  }
}

module attributes {stable_mosaic.version = 11 : i64} {
  func.func private @main(%arg0: i32) attributes {dimension_semantics = [#tpu.dimension_semantics<core_parallel>], iteration_bounds = array<i64: 2>, tpu.core_type = #tpu.core_type<sc_scalar_subcore>, window_params = []} {
    return
  }
}

module attributes {stable_mosaic.version = 11 : i64} {
  func.func @moe_kernel(%arg0: i32, %arg1: i32, %arg2: memref<16xi32, #tpu.memory_space<smem>>, %arg3: memref<16xi32, #tpu.memory_space<smem>>, %arg4: memref<256x128xbf16, #tpu.memory_space<vmem>>, %arg5: memref<256x8xf32, #tpu.memory_space<vmem>>, %arg6: memref<1x128x128xbf16, #tpu.memory_space<vmem>>, %arg7: memref<1x128x128xbf16, #tpu.memory_space<vmem>>, %arg8: memref<1x128x128xbf16, #tpu.memory_space<vmem>>, %arg9: memref<128x256xbf16, #tpu.memory_space<vmem>>, %arg10: memref<128x256xbf16, #tpu.memory_space<vmem>>, %arg11: memref<256x128xbf16, #tpu.memory_space<vmem>>, %arg12: memref<256x128xf32, #tpu.memory_space<vmem>>, %arg13: memref<256x128xf32, #tpu.memory_space<vmem>>) attributes {dimension_semantics = [#tpu.dimension_semantics<parallel>, #tpu.dimension_semantics<arbitrary>], iteration_bounds = array<i64: 2, 8>, scalar_prefetch = 2 : i64, scratch_operands = 1 : i64, tpu.core_type = #tpu.core_type<tc>, window_params = [{transform_indices = @transform_0, window_bounds = array<i64: 256, 128>}, {transform_indices = @transform_1, window_bounds = array<i64: 256, 8>}, {transform_indices = @transform_2, window_bounds = array<i64: 1, 128, 128>}, {transform_indices = @transform_3, window_bounds = array<i64: 1, 128, 128>}, {transform_indices = @transform_4, window_bounds = array<i64: 1, 128, 128>}, {pipeline_mode = #tpu.pipeline_mode<synchronous>, transform_indices = @transform_5, window_bounds = array<i64: 128, 256>}, {pipeline_mode = #tpu.pipeline_mode<synchronous>, transform_indices = @transform_6, window_bounds = array<i64: 128, 256>}, {pipeline_mode = #tpu.pipeline_mode<synchronous>, transform_indices = @transform_7, window_bounds = array<i64: 256, 128>}, {transform_indices = @transform_8, window_bounds = array<i64: 256, 128>}]} {
    %c0 = arith.constant 0 : index
    %c0_0 = arith.constant 0 : index
    %0 = vector.load %arg4[%c0, %c0_0] : memref<256x128xbf16, #tpu.memory_space<vmem>>, vector<256x128xbf16>
    %c0_i32 = arith.constant 0 : i32
    %1 = arith.cmpi eq, %arg1, %c0_i32 : i32
    %2 = arith.extui %1 : i1 to i32
    %c0_i32_1 = arith.constant 0 : i32
    %3 = arith.cmpi ne, %2, %c0_i32_1 : i32
    scf.if %3 {
      %c0_5 = arith.constant 0 : index
      %c0_6 = arith.constant 0 : index
      %14 = vector.load %arg9[%c0_5, %c0_6] : memref<128x256xbf16, #tpu.memory_space<vmem>>, vector<128x256xbf16>
      %cst = arith.constant dense<0.000000e+00> : vector<256x256xf32>
      %15 = tpu.matmul %0, %14, %cst {dimension_numbers = #tpu.dot_dimension_numbers<[1], [0], [0], [1], [0, 0, 1, 1], [], []>} : vector<256x128xbf16>, vector<128x256xbf16>, vector<256x256xf32> -> vector<256x256xf32>
      %c0_7 = arith.constant 0 : index
      %c0_8 = arith.constant 0 : index
      %16 = vector.load %arg10[%c0_7, %c0_8] : memref<128x256xbf16, #tpu.memory_space<vmem>>, vector<128x256xbf16>
      %cst_9 = arith.constant dense<0.000000e+00> : vector<256x256xf32>
      %17 = tpu.matmul %0, %16, %cst_9 {dimension_numbers = #tpu.dot_dimension_numbers<[1], [0], [0], [1], [0, 0, 1, 1], [], []>} : vector<256x128xbf16>, vector<128x256xbf16>, vector<256x256xf32> -> vector<256x256xf32>
      %18 = arith.negf %15 : vector<256x256xf32>
      %19 = math.exp %18 : vector<256x256xf32>
      %cst_10 = arith.constant 1.000000e+00 : f32
      %20 = vector.broadcast %cst_10 : f32 to vector<256x256xf32>
      %21 = arith.addf %20, %19 : vector<256x256xf32>
      %22 = arith.divf %20, %21 : vector<256x256xf32>
      %23 = arith.mulf %15, %22 : vector<256x256xf32>
      %24 = arith.mulf %23, %17 : vector<256x256xf32>
      %25 = arith.truncf %24 : vector<256x256xf32> to vector<256x256xbf16>
      %c0_11 = arith.constant 0 : index
      %c0_12 = arith.constant 0 : index
      %26 = vector.load %arg11[%c0_11, %c0_12] : memref<256x128xbf16, #tpu.memory_space<vmem>>, vector<256x128xbf16>
      %cst_13 = arith.constant dense<0.000000e+00> : vector<256x128xf32>
      %27 = tpu.matmul %25, %26, %cst_13 {dimension_numbers = #tpu.dot_dimension_numbers<[1], [0], [0], [1], [0, 0, 1, 1], [], []>} : vector<256x256xbf16>, vector<256x128xbf16>, vector<256x128xf32> -> vector<256x128xf32>
      %c0_14 = arith.constant 0 : index
      %c0_15 = arith.constant 0 : index
      %28 = vector.load %arg13[%c0_14, %c0_15] : memref<256x128xf32, #tpu.memory_space<vmem>>, vector<256x128xf32>
      tpu.vector_store %arg13[%c0_14, %c0_15], %27 {strides = array<i32>} : memref<256x128xf32, #tpu.memory_space<vmem>>, vector<256x128xf32>,
    } else {
    }
    %c8_i32 = arith.constant 8 : i32
    %4 = arith.muli %arg0, %c8_i32 : i32
    %5 = arith.addi %4, %arg1 : i32
    %6 = arith.index_cast %5 : i32 to index
    %7 = memref.load %arg2[%6] : memref<16xi32, #tpu.memory_space<smem>>
    %c0_i32_2 = arith.constant 0 : i32
    %8 = arith.cmpi sgt, %7, %c0_i32_2 : i32
    %9 = arith.extui %8 : i1 to i32
    %c0_i32_3 = arith.constant 0 : i32
    %10 = arith.cmpi ne, %9, %c0_i32_3 : i32
    scf.if %10 {
      %c0_5 = arith.constant 0 : index
      %c0_6 = arith.constant 0 : index
      %c0_7 = arith.constant 0 : index
      %14 = vector.load %arg6[%c0_5, %c0_6, %c0_7] : memref<1x128x128xbf16, #tpu.memory_space<vmem>>, vector<1x128x128xbf16>
      %15 = vector.shape_cast %14 : vector<1x128x128xbf16> to vector<128x128xbf16>
      %cst = arith.constant dense<0.000000e+00> : vector<256x128xf32>
      %16 = tpu.matmul %0, %15, %cst {dimension_numbers = #tpu.dot_dimension_numbers<[1], [0], [0], [1], [0, 0, 1, 1], [], []>} : vector<256x128xbf16>, vector<128x128xbf16>, vector<256x128xf32> -> vector<256x128xf32>
      %c0_8 = arith.constant 0 : index
      %c0_9 = arith.constant 0 : index
      %c0_10 = arith.constant 0 : index
      %17 = vector.load %arg7[%c0_8, %c0_9, %c0_10] : memref<1x128x128xbf16, #tpu.memory_space<vmem>>, vector<1x128x128xbf16>
      %18 = vector.shape_cast %17 : vector<1x128x128xbf16> to vector<128x128xbf16>
      %cst_11 = arith.constant dense<0.000000e+00> : vector<256x128xf32>
      %19 = tpu.matmul %0, %18, %cst_11 {dimension_numbers = #tpu.dot_dimension_numbers<[1], [0], [0], [1], [0, 0, 1, 1], [], []>} : vector<256x128xbf16>, vector<128x128xbf16>, vector<256x128xf32> -> vector<256x128xf32>
      %20 = arith.negf %16 : vector<256x128xf32>
      %21 = math.exp %20 : vector<256x128xf32>
      %cst_12 = arith.constant 1.000000e+00 : f32
      %22 = vector.broadcast %cst_12 : f32 to vector<256x128xf32>
      %23 = arith.addf %22, %21 : vector<256x128xf32>
      %24 = arith.divf %22, %23 : vector<256x128xf32>
      %25 = arith.mulf %16, %24 : vector<256x128xf32>
      %26 = arith.mulf %25, %19 : vector<256x128xf32>
      %27 = arith.truncf %26 : vector<256x128xf32> to vector<256x128xbf16>
      %c0_13 = arith.constant 0 : index
      %c0_14 = arith.constant 0 : index
      %c0_15 = arith.constant 0 : index
      %28 = vector.load %arg8[%c0_13, %c0_14, %c0_15] : memref<1x128x128xbf16, #tpu.memory_space<vmem>>, vector<1x128x128xbf16>
      %29 = vector.shape_cast %28 : vector<1x128x128xbf16> to vector<128x128xbf16>
      %cst_16 = arith.constant dense<0.000000e+00> : vector<256x128xf32>
      %30 = tpu.matmul %27, %29, %cst_16 {dimension_numbers = #tpu.dot_dimension_numbers<[1], [0], [0], [1], [0, 0, 1, 1], [], []>} : vector<256x128xbf16>, vector<128x128xbf16>, vector<256x128xf32> -> vector<256x128xf32>
      %c0_17 = arith.constant 0 : index
      %c0_18 = arith.constant 0 : index
      %31 = vector.load %arg5[%c0_17, %c0_18] : memref<256x8xf32, #tpu.memory_space<vmem>>, vector<256x8xf32>
      %32 = tpu.iota {dimensions = array<i32: 1>} : vector<256x8xi32>
      %33 = vector.broadcast %arg1 : i32 to vector<256x8xi32>
      %34 = arith.cmpi eq, %32, %33 : vector<256x8xi32>
      %cst_19 = arith.constant 0.000000e+00 : f32
      %35 = vector.broadcast %cst_19 : f32 to vector<256x8xf32>
      %36 = arith.select %34, %31, %35 : vector<256x8xi1>, vector<256x8xf32>
      %cst_20 = arith.constant dense<0.000000e+00> : vector<256xf32>
      %37 = vector.multi_reduction <add>, %36, %cst_20 [1] : vector<256x8xf32> to vector<256xf32>
      %38 = vector.shape_cast %37 : vector<256xf32> to vector<256x1xf32>
      %c0_21 = arith.constant 0 : index
      %c0_22 = arith.constant 0 : index
      %39 = vector.load %arg13[%c0_21, %c0_22] : memref<256x128xf32, #tpu.memory_space<vmem>>, vector<256x128xf32>
      %40 = vector.broadcast %38 : vector<256x1xf32> to vector<256x128xf32>
      %41 = arith.mulf %40, %30 : vector<256x128xf32>
      %42 = arith.addf %39, %41 : vector<256x128xf32>
      %c0_23 = arith.constant 0 : index
      %c0_24 = arith.constant 0 : index
      %43 = vector.load %arg13[%c0_23, %c0_24] : memref<256x128xf32, #tpu.memory_space<vmem>>, vector<256x128xf32>
      tpu.vector_store %arg13[%c0_23, %c0_24], %42 {strides = array<i32>} : memref<256x128xf32, #tpu.memory_space<vmem>>, vector<256x128xf32>,
    } else {
    }
    %c7_i32 = arith.constant 7 : i32
    %11 = arith.cmpi eq, %arg1, %c7_i32 : i32
    %12 = arith.extui %11 : i1 to i32
    %c0_i32_4 = arith.constant 0 : i32
    %13 = arith.cmpi ne, %12, %c0_i32_4 : i32
    scf.if %13 {
      %c0_5 = arith.constant 0 : index
      %c0_6 = arith.constant 0 : index
      %14 = vector.load %arg13[%c0_5, %c0_6] : memref<256x128xf32, #tpu.memory_space<vmem>>, vector<256x128xf32>
      %c0_7 = arith.constant 0 : index
      %c0_8 = arith.constant 0 : index
      %15 = vector.load %arg12[%c0_7, %c0_8] : memref<256x128xf32, #tpu.memory_space<vmem>>, vector<256x128xf32>
      tpu.vector_store %arg12[%c0_7, %c0_8], %14 {strides = array<i32>} : memref<256x128xf32, #tpu.memory_space<vmem>>, vector<256x128xf32>,
    } else {
    }
    return
  }
  func.func @transform_0(%arg0: i32, %arg1: i32, %arg2: memref<16xi32, #tpu.memory_space<smem>>, %arg3: memref<16xi32, #tpu.memory_space<smem>>) -> (i32, i32) {
    %c0_i32 = arith.constant 0 : i32
    %c0_i32_0 = arith.constant 0 : i32
    return %arg0, %c0_i32 : i32, i32
  }
  func.func @transform_1(%arg0: i32, %arg1: i32, %arg2: memref<16xi32, #tpu.memory_space<smem>>, %arg3: memref<16xi32, #tpu.memory_space<smem>>) -> (i32, i32) {
    %c0_i32 = arith.constant 0 : i32
    %c0_i32_0 = arith.constant 0 : i32
    return %arg0, %c0_i32 : i32, i32
  }
  func.func @transform_2(%arg0: i32, %arg1: i32, %arg2: memref<16xi32, #tpu.memory_space<smem>>, %arg3: memref<16xi32, #tpu.memory_space<smem>>) -> (i32, i32, i32) {
    %c8_i32 = arith.constant 8 : i32
    %0 = arith.muli %arg0, %c8_i32 : i32
    %1 = arith.addi %0, %arg1 : i32
    %2 = arith.index_cast %1 : i32 to index
    %3 = memref.load %arg3[%2] : memref<16xi32, #tpu.memory_space<smem>>
    %c0_i32 = arith.constant 0 : i32
    %c0_i32_0 = arith.constant 0 : i32
    %c0_i32_1 = arith.constant 0 : i32
    return %3, %c0_i32, %c0_i32_0 : i32, i32, i32
  }
  func.func @transform_3(%arg0: i32, %arg1: i32, %arg2: memref<16xi32, #tpu.memory_space<smem>>, %arg3: memref<16xi32, #tpu.memory_space<smem>>) -> (i32, i32, i32) {
    %c8_i32 = arith.constant 8 : i32
    %0 = arith.muli %arg0, %c8_i32 : i32
    %1 = arith.addi %0, %arg1 : i32
    %2 = arith.index_cast %1 : i32 to index
    %3 = memref.load %arg3[%2] : memref<16xi32, #tpu.memory_space<smem>>
    %c0_i32 = arith.constant 0 : i32
    %c0_i32_0 = arith.constant 0 : i32
    %c0_i32_1 = arith.constant 0 : i32
    return %3, %c0_i32, %c0_i32_0 : i32, i32, i32
  }
  func.func @transform_4(%arg0: i32, %arg1: i32, %arg2: memref<16xi32, #tpu.memory_space<smem>>, %arg3: memref<16xi32, #tpu.memory_space<smem>>) -> (i32, i32, i32) {
    %c8_i32 = arith.constant 8 : i32
    %0 = arith.muli %arg0, %c8_i32 : i32
    %1 = arith.addi %0, %arg1 : i32
    %2 = arith.index_cast %1 : i32 to index
    %3 = memref.load %arg3[%2] : memref<16xi32, #tpu.memory_space<smem>>
    %c0_i32 = arith.constant 0 : i32
    %c0_i32_0 = arith.constant 0 : i32
    %c0_i32_1 = arith.constant 0 : i32
    return %3, %c0_i32, %c0_i32_0 : i32, i32, i32
  }
  func.func @transform_5(%arg0: i32, %arg1: i32, %arg2: memref<16xi32, #tpu.memory_space<smem>>, %arg3: memref<16xi32, #tpu.memory_space<smem>>) -> (i32, i32) {
    %c0_i32 = arith.constant 0 : i32
    %c0_i32_0 = arith.constant 0 : i32
    %c0_i32_1 = arith.constant 0 : i32
    return %c0_i32, %c0_i32_0 : i32, i32
  }
  func.func @transform_6(%arg0: i32, %arg1: i32, %arg2: memref<16xi32, #tpu.memory_space<smem>>, %arg3: memref<16xi32, #tpu.memory_space<smem>>) -> (i32, i32) {
    %c0_i32 = arith.constant 0 : i32
    %c0_i32_0 = arith.constant 0 : i32
    %c0_i32_1 = arith.constant 0 : i32
    return %c0_i32, %c0_i32_0 : i32, i32
  }
  func.func @transform_7(%arg0: i32, %arg1: i32, %arg2: memref<16xi32, #tpu.memory_space<smem>>, %arg3: memref<16xi32, #tpu.memory_space<smem>>) -> (i32, i32) {
    %c0_i32 = arith.constant 0 : i32
    %c0_i32_0 = arith.constant 0 : i32
    %c0_i32_1 = arith.constant 0 : i32
    return %c0_i32, %c0_i32_0 : i32, i32
  }
  func.func @transform_8(%arg0: i32, %arg1: i32, %arg2: memref<16xi32, #tpu.memory_space<smem>>, %arg3: memref<16xi32, #tpu.memory_space<smem>>) -> (i32, i32) {
    %c0_i32 = arith.constant 0 : i32
    %c0_i32_0 = arith.constant 0 : i32
    return %arg0, %c0_i32 : i32, i32
  }
}

</mosaic_0001>

<bundles_post_ra>
// kernel: custom-call
= control target key start
LH: loop header
LB: loop body
LE: loop exit
PB: predicated region body
PF: predicated region fallthrough
CT: control target
= control target key end

     0   :  { %s6_s0 = inlined_call_operand.hbm [shape: s32[16], index: 0, kind: output, shape index: {}]  }

// kernel: tile.9
= control target key start
LH: loop header
LB: loop body
LE: loop exit
PB: predicated region body
PF: predicated region fallthrough
CT: control target
= control target key end

     0   :  { %s77_s0 = inlined_call_operand.vmem [shape: s32[2,8], index: 0, kind: input, shape index: {}]   ;;  %s78_s1 = inlined_call_operand.hbm [shape: s32[16], index: 1, kind: output, shape index: {}]  }
   0x1   :  { %v6_v0 = vld [vmem:[%s77_s0] sm:$0x3] }
   0x2   :  { %7 = vst [vmem:[#allocation3] sm:$0x3] %v6_v0 }
   0x3   :  { %2 = vsyncpa [#allocation1], 0  ;;  %vm9_vm0 = vcmask 64512   ;;  %s59_s0 = smov 8   ;;  %vm15_vm1 = vcmask 130112   ;;  %s60_s8 = smov [#allocation0]  }
   0x4   :  { %s29_s9 = sshll.u32 %s60_s8, 4  ;;  %s30_s9 = int_to_ptr.vmem [resolvable:$true] %s29_s9 }
   0x5   :  { %s37_s10 = scalar_lea.vmem %s30_s9, 16  ;;  %s41_s11 = scalar_lea.vmem %s30_s9, 32 }
   0x6   :  { %p38_p0 = scmp.ne.s32.totalorder %s30_s9, %s37_s10  ;;  %p42_p1 = scmp.lt.s32.totalorder %s30_s9, %s30_s9 }
   0x7   :  { %p43_p2 = scmp.lt.s32.totalorder %s41_s11, %s37_s10 }
   0x9   :  { %v12_v1 = vld [vmem:[#allocation3 + $0x1] sm:$0x1]   ;;  %v8_v2 = vld [vmem:[#allocation3] sm:$0x1]   ;;  %p44_p3 = por %p43_p2, %p42_p1 }
   0xa   :  { %13 = vrot.lane.b32.xlu0 %v12_v1, %s59_s0  ;;  %10 = vst.msk [vmem:[#allocation2] sm:$0x1] %vm9_vm0, %v8_v2  }
   0xb   :  { %p45_p4 = pnand %p44_p3, %p38_p0 }
  0x7c   :  { %v14_v3 = vpop.permute.xlu0 %13  }
  0x7d   :  { %16 = vst.msk [vmem:[#allocation2] sm:$0x1] %vm15_vm1, %v14_v3  }
  0x84   :  { %v21_v4 = vld [vmem:[#allocation2] sm:$0x1] }
  0x85   :  { %24 = vst [vmem:[#allocation0] sm:$0x1] %v21_v4 }
  0x86   :  { %48 = shalt.err (!%p45_p4)
}
  0x87   :  { %32 = dma.vmem_to_hbm [thread:$0]  %s30_s9, 16, %s78_s1, [#allocation1]  }
  0x88   :  { %57 = dma.done.wait [#allocation1], 16  }
  0x89   :  { %58 = vsyncadd [#allocation1], 4294967280 }
  0x8a   :  { %34 = vsyncpa [#allocation1], 1 }

// kernel: moe_layer.1
= control target key start
LH: loop header
LB: loop body
LE: loop exit
PB: predicated region body
PF: predicated region fallthrough
CT: control target
= control target key end

     0   :  { %s6241_s0 = inlined_call_operand.vmem [shape: s32[16], index: 0, kind: input, shape index: {}]   ;;  %s6242_s2 = inlined_call_operand.vmem [shape: bf16[512,128], index: 2, kind: input, shape index: {}]   ;;  %s6243_s3 = inlined_call_operand.vmem [shape: f32[512,8], index: 3, kind: input, shape index: {}]   ;;  %s6244_s4 = inlined_call_operand.vmem [shape: bf16[8,128,128], index: 4, kind: input, shape index: {}]   ;;  %s6245_s5 = inlined_call_operand.vmem [shape: bf16[8,128,128], index: 5, kind: input, shape index: {}]   ;;  %s6246_s6 = inlined_call_operand.vmem [shape: bf16[8,128,128], index: 6, kind: input, shape index: {}]   ;;  %s6247_s7 = inlined_call_operand.vmem [shape: bf16[128,256], index: 7, kind: input, shape index: {}]   ;;  %s6248_s8 = inlined_call_operand.vmem [shape: bf16[128,256], index: 8, kind: input, shape index: {}]   ;;  %s6249_s9 = inlined_call_operand.vmem [shape: bf16[256,128], index: 9, kind: input, shape index: {}]   ;;  %s6250_s10 = inlined_call_operand.hbm [shape: f32[512,128], index: 10, kind: output, shape index: {}]   ;;  %s6251_s1 = inlined_call_operand.vmem [shape: s32[16], index: 1, kind: input, shape index: {}]  }
   0x1   :  { %6302 = sst [smem:[#allocation60_spill]] %s6242_s2  ;;  %s15_s15 = sshll.u32 %s6241_s0, 4  ;;  %s16_s15 = int_to_ptr.vmem [resolvable:$true] %s15_s15 }
   0x2   :  { %6303 = sst [smem:[#allocation61_spill]] %s6243_s3  ;;  %s19_s18 = sshll.u32 %s6251_s1, 4  ;;  %s20_s18 = int_to_ptr.vmem [resolvable:$true] %s19_s18 }
   0x3   :  { %6304 = sst [smem:[#allocation62_spill]] %s6244_s4  ;;  %s4744_s19 = scalar_lea.vmem %s16_s15, 16 }
   0x4   :  { %6305 = sst [smem:[#allocation63_spill]] %s6245_s5  ;;  %p4745_p0 = scmp.ne.s32.totalorder %s16_s15, %s4744_s19 }
   0x5   :  { %p4749_p1 = scmp.lt.s32.totalorder %s16_s15, %s16_s15  ;;  %p4750_p2 = scmp.lt.s32.totalorder %s4744_s19, %s4744_s19 }
   0x7   :  { %p4751_p3 = por %p4750_p2, %p4749_p1 }
   0x9   :  { %p4752_p4 = pnand %p4751_p3, %p4745_p0 }
   0xb   :  { %4755 = shalt.err (!%p4752_p4)  }
   0xc   :  { %s4864_s20 = smov [#allocation4]   ;;  %s4756_s21 = scalar_lea.vmem %s20_s18, 16 }
   0xd   :  { %18 = dma.vmem_to_smem %s16_s15, 16, %s4864_s20, [#allocation3] }
   0xe   :  { %p4757_p5 = scmp.ne.s32.totalorder %s20_s18, %s4756_s21  ;;  %p4761_p6 = scmp.lt.s32.totalorder %s20_s18, %s20_s18 }
   0xf   :  { %p4762_p7 = scmp.lt.s32.totalorder %s4756_s21, %s4756_s21 }
  0x11   :  { %p4763_p8 = por %p4762_p7, %p4761_p6 }
  0x13   :  { %p4764_p9 = pnand %p4763_p8, %p4757_p5 }
  0x15   :  { %4767 = shalt.err (!%p4764_p9)  }
  0x16   :  { %s4865_s0 = smov [#allocation5]  }
  0x17   :  { %22 = dma.vmem_to_smem %s20_s18, 16, %s4865_s0, [#allocation3] }
  0x18   :  { %4826 = dma.done.wait [#allocation3], 32 }
  0x19   :  { %4827 = vsyncadd [#allocation3], 4294967264 }
  0x1a   :  { %24 = sfence }
  0x1b   :  { %25 = vsyncpa [#allocation7], 0 }
  0x1c   :  { %27 = vsyncpa [#allocation7 + $0x1], 0  ;;  %s4931_s1 = smov 0   ;;  %s4933_s22 = smov 0  }
  0x1d   :  { %s4935_s23 = smov 0   ;;  %s4937_s24 = smov 0  }
  0x1e   :  { %s4939_s25 = smov 0   ;;  %s4941_s26 = smov 0  }
  0x1f   :  { %s4943_s27 = smov 0   ;;  %s4945_s28 = smov 0  }
  0x20 LB: > { %6306 = sst [smem:[#allocation10_spill]] %s4858_s27  ;;  %s3598_s29 = sadd.s32 4294967295, %s4862_s28   ;;  %s4862_s28 = sphi %s4945_s28, %s33_s28   ;;  %s4858_s27 = sphi %s4943_s27, %s6414_s27   ;;  %s4854_s26 = sphi %s4941_s26, %s6419_s26   ;;  %s4850_s25 = sphi %s4939_s25, %s6412_s25   ;;  %s4846_s24 = sphi %s4937_s24, %s6418_s24   ;;  %s4842_s23 = sphi %s4935_s23, %s6417_s23   ;;  %s4838_s22 = sphi %s4933_s22, %s6416_s22   ;;  %s4834_s1 = sphi %s4931_s1, %s6415_s1  }
  0x21   : > { %s3599_s30 = sadd.s32 4294967294, %s4862_s28   ;;  %s42_s11 = sadd.s32 1, %s4854_s26 }
  0x22   : > { %p43_p10 = scmp.ge.s32.totalorder %s42_s11, 8  ;;  %s45_s12 = sadd.s32 1, %s4858_s27 }
  0x23   : > { %p273_p11 = scmp.ne.s32.totalorder %s4842_s23, %s4838_s22  ;;  %p274_p12 = scmp.eq.s32.totalorder %s3598_s29, 15 }
  0x24   : > { %s6421_s11 = smov (%p43_p10, %s42_s11), 0  ;;  %s6423_s12 = smov (!%p43_p10, %s45_s12), %s4858_s27 }
  0x25   : > { %6307 = sst [smem:[#allocation11_spill]] %s6421_s11  ;;  %p4980_p13 = por %p274_p12, %p273_p11 }
  0x26   : > { %p279_p0 = scmp.ne.s32.totalorder %s4838_s22, %s4834_s1  ;;  %p47_p1 = scmp.ge.s32.totalorder %s6423_s12, 2 }
  0x27   : > { %p280_p2 = scmp.eq.s32.totalorder %s3599_s30, 15  ;;  %p3608_p3 = scmp.ge.s32.totalorder %s4862_s28, 1 }
  0x28   : > { %p367_p4 = scmp.lt.s32.totalorder %s4862_s28, 17  ;;  %s6425_s12 = smov (%p47_p1, %s6423_s12), 0 }
  0x29   : > { %6309 = sst [smem:[#allocation12_spill]] %s6425_s12  ;;  %p4990_p5 = por %p280_p2, %p279_p0 }
  0x2a   : > { %p368_p6 = pnand %p3608_p3, %p367_p4  ;;  %s260_s15 = ssub.s32 %s4858_s27, %s6425_s12 }
  0x2b   : > { %s263_s16 = sadd.s32 1, %s4842_s23  ;;  %p261_p7 = scmp.eq.s32.totalorder %s260_s15, 0 }
  0x2c   : > { %371 = sbr.rel (%p368_p6) target bundleno = 1326 (0x52e), region = 52 }
  0x2d   : > { %s4998_s17 = scalar_select %p261_p7, %s4842_s23, %s263_s16  }
  0x31   : > { %s6254_s18 = sand.u32 1, %s4838_s22   ;;  %s3610_s19 = sshll.u32 %s4850_s25, 5 }
  0x32   : > { %s5004_s20 = sshll.u32 %s6254_s18, 8  ;;  %p431_p8 = scmp.lt.s32.totalorder %s3610_s19, 63 }
  0x33   : > { %s3614_s21 = sshll.u32 %s4850_s25, 3  ;;  %s6311_s2 = sld [smem:[#allocation60_spill]] }
  0x34   : > { %s6427_s19 = smov (!%p431_p8, %s3610_s19), 63  ;;  %s5008_s0 = sadd.s32 %s4846_s24, %s3614_s21 }
  0x35   : > { %s3611_s29 = sshll.u32 %s6427_s19, 2  ;;  %s3613_s30 = sshll.u32 %s6427_s19, 3 }
  0x36   : > { %s6312_s3 = sld [smem:[#allocation61_spill]]  ;;  %p3623_p12 = scmp.ne.s32.totalorder %s4846_s24, 0 }
  0x37   : > { %s444_s21 = sld [smem:[#allocation5 + %s5008_s0]] }
  0x38   : > { %s455_s27 = sld [smem:[#allocation5 + %s5008_s0]] }
  0x39   : > { %s5013_s12 = scalar_lea.vmem %s6311_s2, %s3611_s29  ;;  %s5035_s11 = sld [smem:[#allocation5 + %s5008_s0]] }
  0x3a   : > { %v5022_v0 = vld [vmem:[%s5013_s12] sm:$0xf]  ;;  %v5025_v1 = vld [vmem:[%s5013_s12 + $0x4] sm:$0xf]  ;;  %v5029_v2 = vld [vmem:[%s5013_s12 + $0x8] sm:$0xf] }
  0x3b   : > { %6313 = vst [vmem:[#allocation13_spill] sm:$0xff] %v5022_v0  ;;  %6314 = vst [vmem:[#allocation14_spill] sm:$0xff] %v5025_v1  ;;  %v5032_v3 = vld [vmem:[%s5013_s12 + $0xc] sm:$0xf]  ;;  %v5038_v4 = vld [vmem:[%s5013_s12 + $0x10] sm:$0xf] }
  0x3c   : > { %s5018_s19 = scalar_lea.vmem %s6312_s3, %s3613_s30  ;;  %6315 = vst [vmem:[#allocation15_spill] sm:$0xff] %v5029_v2  ;;  %6316 = vst [vmem:[#allocation16_spill] sm:$0xff] %v5032_v3  ;;  %v5041_v5 = vld [vmem:[%s5013_s12 + $0x14] sm:$0xf]  ;;  %v5044_v6 = vld [vmem:[%s5013_s12 + $0x18] sm:$0xf] }
  0x3d   : > { %6317 = vst [vmem:[#allocation17_spill] sm:$0xff] %v5038_v4  ;;  %6318 = vst [vmem:[#allocation18_spill] sm:$0xff] %v5041_v5  ;;  %v5047_v7 = vld [vmem:[%s5013_s12 + $0x1c] sm:$0xf]  ;;  %v5050_v8 = vld [vmem:[%s5013_s12 + $0x20] sm:$0xf] }
  0x3e   : > { %6319 = vst [vmem:[#allocation19_spill] sm:$0xff] %v5044_v6  ;;  %6320 = vst [vmem:[#allocation20_spill] sm:$0xff] %v5047_v7  ;;  %v5053_v9 = vld [vmem:[%s5013_s12 + $0x24] sm:$0xf]  ;;  %v5056_v10 = vld [vmem:[%s5013_s12 + $0x28] sm:$0xf] }
  0x3f   : > { %6321 = vst [vmem:[#allocation21_spill] sm:$0xff] %v5050_v8  ;;  %6322 = vst [vmem:[#allocation22_spill] sm:$0xff] %v5053_v9  ;;  %v5059_v11 = vld [vmem:[%s5013_s12 + $0x2c] sm:$0xf]  ;;  %v5062_v12 = vld [vmem:[%s5013_s12 + $0x30] sm:$0xf] }
  0x40   : > { %6323 = vst [vmem:[#allocation23_spill] sm:$0xff] %v5056_v10  ;;  %6324 = vst [vmem:[#allocation24_spill] sm:$0xff] %v5059_v11  ;;  %v5065_v13 = vld [vmem:[%s5013_s12 + $0x34] sm:$0xf]  ;;  %v5068_v14 = vld [vmem:[%s5013_s12 + $0x38] sm:$0xf] }
  0x41   : > { %6325 = vst [vmem:[#allocation25_spill] sm:$0xff] %v5062_v12  ;;  %6326 = vst [vmem:[#allocation26_spill] sm:$0xff] %v5065_v13  ;;  %p445_p9 = scmp.lt.s32.totalorder %s444_s21, 7  ;;  %v5071_v15 = vld [vmem:[%s5013_s12 + $0x3c] sm:$0xf]  ;;  %p456_p10 = scmp.lt.s32.totalorder %s455_s27, 7 }
  0x42   : > { %6327 = vst [vmem:[#allocation27_spill] sm:$0xff] %v5068_v14  ;;  %6328 = vst [vmem:[#allocation28_spill] sm:$0xff] %v5071_v15  ;;  %v5074_v16 = vld [vmem:[%s5013_s12 + $0x40] sm:$0xf]  ;;  %v5077_v17 = vld [vmem:[%s5013_s12 + $0x44] sm:$0xf] }
  0x43   : > { %6329 = vst [vmem:[#allocation29_spill] sm:$0xff] %v5074_v16  ;;  %6330 = vst [vmem:[#allocation30_spill] sm:$0xff] %v5077_v17  ;;  %v5080_v18 = vld [vmem:[%s5013_s12 + $0x48] sm:$0xf]  ;;  %s6429_s21 = smov (!%p445_p9, %s444_s21), 7  ;;  %s6431_s27 = smov (!%p456_p10, %s455_s27), 7 }
  0x44   : > { %6331 = vst [vmem:[#allocation31_spill] sm:$0xff] %v5080_v18  ;;  %v5083_v19 = vld [vmem:[%s5013_s12 + $0x4c] sm:$0xf]  ;;  %v5086_v20 = vld [vmem:[%s5013_s12 + $0x50] sm:$0xf]  ;;  %s3832_s29 = sshll.u32 %s6429_s21, 6 }
  0x45   : > { %6332 = vst [vmem:[#allocation32_spill] sm:$0xff] %v5083_v19  ;;  %6333 = vst [vmem:[#allocation33_spill] sm:$0xff] %v5086_v20  ;;  %v5089_v21 = vld [vmem:[%s5013_s12 + $0x54] sm:$0xf]  ;;  %v5092_v22 = vld [vmem:[%s5013_s12 + $0x58] sm:$0xf] }
  0x46   : > { %6334 = vst [vmem:[#allocation34_spill] sm:$0xff] %v5089_v21  ;;  %6335 = vst [vmem:[#allocation35_spill] sm:$0xff] %v5092_v22  ;;  %p467_p11 = scmp.lt.s32.totalorder %s5035_s11, 7  ;;  %v5096_v23 = vld [vmem:[%s5013_s12 + $0x5c] sm:$0xf]  ;;  %s6338_s4 = sld [smem:[#allocation62_spill]] }
  0x47   : > { %6336 = vst [vmem:[#allocation36_spill] sm:$0xff] %v5096_v23  ;;  %v5099_v24 = vld [vmem:[%s5013_s12 + $0x60] sm:$0xf]  ;;  %s3833_s18 = sshll.u32 %s6431_s27, 6  ;;  %v5107_v25 = vld [vmem:[%s5013_s12 + $0x64] sm:$0xf] }
  0x48   : > { %6337 = vst [vmem:[#allocation37_spill] sm:$0xff] %v5099_v24  ;;  %6339 = vst [vmem:[#allocation38_spill] sm:$0xff] %v5107_v25  ;;  %v5110_v26 = vld [vmem:[%s5013_s12 + $0x68] sm:$0xf]  ;;  %s6341_s5 = sld [smem:[#allocation63_spill]]  ;;  %s6433_s11 = smov (!%p467_p11, %s5035_s11), 7 }
  0x49   : > { %6340 = vst [vmem:[#allocation39_spill] sm:$0xff] %v5110_v26  ;;  %v5118_v27 = vld [vmem:[%s5013_s12 + $0x6c] sm:$0xf]  ;;  %v5121_v28 = vld [vmem:[%s5013_s12 + $0x70] sm:$0xf]  ;;  %s3834_s27 = sshll.u32 %s6433_s11, 6 }
  0x4a   : > { %6342 = vst [vmem:[#allocation40_spill] sm:$0xff] %v5118_v27  ;;  %6343 = vst [vmem:[#allocation41_spill] sm:$0xff] %v5121_v28  ;;  %v5124_v29 = vld [vmem:[%s5013_s12 + $0x74] sm:$0xf]  ;;  %v5128_v30 = vld [vmem:[%s5013_s12 + $0x78] sm:$0xf]  ;;  %s5136_s15 = scalar_lea.vmem %s6246_s6, %s3834_s27 }
  0x4b   : > { %6344 = vst [vmem:[#allocation42_spill] sm:$0xff] %v5124_v29  ;;  %6345 = vst [vmem:[#allocation43_spill] sm:$0xff] %v5128_v30  ;;  %v5131_v31 = vld [vmem:[%s5013_s12 + $0x7c] sm:$0xf]  ;;  %s5139_s2 = scalar_lea.vmem [#allocation6], %s5004_s20  ;;  %512 = sbr.rel (%p3623_p12) target bundleno = 717 (0x2cd), region = 56 }
  0x4c   : > { %s5104_s16 = scalar_lea.vmem %s6338_s4, %s3832_s29  ;;  %6346 = vst [vmem:[#allocation44_spill] sm:$0xff] %v5131_v31 }
  0x4e   : > { %s5115_s21 = scalar_lea.vmem %s6341_s5, %s3833_s18 }
  0x50   : > { %v4272_v32 = vld [vmem:[%s6247_s7 + $0x74] ss:$8 sps:$4 sm:$0xff]   ;;  %v4274_v33 = vld [vmem:[%s6247_s7 + $0x70] ss:$8 sps:$4 sm:$0xff]   ;;  %v4866_v34 = vmov 0   ;;  %v5200_v51 = vcombine.low %v5022_v0, %v5025_v1  ;;  %v5204_v52 = vcombine.low %v5074_v16, %v5077_v17  ;;  %v5221_v56 = vcombine.low %v5029_v2, %v5032_v3 }
  0x51   : > { %737 = vmatprep.mubr.bf16.mxu0 %v4866_v34  ;;  %817 = vmatprep.mubr.bf16.mxu1 %v4866_v34  ;;  %v4275_v35 = vld [vmem:[%s6247_s7 + $0x64] ss:$8 sps:$4 sm:$0xff]   ;;  %v4277_v36 = vld [vmem:[%s6247_s7 + $0x60] ss:$8 sps:$4 sm:$0xff]   ;;  %v4278_v37 = vld [vmem:[%s6247_s7 + $0x54] ss:$8 sps:$4 sm:$0xff]   ;;  %v5225_v57 = vcombine.low %v5080_v18, %v5083_v19  ;;  %v3626_v62 = vcombine.low %v5038_v4, %v5041_v5  ;;  %v5247_v63 = vcombine.low %v5086_v20, %v5089_v21 }
  0x52   : > { %705 = vmatprep.subr.bf16.mxu0 %v4272_v32  ;;  %4164 = vmatprep.subr.bf16.mxu1 %v4272_v32  ;;  %v4280_v38 = vld [vmem:[%s6247_s7 + $0x50] ss:$8 sps:$4 sm:$0xff]   ;;  %v4281_v39 = vld [vmem:[%s6247_s7 + $0x44] ss:$8 sps:$4 sm:$0xff]   ;;  %v4283_v40 = vld [vmem:[%s6247_s7 + $0x40] ss:$8 sps:$4 sm:$0xff]  }
  0x53   : > { %706 = vmatpush1.bf16.msra.mxu0 %v4274_v33  ;;  %4172 = vmatpush1.bf16.msra.mxu1 %v4274_v33  ;;  %v4284_v41 = vld [vmem:[%s6247_s7 + $0x34] ss:$8 sps:$4 sm:$0xff]   ;;  %v4286_v42 = vld [vmem:[%s6247_s7 + $0x30] ss:$8 sps:$4 sm:$0xff]   ;;  %v4287_v43 = vld [vmem:[%s6247_s7 + $0x24] ss:$8 sps:$4 sm:$0xff]  }
  0x54   : > { %707 = vmatprep.subr.bf16.mxu0 %v4275_v35  ;;  %4165 = vmatprep.subr.bf16.mxu1 %v4275_v35  ;;  %v4289_v44 = vld [vmem:[%s6247_s7 + $0x20] ss:$8 sps:$4 sm:$0xff]   ;;  %v4290_v45 = vld [vmem:[%s6247_s7 + $0x14] ss:$8 sps:$4 sm:$0xff]   ;;  %v4292_v46 = vld [vmem:[%s6247_s7 + $0x10] ss:$8 sps:$4 sm:$0xff]  }
  0x55   : > { %v4293_v47 = vld [vmem:[%s6247_s7 + $0x4] ss:$8 sps:$4 sm:$0xff]   ;;  %v4295_v48 = vld [vmem:[%s6247_s7] ss:$8 sps:$4 sm:$0xff]   ;;  %v4298_v49 = vld [vmem:[%s6248_s8 + $0x74] ss:$8 sps:$4 sm:$0xff]  }
  0x56   : > { %v4296_v50 = vld [vmem:[%s6248_s8 + $0x70] ss:$8 sps:$4 sm:$0xff]   ;;  %v4301_v53 = vld [vmem:[%s6248_s8 + $0x64] ss:$8 sps:$4 sm:$0xff]   ;;  %v4299_v54 = vld [vmem:[%s6248_s8 + $0x60] ss:$8 sps:$4 sm:$0xff]  }
  0x57   : > { %708 = vmatpush1.bf16.msra.mxu0 %v4277_v36  ;;  %4173 = vmatpush1.bf16.msra.mxu1 %v4277_v36  ;;  %v4304_v55 = vld [vmem:[%s6248_s8 + $0x54] ss:$8 sps:$4 sm:$0xff]   ;;  %v4302_v58 = vld [vmem:[%s6248_s8 + $0x50] ss:$8 sps:$4 sm:$0xff]   ;;  %v4307_v59 = vld [vmem:[%s6248_s8 + $0x44] ss:$8 sps:$4 sm:$0xff]  }
  0x58   : > { %709 = vmatprep.subr.bf16.mxu0 %v4278_v37  ;;  %4166 = vmatprep.subr.bf16.mxu1 %v4278_v37  ;;  %v4305_v60 = vld [vmem:[%s6248_s8 + $0x40] ss:$8 sps:$4 sm:$0xff]   ;;  %v4310_v61 = vld [vmem:[%s6248_s8 + $0x34] ss:$8 sps:$4 sm:$0xff]   ;;  %v4308_v32 = vld [vmem:[%s6248_s8 + $0x30] ss:$8 sps:$4 sm:$0xff]   ;;  %v3627_v37 = vcombine.low %v5044_v6, %v5047_v7 }
  0x59   : > { %v4313_v33 = vld [vmem:[%s6248_s8 + $0x24] ss:$8 sps:$4 sm:$0xff]   ;;  %v4311_v35 = vld [vmem:[%s6248_s8 + $0x20] ss:$8 sps:$4 sm:$0xff]   ;;  %v4316_v36 = vld [vmem:[%s6248_s8 + $0x14] ss:$8 sps:$4 sm:$0xff]  }
  0x5b   : > { %710 = vmatpush1.bf16.msra.mxu0 %v4280_v38  ;;  %4174 = vmatpush1.bf16.msra.mxu1 %v4280_v38  ;;  %v5268_v38 = vcombine.low %v5092_v22, %v5096_v23 }
  0x5c   : > { %711 = vmatprep.subr.bf16.mxu0 %v4281_v39  ;;  %4167 = vmatprep.subr.bf16.mxu1 %v4281_v39  ;;  %v4314_v39 = vld [vmem:[%s6248_s8 + $0x10] ss:$8 sps:$4 sm:$0xff]  }
  0x5f   : > { %712 = vmatpush1.bf16.msra.mxu0 %v4283_v40  ;;  %4175 = vmatpush1.bf16.msra.mxu1 %v4283_v40  ;;  %v4319_v40 = vld [vmem:[%s6248_s8 + $0x4] ss:$8 sps:$4 sm:$0xff]  }
  0x60   : > { %713 = vmatprep.subr.bf16.mxu0 %v4284_v41  ;;  %4168 = vmatprep.subr.bf16.mxu1 %v4284_v41  ;;  %v4317_v41 = vld [vmem:[%s6248_s8] ss:$8 sps:$4 sm:$0xff]  }
  0x63   : > { %714 = vmatpush1.bf16.msra.mxu0 %v4286_v42  ;;  %4176 = vmatpush1.bf16.msra.mxu1 %v4286_v42  ;;  %v3628_v42 = vcombine.low %v5050_v8, %v5053_v9 }
  0x64   : > { %715 = vmatprep.subr.bf16.mxu0 %v4287_v43  ;;  %4169 = vmatprep.subr.bf16.mxu1 %v4287_v43  ;;  %v5286_v43 = vcombine.low %v5099_v24, %v5107_v25 }
  0x67   : > { %716 = vmatpush1.bf16.msra.mxu0 %v4289_v44  ;;  %4177 = vmatpush1.bf16.msra.mxu1 %v4289_v44  ;;  %v3629_v44 = vcombine.low %v5056_v10, %v5059_v11 }
  0x68   : > { %717 = vmatprep.subr.bf16.mxu0 %v4290_v45  ;;  %4170 = vmatprep.subr.bf16.mxu1 %v4290_v45  ;;  %v3637_v45 = vcombine.low %v5110_v26, %v5118_v27 }
  0x6b   : > { %718 = vmatpush1.bf16.msra.mxu0 %v4292_v46  ;;  %4178 = vmatpush1.bf16.msra.mxu1 %v4292_v46  ;;  %v3630_v46 = vcombine.low %v5062_v12, %v5065_v13 }
  0x6c   : > { %719 = vmatprep.subr.bf16.mxu0 %v4293_v47  ;;  %4171 = vmatprep.subr.bf16.mxu1 %v4293_v47  ;;  %v3638_v47 = vcombine.low %v5121_v28, %v5124_v29 }
  0x6f   : > { %720 = vmatpush1.bf16.msra.mxu0 %v4295_v48  ;;  %4179 = vmatpush1.bf16.msra.mxu1 %v4295_v48  ;;  %v3631_v48 = vcombine.low %v5068_v14, %v5071_v15 }
  0x70   : > { %994 = vmatprep.subr.bf16.mxu1 %v4298_v49  ;;  %v3639_v49 = vcombine.low %v5128_v30, %v5131_v31 }
  0x72   : > { %738 = vmatmul.mubr.bf16.vlgmr.msra.gmra.mxu0 %v5200_v51  ;;  %818 = vmatmul.mubr.bf16.vlgmr.msra.gmra.mxu1 %v5204_v52 }
  0x73   : > { %995 = vmatpush1.bf16.msra.mxu1 %v4296_v50  ;;  %747 = vmatprep.mubr.bf16.mxu0 %v4866_v34  ;;  %v4320_v50 = vld [vmem:[%s6249_s9 + $0x78] sm:$0xff]  }
  0x74   : > { %827 = vmatprep.mubr.bf16.mxu1 %v4866_v34  ;;  %996 = vmatprep.subr.bf16.mxu1 %v4301_v53  ;;  %v4322_v53 = vld [vmem:[%s6249_s9 + $0x70] sm:$0xff]  }
  0x75   : > { %3836 = vmatprep.subr.bf16.mxu0 %v4320_v50 }
  0x77   : > { %997 = vmatpush1.bf16.msra.mxu1 %v4299_v54  ;;  %v4323_v54 = vld [vmem:[%s6249_s9 + $0x30] sm:$0xff]  }
  0x78   : > { %998 = vmatprep.subr.bf16.mxu1 %v4304_v55  ;;  %v4324_v55 = vld [vmem:[%s6249_s9 + $0x68] sm:$0xff]  }
  0x7a   : > { %748 = vmatmul.mubr.bf16.gmra.mxu0 %v5221_v56  ;;  %828 = vmatmul.mubr.bf16.gmra.mxu1 %v5225_v57 }
  0x7b   : > { %757 = vmatprep.mubr.bf16.mxu0 %v4866_v34  ;;  %837 = vmatprep.mubr.bf16.mxu1 %v4866_v34 }
  0x7c   : > { %999 = vmatpush1.bf16.msra.mxu1 %v4302_v58  ;;  %v4327_v58 = vld [vmem:[%s6249_s9 + $0x20] sm:$0xff]  }
  0x7d   : > { %1000 = vmatprep.subr.bf16.mxu1 %v4307_v59  ;;  %v4329_v59 = vld [vmem:[%s6249_s9 + $0x18] sm:$0xff]  }
  0x80   : > { %1001 = vmatpush1.bf16.msra.mxu1 %v4305_v60  ;;  %v4330_v60 = vld [vmem:[%s6249_s9 + $0x50] sm:$0xff]  }
  0x81   : > { %1002 = vmatprep.subr.bf16.mxu1 %v4310_v61  ;;  %v4331_v61 = vld [vmem:[%s6249_s9 + $0x10] sm:$0xff]  }
  0x82   : > { %758 = vmatmul.mubr.bf16.gmra.mxu0 %v3626_v62  ;;  %838 = vmatmul.mubr.bf16.gmra.mxu1 %v5247_v63 }
  0x83   : > { %767 = vmatprep.mubr.bf16.mxu0 %v4866_v34  ;;  %847 = vmatprep.mubr.bf16.mxu1 %v4866_v34 }
  0x84   : > { %1003 = vmatpush1.bf16.msra.mxu1 %v4308_v32  ;;  %v4334_v32 = vld [vmem:[%s6249_s9 + $0x40] sm:$0xff]  }
  0x85   : > { %1004 = vmatprep.subr.bf16.mxu1 %v4313_v33 }
  0x88   : > { %1005 = vmatpush1.bf16.msra.mxu1 %v4311_v35 }
  0x89   : > { %1006 = vmatprep.subr.bf16.mxu1 %v4316_v36 }
  0x8a   : > { %768 = vmatmul.mubr.bf16.gmra.mxu0 %v3627_v37  ;;  %848 = vmatmul.mubr.bf16.gmra.mxu1 %v5268_v38 }
  0x8b   : > { %777 = vmatprep.mubr.bf16.mxu0 %v4866_v34  ;;  %857 = vmatprep.mubr.bf16.mxu1 %v4866_v34 }
  0x8c   : > { %1007 = vmatpush1.bf16.msra.mxu1 %v4314_v39 }
  0x8d   : > { %1008 = vmatprep.subr.bf16.mxu1 %v4319_v40 }
  0x90   : > { %1009 = vmatpush1.bf16.msra.mxu1 %v4317_v41 }
  0x92   : > { %778 = vmatmul.mubr.bf16.gmra.mxu0 %v3628_v42  ;;  %858 = vmatmul.mubr.bf16.gmra.mxu1 %v5286_v43 }
  0x93   : > { %787 = vmatprep.mubr.bf16.mxu0 %v4866_v34  ;;  %867 = vmatprep.mubr.bf16.mxu1 %v4866_v34 }
  0x9a   : > { %788 = vmatmul.mubr.bf16.gmra.mxu0 %v3629_v44  ;;  %868 = vmatmul.mubr.bf16.gmra.mxu1 %v3637_v45 }
  0x9b   : > { %797 = vmatprep.mubr.bf16.mxu0 %v4866_v34  ;;  %877 = vmatprep.mubr.bf16.mxu1 %v4866_v34 }
  0xa2   : > { %798 = vmatmul.mubr.bf16.gmra.mxu0 %v3630_v46  ;;  %878 = vmatmul.mubr.bf16.gmra.mxu1 %v3638_v47 }
  0xa3   : > { %807 = vmatprep.mubr.bf16.mxu0 %v4866_v34  ;;  %887 = vmatprep.mubr.bf16.mxu1 %v4866_v34 }
  0xaa   : > { %808 = vmatmul.mubr.bf16.gmra.mxu0 %v3631_v48  ;;  %888 = vmatmul.mubr.bf16.gmra.mxu1 %v3639_v49 }
  0xab   : > { %1026 = vmatprep.mubr.bf16.mxu1 %v4866_v34 }
  0xb2   : > { %1027 = vmatmul.mubr.bf16.vlgmr.msra.gmra.mxu1 %v5200_v51  ;;  %v4321_v51 = vld [vmem:[%s6249_s9 + $0x38] sm:$0xff]  }
  0xb3   : > { %1036 = vmatprep.mubr.bf16.mxu1 %v4866_v34  ;;  %3837 = vmatpush3.bf16.msra.mxu0 %v4321_v51 }
  0xb4   : > { %3838 = vmatprep.subr.bf16.mxu0 %v4322_v53 }
  0xb7   : > { %3839 = vmatpush3.bf16.msra.mxu0 %v4323_v54 }
  0xb8   : > { %3840 = vmatprep.subr.bf16.mxu0 %v4324_v55 }
  0xba   : > { %1037 = vmatmul.mubr.bf16.gmra.mxu1 %v5221_v56  ;;  %v4325_v56 = vld [vmem:[%s6249_s9 + $0x28] sm:$0xff]  }
  0xbb   : > { %1046 = vmatprep.mubr.bf16.mxu1 %v4866_v34  ;;  %3841 = vmatpush3.bf16.msra.mxu0 %v4325_v56 }
  0xc2   : > { %1047 = vmatmul.mubr.bf16.gmra.mxu1 %v3626_v62  ;;  %v4332_v62 = vld [vmem:[%s6249_s9 + $0x48] sm:$0xff]  }
  0xc3   : > { %1056 = vmatprep.mubr.bf16.mxu1 %v4866_v34 }
  0xca   : > { %1057 = vmatmul.mubr.bf16.gmra.mxu1 %v3627_v37 }
  0xcb   : > { %1066 = vmatprep.mubr.bf16.mxu1 %v4866_v34 }
  0xd2   : > { %1067 = vmatmul.mubr.bf16.gmra.mxu1 %v3628_v42 }
  0xd3   : > { %1076 = vmatprep.mubr.bf16.mxu1 %v4866_v34 }
  0xda   : > { %1077 = vmatmul.mubr.bf16.gmra.mxu1 %v3629_v44 }
  0xdb   : > { %1086 = vmatprep.mubr.bf16.mxu1 %v4866_v34 }
  0xe2   : > { %1087 = vmatmul.mubr.bf16.gmra.mxu1 %v3630_v46 }
  0xe3   : > { %1096 = vmatprep.mubr.bf16.mxu1 %v4866_v34 }
  0xea   : > { %1097 = vmatmul.mubr.bf16.gmra.mxu1 %v3631_v48 }
  0xeb   : > { %1106 = vmatprep.mubr.bf16.mxu1 %v4866_v34 }
  0xf2   : > { %1107 = vmatmul.mubr.bf16.gmra.mxu1 %v5204_v52  ;;  %v4326_v52 = vld [vmem:[%s6249_s9 + $0x60] sm:$0xff]  }
  0xf3   : > { %1116 = vmatprep.mubr.bf16.mxu1 %v4866_v34  ;;  %3842 = vmatprep.subr.bf16.mxu0 %v4326_v52 }
  0xf4   : > { %3843 = vmatpush3.bf16.msra.mxu0 %v4327_v58 }
  0xfa   : > { %1117 = vmatmul.mubr.bf16.gmra.mxu1 %v5225_v57  ;;  %v4328_v57 = vld [vmem:[%s6249_s9 + $0x58] sm:$0xff]  }
  0xfb   : > { %1126 = vmatprep.mubr.bf16.mxu1 %v4866_v34  ;;  %3844 = vmatprep.subr.bf16.mxu0 %v4328_v57 }
  0xfc   : > { %3845 = vmatpush3.bf16.msra.mxu0 %v4329_v59 }
  0xfd   : > { %3846 = vmatprep.subr.bf16.mxu0 %v4330_v60 }
 0x100   : > { %3847 = vmatpush3.bf16.msra.mxu0 %v4331_v61 }
 0x101   : > { %3848 = vmatprep.subr.bf16.mxu0 %v4332_v62 }
 0x102   : > { %1127 = vmatmul.mubr.bf16.gmra.mxu1 %v5247_v63  ;;  %v4333_v63 = vld [vmem:[%s6249_s9 + $0x8] sm:$0xff]  }
 0x103   : > { %1136 = vmatprep.mubr.bf16.mxu1 %v4866_v34 }
 0x104   : > { %3849 = vmatpush3.bf16.msra.mxu0 %v4333_v63 }
 0x105   : > { %3850 = vmatprep.subr.bf16.mxu0 %v4334_v32 }
 0x10a   : > { %1137 = vmatmul.mubr.bf16.gmra.mxu1 %v5268_v38 }
 0x10b   : > { %1146 = vmatprep.mubr.bf16.mxu1 %v4866_v34 }
 0x112   : > { %1147 = vmatmul.mubr.bf16.gmra.mxu1 %v5286_v43 }
 0x113   : > { %1156 = vmatprep.mubr.bf16.mxu1 %v4866_v34 }
 0x11a   : > { %1157 = vmatmul.mubr.bf16.gmra.mxu1 %v3637_v45 }
 0x11b   : > { %1166 = vmatprep.mubr.bf16.mxu1 %v4866_v34 }
 0x122   : > { %1167 = vmatmul.mubr.bf16.gmra.mxu1 %v3638_v47 }
 0x123   : > { %1176 = vmatprep.mubr.bf16.mxu1 %v4866_v34  ;;  %v4335_v34 = vld [vmem:[%s6249_s9] sm:$0xff]  }
 0x124   : > { %3851 = vmatpush3.bf16.msra.mxu0 %v4335_v34 }
 0x12a   : > { %1177 = vmatmul.mubr.bf16.gmra.mxu1 %v3639_v49 }
 0x132   : > { %v5378_v33 = vpop.f32.mrf.mxu0  ;;  %v5380_v35 = vpop.f32.mrf.mxu1 }
 0x133   : > { %v3672_v58 = vmul.f32 -1.442695, %v5378_v33 }
 0x134   : > { %v5382_v36 = vpop.f32.mrf.mxu0  ;;  %v5384_v37 = vpop.f32.mrf.mxu1 }
 0x135   : > { %v3673_v59 = vmul.f32 -1.442695, %v5382_v36  ;;  %4336 = vpow2.f32 %v3672_v58 }
 0x136   : > { %v5386_v38 = vpop.f32.mrf.mxu0  ;;  %v5388_v39 = vpop.f32.mrf.mxu1 }
 0x137   : > { %v3674_v62 = vmul.f32 -1.442695, %v5386_v38  ;;  %4338 = vpow2.f32 %v3673_v59 }
 0x138   : > { %v5390_v40 = vpop.f32.mrf.mxu0  ;;  %v5392_v41 = vpop.f32.mrf.mxu1 }
 0x139   : > { %v3675_v32 = vmul.f32 -1.442695, %v5390_v40  ;;  %4340 = vpow2.f32 %v3674_v62 }
 0x13a   : > { %v5394_v42 = vpop.f32.mrf.mxu0  ;;  %v5396_v43 = vpop.f32.mrf.mxu1 }
 0x13b   : > { %4342 = vpow2.f32 %v3675_v32  ;;  %v3676_v12 = vmul.f32 -1.442695, %v5394_v42 }
 0x13c   : > { %v5398_v44 = vpop.f32.mrf.mxu0  ;;  %v5400_v45 = vpop.f32.mrf.mxu1 }
 0x13d   : > { %v3677_v28 = vmul.f32 -1.442695, %v5398_v44 }
 0x13e   : > { %v5402_v46 = vpop.f32.mrf.mxu0  ;;  %v5404_v47 = vpop.f32.mrf.mxu1 }
 0x13f   : > { %v3678_v58 = vmul.f32 -1.442695, %v5402_v46  ;;  %4344 = vpow2.f32 %v3677_v28 }
 0x140   : > { %v5406_v48 = vpop.f32.mrf.mxu0  ;;  %v5408_v49 = vpop.f32.mrf.mxu1 }
 0x141   : > { %v3679_v59 = vmul.f32 -1.442695, %v5406_v48  ;;  %4346 = vpow2.f32 %v3678_v58 }
 0x142   : > { %v5410_v50 = vpop.f32.mrf.mxu0  ;;  %v5412_v51 = vpop.f32.mrf.mxu1 }
 0x143   : > { %v4337_v26 = vpop.eup %4336  ;;  %4348 = vpow2.f32 %v3679_v59  ;;  %v3680_v59 = vmul.f32 -1.442695, %v5410_v50 }
 0x144   : > { %v5414_v53 = vpop.f32.mrf.mxu0  ;;  %v5416_v54 = vpop.f32.mrf.mxu1  ;;  %4350 = vpow2.f32 %v3676_v12  ;;  %v1379_v22 = vadd.f32 1.0, %v4337_v26 }
 0x145   : > { %v3681_v27 = vmul.f32 -1.442695, %v5414_v53  ;;  %v4339_v10 = vpop.eup %4338 }
 0x146   : > { %v5418_v55 = vpop.f32.mrf.mxu1  ;;  %v5420_v56 = vpop.f32.mrf.mxu0  ;;  %v1380_v58 = vadd.f32 1.0, %v4339_v10 }
 0x147   : > { %v3682_v11 = vmul.f32 -1.442695, %v5420_v56  ;;  %v4341_v9 = vpop.eup %4340  ;;  %4352 = vpow2.f32 %v3681_v27 }
 0x148   : > { %v5422_v52 = vpop.f32.mrf.mxu1  ;;  %v5428_v60 = vpop.f32.mrf.mxu0  ;;  %v1381_v7 = vadd.f32 1.0, %v4341_v9 }
 0x149   : > { %v3683_v8 = vmul.f32 -1.442695, %v5428_v60  ;;  %v4343_v23 = vpop.eup %4342  ;;  %4354 = vpow2.f32 %v3682_v11 }
 0x14a   : > { %v5425_v57 = vpop.f32.mrf.mxu1  ;;  %v5436_v34 = vpop.f32.mrf.mxu0  ;;  %v1382_v26 = vadd.f32 1.0, %v4343_v23 }
 0x14b   : > { %4356 = vpow2.f32 %v3683_v8 }
 0x14c   : > { %v5430_v61 = vpop.f32.mrf.mxu1  ;;  %v5442_v14 = vpop.f32.mrf.mxu0  ;;  %4358 = vrcp.f32 %v1379_v22 }
 0x14d   : > { %v3685_v20 = vmul.f32 -1.442695, %v5442_v14  ;;  %4360 = vrcp.f32 %v1380_v58  ;;  %v4345_v5 = vpop.eup %4344  ;;  %v3684_v58 = vmul.f32 -1.442695, %v5436_v34 }
 0x14e   : > { %v5433_v63 = vpop.f32.mrf.mxu1  ;;  %v5452_v13 = vpop.f32.mrf.mxu0  ;;  %4362 = vpow2.f32 %v3680_v59  ;;  %v1384_v19 = vadd.f32 1.0, %v4345_v5 }
 0x14f   : > { %v3686_v10 = vmul.f32 -1.442695, %v5452_v13  ;;  %4364 = vrcp.f32 %v1381_v7  ;;  %v4347_v9 = vpop.eup %4346 }
 0x150   : > { %v5438_v30 = vpop.f32.mrf.mxu1  ;;  %v5460_v24 = vpop.f32.mrf.mxu0  ;;  %4366 = vpow2.f32 %v3685_v20  ;;  %v1385_v7 = vadd.f32 1.0, %v4347_v9 }
 0x151   : > { %v3687_v11 = vmul.f32 -1.442695, %v5460_v24  ;;  %4368 = vrcp.f32 %v1382_v26  ;;  %v4349_v22 = vpop.eup %4348 }
 0x152   : > { %v5440_v31 = vpop.f32.mrf.mxu1  ;;  %v5468_v6 = vpop.f32.mrf.mxu0  ;;  %4370 = vpow2.f32 %v3686_v10  ;;  %v1386_v3 = vadd.f32 1.0, %v4349_v22  ;;  %v3704_v10 = vmul.f32 -1.442695, %v5380_v35 }
 0x153   : > { %6347 = vst [vmem:[#allocation45_spill] sm:$0xff] %v5440_v31  ;;  %v4351_v18 = vpop.eup %4350  ;;  %4372 = vpow2.f32 %v3687_v11 }
 0x154   : > { %v5444_v15 = vpop.f32.mrf.mxu1  ;;  %v5476_v27 = vpop.f32.mrf.mxu0  ;;  %v1383_v16 = vadd.f32 1.0, %v4351_v18  ;;  %4374 = vpow2.f32 %v3684_v58 }
 0x155   : > { %v4353_v20 = vpop.eup %4352  ;;  %4376 = vrcp.f32 %v1384_v19 }
 0x156   : > { %v5448_v29 = vpop.f32.mrf.mxu1  ;;  %v5484_v23 = vpop.f32.mrf.mxu0  ;;  %4378 = vrcp.f32 %v1385_v7  ;;  %v1388_v9 = vadd.f32 1.0, %v4353_v20 }
 0x157   : > { %6348 = vst [vmem:[#allocation46_spill] sm:$0xff] %v5448_v29  ;;  %v4355_v0 = vpop.eup %4354  ;;  %4380 = vrcp.f32 %v1386_v3  ;;  %v3689_v3 = vmul.f32 -1.442695, %v5476_v27 }
 0x158   : > { %v5454_v62 = vpop.f32.mrf.mxu1  ;;  %v5490_v17 = vpop.f32.mrf.mxu0  ;;  %4382 = vrcp.f32 %v1383_v16  ;;  %v1389_v18 = vadd.f32 1.0, %v4355_v0 }
 0x159   : > { %6349 = vst [vmem:[#allocation47_spill] sm:$0xff] %v5454_v62  ;;  %v4357_v1 = vpop.eup %4356  ;;  %4384 = vpow2.f32 %v3704_v10  ;;  %v3690_v10 = vmul.f32 -1.442695, %v5484_v23 }
 0x15a   : > { %v5456_v32 = vpop.f32.mrf.mxu1  ;;  %v4359_v11 = vpop.eup %4358 }
 0x15b   : > { %6350 = vst [vmem:[#allocation48_spill] sm:$0xff] %v5456_v32  ;;  %v4361_v22 = vpop.eup %4360  ;;  %v5498_v58 = vpop.f32.mrf.mxu0  ;;  %v3688_v32 = vmul.f32 -1.442695, %v5468_v6 }
 0x15c   : > { %v5462_v25 = vpop.f32.mrf.mxu1 }
 0x15d   : > { %6351 = vst [vmem:[#allocation49_spill] sm:$0xff] %v5462_v25  ;;  %v5504_v0 = vpop.f32.mrf.mxu0 }
 0x15e   : > { %v5465_v28 = vpop.f32.mrf.mxu1 }
 0x15f   : > { %6352 = vst [vmem:[#allocation50_spill] sm:$0xff] %v5465_v28 }
 0x160   : > { %v5470_v12 = vpop.f32.mrf.mxu1 }
 0x161   : > { %6353 = vst [vmem:[#allocation51_spill] sm:$0xff] %v5470_v12 }
 0x162   : > { %v5473_v21 = vpop.f32.mrf.mxu1 }
 0x163   : > { %6354 = vst [vmem:[#allocation52_spill] sm:$0xff] %v5473_v21  ;;  %v3705_v21 = vmul.f32 -1.442695, %v5384_v37 }
 0x164   : > { %v5478_v4 = vpop.f32.mrf.mxu1 }
 0x165   : > { %6355 = vst [vmem:[#allocation53_spill] sm:$0xff] %v5478_v4  ;;  %4386 = vpow2.f32 %v3705_v21 }
 0x166   : > { %v5481_v8 = vpop.f32.mrf.mxu1  ;;  %4388 = vrcp.f32 %v1388_v9  ;;  %v1572_v9 = vmul.f32 %v4361_v22, %v5382_v36  ;;  %v3692_v36 = vmul.f32 -1.442695, %v5498_v58 }
 0x167   : > { %6356 = vst [vmem:[#allocation54_spill] sm:$0xff] %v5481_v8  ;;  %v1390_v8 = vadd.f32 1.0, %v4357_v1  ;;  %4390 = vrcp.f32 %v1389_v18  ;;  %v1571_v18 = vmul.f32 %v4359_v11, %v5378_v33  ;;  %v3693_v33 = vmul.f32 -1.442695, %v5504_v0 }
 0x168   : > { %v5486_v59 = vpop.f32.mrf.mxu1 }
 0x169   : > { %6357 = vst [vmem:[#allocation55_spill] sm:$0xff] %v5486_v59  ;;  %4392 = vrcp.f32 %v1390_v8  ;;  %v5512_v8 = vpop.f32.mrf.mxu0 }
 0x16a   : > { %v5488_v2 = vpop.f32.mrf.mxu1 }
 0x16b   : > { %6358 = vst [vmem:[#allocation56_spill] sm:$0xff] %v5488_v2 }
 0x16c   : > { %v5492_v26 = vpop.f32.mrf.mxu1 }
 0x16d   : > { %6359 = vst [vmem:[#allocation57_spill] sm:$0xff] %v5492_v26  ;;  %v4363_v26 = vpop.eup %4362  ;;  %4394 = vpow2.f32 %v3688_v32 }
 0x16e   : > { %v5496_v5 = vpop.f32.mrf.mxu1  ;;  %v4365_v19 = vpop.eup %4364  ;;  %4396 = vpow2.f32 %v3689_v3 }
 0x16f   : > { %6360 = vst [vmem:[#allocation58_spill] sm:$0xff] %v5496_v5  ;;  %v4367_v4 = vpop.eup %4366  ;;  %v1387_v5 = vadd.f32 1.0, %v4363_v26  ;;  %v1573_v21 = vmul.f32 %v4365_v19, %v5386_v38  ;;  %v3691_v26 = vmul.f32 -1.442695, %v5490_v17 }
 0x170   : > { %v5500_v2 = vpop.f32.mrf.mxu1  ;;  %v4369_v20 = vpop.eup %4368 }
 0x171   : > { %6361 = vst [vmem:[#allocation59_spill] sm:$0xff] %v5500_v2  ;;  %v4371_v28 = vpop.eup %4370  ;;  %v1392_v2 = vadd.f32 1.0, %v4367_v4  ;;  %v1574_v31 = vmul.f32 %v4369_v20, %v5390_v40  ;;  %4398 = vrcp.f32 %v1387_v5 }
 0x172   : > { %v1028_v7 = vpop.f32.mrf.mxu1  ;;  %v4373_v1 = vpop.eup %4372  ;;  %v1393_v25 = vadd.f32 1.0, %v4371_v28  ;;  %4400 = vpow2.f32 %v3690_v10 }
 0x173   : > { %v4375_v62 = vpop.eup %4374  ;;  %v1394_v38 = vadd.f32 1.0, %v4373_v1  ;;  %4402 = vrcp.f32 %v1392_v2  ;;  %v1635_v40 = vmul.f32 %v1571_v18, %v1028_v7  ;;  %v3694_v2 = vmul.f32 -1.442695, %v5512_v8 }
 0x174   : > { %v1030_v16 = vpop.f32.mrf.mxu1  ;;  %v4377_v19 = vpop.eup %4376  ;;  %4404 = vpow2.f32 %v3691_v26  ;;  %v1391_v11 = vadd.f32 1.0, %v4375_v62 }
 0x175   : > { %v1636_v4 = vmul.f32 %v1572_v9, %v1030_v16  ;;  %v4379_v3 = vpop.eup %4378  ;;  %4406 = vrcp.f32 %v1393_v25  ;;  %v1576_v25 = vmul.f32 %v4377_v19, %v5398_v44  ;;  %v3706_v9 = vmul.f32 -1.442695, %v5388_v39 }
 0x176   : > { %v1032_v59 = vpop.f32.mrf.mxu1  ;;  %v4381_v5 = vpop.eup %4380  ;;  %4408 = vrcp.f32 %v1394_v38 }
 0x177   : > { %v1637_v29 = vmul.f32 %v1573_v21, %v1032_v59  ;;  %v5516_v59 = vpop.f32.mrf.mxu0  ;;  %v4383_v16 = vpop.eup %4382  ;;  %4410 = vpow2.f32 %v3692_v36  ;;  %v1578_v62 = vmul.f32 %v4381_v5, %v5406_v48  ;;  %v3707_v48 = vmul.f32 -1.442695, %v5392_v41 }
 0x178   : > { %v1034_v12 = vpop.f32.mrf.mxu1  ;;  %4412 = vpow2.f32 %v3693_v33  ;;  %v1575_v26 = vmul.f32 %v4383_v16, %v5394_v42 }
 0x179   : > { %v1638_v32 = vmul.f32 %v1574_v31, %v1034_v12  ;;  %v1699_v20 = vpack.c.bf16 %v1637_v29, %v1635_v40  ;;  %v5519_v31 = vpop.eup %4384  ;;  %v1577_v12 = vmul.f32 %v4379_v3, %v5402_v46  ;;  %v3695_v29 = vmul.f32 -1.442695, %v5516_v59  ;;  %v5529_v18 = vpop.f32.mrf.mxu0 }
 0x17a   : > { %v1038_v22 = vpop.f32.mrf.mxu1  ;;  %v5522_v1 = vpop.eup %4386  ;;  %4414 = vrcp.f32 %v1391_v11 }
 0x17b   : > { %v1700_v28 = vpack.c.bf16 %v1638_v32, %v1636_v4  ;;  %v4389_v21 = vpop.eup %4388  ;;  %4416 = vpow2.f32 %v3694_v2  ;;  %v1639_v19 = vmul.f32 %v1575_v26, %v1038_v22  ;;  %v5532_v42 = vpop.f32.mrf.mxu0 }
 0x17c   : > { %v1040_v10 = vpop.f32.mrf.mxu1  ;;  %v4391_v4 = vpop.eup %4390  ;;  %4418 = vpow2.f32 %v3695_v29 }
 0x17d   : > { %1891 = vmatprep.mubr.bf16.mxu0 %v1700_v28  ;;  %v1640_v32 = vmul.f32 %v1576_v25, %v1040_v10  ;;  %v4393_v44 = vpop.eup %4392  ;;  %4420 = vpow2.f32 %v3706_v9  ;;  %v1581_v10 = vmul.f32 %v4391_v4, %v5420_v56  ;;  %v3708_v25 = vmul.f32 -1.442695, %v5396_v43 }
 0x17e   : > { %v1042_v7 = vpop.f32.mrf.mxu1  ;;  %1892 = vmatmul.mubr.bf16.vlgmr.msra.gmra.mxu0 %v1699_v20  ;;  %v4395_v3 = vpop.eup %4394  ;;  %4422 = vpow2.f32 %v3707_v48  ;;  %v1582_v29 = vmul.f32 %v4393_v44, %v5428_v60 }
 0x17f   : > { %v1641_v46 = vmul.f32 %v1577_v12, %v1042_v7  ;;  %v4397_v28 = vpop.eup %4396  ;;  %v1395_v12 = vadd.f32 1.0, %v4395_v3 }
 0x180   : > { %v1044_v38 = vpop.f32.mrf.mxu1  ;;  %v4399_v20 = vpop.eup %4398  ;;  %v1396_v16 = vadd.f32 1.0, %v4397_v28  ;;  %v3711_v28 = vmul.f32 -1.442695, %v5408_v49 }
 0x181   : > { %v1642_v36 = vmul.f32 %v1578_v62, %v1044_v38  ;;  %v1701_v5 = vpack.c.bf16 %v1641_v46, %v1639_v19  ;;  %v4401_v2 = vpop.eup %4400  ;;  %v1580_v62 = vmul.f32 %v4389_v21, %v5414_v53  ;;  %v3709_v46 = vmul.f32 -1.442695, %v5400_v45 }
 0x182   : > { %v1048_v40 = vpop.f32.mrf.mxu1  ;;  %v4403_v22 = vpop.eup %4402  ;;  %v1397_v9 = vadd.f32 1.0, %v4401_v2  ;;  %v1579_v38 = vmul.f32 %v4399_v20, %v5410_v50  ;;  %4424 = vrcp.f32 %v1396_v16  ;;  %v3710_v53 = vmul.f32 -1.442695, %v5404_v47 }
 0x183   : > { %v1702_v33 = vpack.c.bf16 %v1642_v36, %v1640_v32  ;;  %v4405_v26 = vpop.eup %4404  ;;  %v5540_v32 = vpop.f32.mrf.mxu0 }
 0x184   : > { %v1050_v11 = vpop.f32.mrf.mxu1  ;;  %v4407_v36 = vpop.eup %4406  ;;  %4426 = vrcp.f32 %v1397_v9  ;;  %v1398_v48 = vadd.f32 1.0, %v4405_v26  ;;  %v1643_v60 = vmul.f32 %v1579_v38, %v1048_v40 }
 0x185   : > { %1899 = vmatprep.mubr.bf16.mxu0 %v1702_v33  ;;  %v1644_v19 = vmul.f32 %v1580_v62, %v1050_v11  ;;  %v4409_v33 = vpop.eup %4408  ;;  %4428 = vrcp.f32 %v1395_v12  ;;  %v5544_v20 = vpop.f32.mrf.mxu0  ;;  %v1411_v12 = vadd.f32 1.0, %v5519_v31  ;;  %v1585_v40 = vmul.f32 %v4407_v36, %v5452_v13 }
 0x186   : > { %v1052_v7 = vpop.f32.mrf.mxu1  ;;  %1900 = vmatmul.mubr.bf16.gmra.mxu0 %v1701_v5  ;;  %v4411_v44 = vpop.eup %4410  ;;  %4430 = vrcp.f32 %v1398_v48  ;;  %v1586_v9 = vmul.f32 %v4409_v33, %v5460_v24 }
 0x187   : > { %v1645_v56 = vmul.f32 %v1581_v10, %v1052_v7  ;;  %v4413_v5 = vpop.eup %4412  ;;  %4432 = vpow2.f32 %v3708_v25  ;;  %v1399_v62 = vadd.f32 1.0, %v4411_v44  ;;  %v1584_v25 = vmul.f32 %v4403_v22, %v5442_v14 }
 0x188   : > { %v1054_v4 = vpop.f32.mrf.mxu1  ;;  %v4415_v10 = vpop.eup %4414  ;;  %4434 = vpow2.f32 %v3709_v46  ;;  %v1400_v11 = vadd.f32 1.0, %v4413_v5  ;;  %v1412_v46 = vadd.f32 1.0, %v5522_v1  ;;  %v3696_v14 = vmul.f32 -1.442695, %v5529_v18 }
 0x189   : > { %v1646_v3 = vmul.f32 %v1582_v29, %v1054_v4  ;;  %v1703_v16 = vpack.c.bf16 %v1645_v56, %v1643_v60  ;;  %v4417_v7 = vpop.eup %4416  ;;  %4436 = vpow2.f32 %v3710_v53  ;;  %v1583_v56 = vmul.f32 %v4415_v10, %v5436_v34  ;;  %v5552_v4 = vpop.f32.mrf.mxu0 }
 0x18a   : > { %v1058_v21 = vpop.f32.mrf.mxu1  ;;  %4438 = vpow2.f32 %v3711_v28  ;;  %v1401_v26 = vadd.f32 1.0, %v4417_v7  ;;  %v4419_v38 = vpop.eup %4418  ;;  %v3697_v1 = vmul.f32 -1.442695, %v5532_v42  ;;  %v3698_v5 = vmul.f32 -1.442695, %v5540_v32 }
 0x18b   : > { %v1704_v50 = vpack.c.bf16 %v1646_v3, %v1644_v19  ;;  %4440 = vrcp.f32 %v1400_v11  ;;  %v4421_v13 = vpop.eup %4420  ;;  %v1402_v36 = vadd.f32 1.0, %v4419_v38  ;;  %v1647_v24 = vmul.f32 %v1583_v56, %v1058_v21  ;;  %v5556_v60 = vpop.f32.mrf.mxu0 }
 0x18c   : > { %v1060_v2 = vpop.f32.mrf.mxu1  ;;  %4442 = vrcp.f32 %v1401_v26  ;;  %v4423_v33 = vpop.eup %4422  ;;  %v1413_v53 = vadd.f32 1.0, %v4421_v13  ;;  %v3699_v11 = vmul.f32 -1.442695, %v5544_v20 }
 0x18d   : > { %1907 = vmatprep.mubr.bf16.mxu0 %v1704_v50  ;;  %v1648_v19 = vmul.f32 %v1584_v25, %v1060_v2  ;;  %4444 = vrcp.f32 %v1399_v62  ;;  %v1414_v2 = vadd.f32 1.0, %v4423_v33  ;;  %v5562_v62 = vpop.f32.mrf.mxu0 }
 0x18e   : > { %v1062_v29 = vpop.f32.mrf.mxu1  ;;  %1908 = vmatmul.mubr.bf16.gmra.mxu0 %v1703_v16  ;;  %4446 = vrcp.f32 %v1402_v36  ;;  %v3701_v36 = vmul.f32 -1.442695, %v5556_v60 }
 0x18f   : > { %v1649_v31 = vmul.f32 %v1585_v40, %v1062_v29  ;;  %4448 = vrcp.f32 %v1411_v12  ;;  %v4425_v50 = vpop.eup %4424  ;;  %v3712_v12 = vmul.f32 -1.442695, %v5412_v51 }
 0x190   : > { %v1064_v48 = vpop.f32.mrf.mxu1  ;;  %4450 = vrcp.f32 %v1412_v46  ;;  %v1588_v26 = vmul.f32 %v4425_v50, %v5476_v27 }
 0x191   : > { %v1650_v3 = vmul.f32 %v1586_v9, %v1064_v48  ;;  %v1705_v44 = vpack.c.bf16 %v1649_v31, %v1647_v24  ;;  %v4427_v16 = vpop.eup %4426  ;;  %4452 = vpow2.f32 %v3696_v14  ;;  %v3713_v9 = vmul.f32 -1.442695, %v5416_v54  ;;  %v5579_v14 = vpop.f32.mrf.mxu0 }
 0x192   : > { %v1068_v22 = vpop.f32.mrf.mxu1  ;;  %v4429_v10 = vpop.eup %4428  ;;  %4454 = vpow2.f32 %v3697_v1  ;;  %v1589_v40 = vmul.f32 %v4427_v16, %v5484_v23  ;;  %v3700_v31 = vmul.f32 -1.442695, %v5552_v4  ;;  %v3702_v1 = vmul.f32 -1.442695, %v5562_v62 }
 0x193   : > { %v1706_v34 = vpack.c.bf16 %v1650_v3, %v1648_v19  ;;  %v4431_v7 = vpop.eup %4430  ;;  %4456 = vrcp.f32 %v1413_v53  ;;  %v1587_v56 = vmul.f32 %v4429_v10, %v5468_v6  ;;  %v3703_v16 = vmul.f32 -1.442695, %v5579_v14 }
 0x194   : > { %v1070_v28 = vpop.f32.mrf.mxu1  ;;  %v5564_v25 = vpop.eup %4432  ;;  %v1590_v38 = vmul.f32 %v4431_v7, %v5490_v17  ;;  %4458 = vpow2.f32 %v3698_v5  ;;  %v3714_v17 = vmul.f32 -1.442695, %v5418_v55  ;;  %v3717_v7 = vmul.f32 -1.442695, %v5430_v61 }
 0x195   : > { %1915 = vmatprep.mubr.bf16.mxu0 %v1706_v34  ;;  %v5569_v46 = vpop.eup %4434  ;;  %4460 = vrcp.f32 %v1414_v2  ;;  %v1652_v19 = vmul.f32 %v1588_v26, %v1070_v28  ;;  %v1651_v24 = vmul.f32 %v1587_v56, %v1068_v22  ;;  %v3716_v22 = vmul.f32 -1.442695, %v5425_v57 }
 0x196   : > { %v1072_v21 = vpop.f32.mrf.mxu1  ;;  %1916 = vmatmul.mubr.bf16.gmra.mxu0 %v1705_v44  ;;  %v5573_v13 = vpop.eup %4436  ;;  %4462 = vpow2.f32 %v3699_v11  ;;  %v3715_v44 = vmul.f32 -1.442695, %v5422_v52 }
 0x197   : > { %v1653_v23 = vmul.f32 %v1589_v40, %v1072_v21  ;;  %v5576_v27 = vpop.eup %4438  ;;  %4464 = vpow2.f32 %v3712_v12 }
 0x198   : > { %v1074_v29 = vpop.f32.mrf.mxu1  ;;  %v4441_v33 = vpop.eup %4440  ;;  %4466 = vpow2.f32 %v3713_v9  ;;  %v3718_v9 = vmul.f32 -1.442695, %v5433_v63 }
 0x199   : > { %v1654_v3 = vmul.f32 %v1590_v38, %v1074_v29  ;;  %v4443_v53 = vpop.eup %4442  ;;  %4468 = vpow2.f32 %v3700_v31  ;;  %v1707_v28 = vpack.c.bf16 %v1653_v23, %v1651_v24  ;;  %v1592_v12 = vmul.f32 %v4441_v33, %v5504_v0 }
 0x19a   : > { %v1078_v48 = vpop.f32.mrf.mxu1  ;;  %v4445_v5 = vpop.eup %4444  ;;  %4470 = vpow2.f32 %v3701_v36  ;;  %v1593_v21 = vmul.f32 %v4443_v53, %v5512_v8  ;;  %v3719_v31 = vmul.f32 -1.442695, %v5438_v30 }
 0x19b   : > { %v1708_v34 = vpack.c.bf16 %v1654_v3, %v1652_v19  ;;  %v4447_v2 = vpop.eup %4446  ;;  %4472 = vpow2.f32 %v3714_v17  ;;  %v1591_v26 = vmul.f32 %v4445_v5, %v5498_v58  ;;  %v1417_v5 = vadd.f32 1.0, %v5573_v13 }
 0x19c   : > { %v1080_v6 = vpop.f32.mrf.mxu1  ;;  %v5586_v11 = vpop.eup %4448  ;;  %v1594_v40 = vmul.f32 %v4447_v2, %v5516_v59  ;;  %4474 = vpow2.f32 %v3702_v1 }
 0x19d   : > { %1923 = vmatprep.mubr.bf16.mxu0 %v1708_v34  ;;  %v5591_v29 = vpop.eup %4450  ;;  %4476 = vpow2.f32 %v3715_v44  ;;  %v1656_v23 = vmul.f32 %v1592_v12, %v1080_v6  ;;  %v1655_v59 = vmul.f32 %v1591_v26, %v1078_v48  ;;  %v1415_v48 = vadd.f32 1.0, %v5564_v25 }
 0x19e   : > { %v1082_v50 = vpop.f32.mrf.mxu1  ;;  %1924 = vmatmul.mubr.bf16.gmra.mxu0 %v1707_v28  ;;  %v4453_v56 = vpop.eup %4452  ;;  %4478 = vpow2.f32 %v3703_v16 }
 0x19f   : > { %v1657_v38 = vmul.f32 %v1593_v21, %v1082_v50  ;;  %v4455_v0 = vpop.eup %4454  ;;  %4480 = vpow2.f32 %v3716_v22  ;;  %v1403_v33 = vadd.f32 1.0, %v4453_v56  ;;  %v1416_v22 = vadd.f32 1.0, %v5569_v46 }
 0x1a0   : > { %v1084_v10 = vpop.f32.mrf.mxu1  ;;  %v5600_v3 = vpop.eup %4456  ;;  %4482 = vpow2.f32 %v3717_v7  ;;  %v1404_v17 = vadd.f32 1.0, %v4455_v0  ;;  %v1418_v7 = vadd.f32 1.0, %v5576_v27 }
 0x1a1   : > { %v1658_v36 = vmul.f32 %v1594_v40, %v1084_v10  ;;  %v4459_v58 = vpop.eup %4458  ;;  %4484 = vpow2.f32 %v3718_v9  ;;  %v1709_v1 = vpack.c.bf16 %v1657_v38, %v1655_v59 }
 0x1a2   : > { %v5595_v8 = vpop.f32.mrf.mxu1  ;;  %v5604_v53 = vpop.eup %4460  ;;  %4486 = vpow2.f32 %v3719_v31  ;;  %v1405_v6 = vadd.f32 1.0, %v4459_v58 }
 0x1a3   : > { %v1710_v24 = vpack.c.bf16 %v1658_v36, %v1656_v23  ;;  %v4463_v44 = vpop.eup %4462  ;;  %4488 = vrcp.f32 %v1404_v17 }
 0x1a4   : > { %v5598_v19 = vpop.f32.mrf.mxu1  ;;  %v4465_v50 = vpop.eup %4464  ;;  %4490 = vrcp.f32 %v1405_v6  ;;  %v1406_v16 = vadd.f32 1.0, %v4463_v44 }
 0x1a5   : > { %1931 = vmatprep.mubr.bf16.mxu0 %v1710_v24  ;;  %v4467_v2 = vpop.eup %4466  ;;  %4492 = vrcp.f32 %v1403_v33  ;;  %v1419_v23 = vadd.f32 1.0, %v4465_v50  ;;  %v1603_v50 = vmul.f32 %v5586_v11, %v5380_v35 }
 0x1a6   : > { %v5602_v34 = vpop.f32.mrf.mxu1  ;;  %1932 = vmatmul.mubr.bf16.gmra.mxu0 %v1709_v1  ;;  %v4469_v10 = vpop.eup %4468  ;;  %4494 = vrcp.f32 %v1406_v16  ;;  %v1420_v24 = vadd.f32 1.0, %v4467_v2  ;;  %v1605_v16 = vmul.f32 %v5600_v3, %v5388_v39  ;;  %v1604_v2 = vmul.f32 %v5591_v29, %v5384_v37 }
 0x1a7   : > { %v4471_v25 = vpop.eup %4470  ;;  %4496 = vrcp.f32 %v1415_v48  ;;  %v1407_v26 = vadd.f32 1.0, %v4469_v10  ;;  %v3721_v10 = vmul.f32 -1.442695, %v5444_v15 }
 0x1a8   : > { %v5607_v28 = vpop.f32.mrf.mxu1  ;;  %v4473_v40 = vpop.eup %4472  ;;  %4498 = vrcp.f32 %v1417_v5  ;;  %v1408_v9 = vadd.f32 1.0, %v4471_v25 }
 0x1a9   : > { %v4475_v13 = vpop.eup %4474  ;;  %4500 = vrcp.f32 %v1416_v22  ;;  %v1421_v0 = vadd.f32 1.0, %v4473_v40 }
 0x1aa   : > { %v5611_v21 = vpop.f32.mrf.mxu1  ;;  %v4477_v46 = vpop.eup %4476  ;;  %4502 = vrcp.f32 %v1418_v7  ;;  %v1409_v56 = vadd.f32 1.0, %v4475_v13  ;;  %v6362_v7 = vld [vmem:[#allocation47_spill] sm:$0xff]  ;;  %v1606_v13 = vmul.f32 %v5604_v53, %v5392_v41 }
 0x1ab   : > { %v4479_v31 = vpop.eup %4478  ;;  %4504 = vrcp.f32 %v1408_v9  ;;  %v1422_v1 = vadd.f32 1.0, %v4477_v46  ;;  %v3723_v25 = vmul.f32 -1.442695, %v6362_v7 }
 0x1ac   : > { %v5614_v12 = vpop.f32.mrf.mxu1  ;;  %v4481_v36 = vpop.eup %4480  ;;  %4506 = vrcp.f32 %v1409_v56  ;;  %v1410_v59 = vadd.f32 1.0, %v4479_v31 }
 0x1ad   : > { %v4483_v17 = vpop.eup %4482  ;;  %4508 = vrcp.f32 %v1407_v26  ;;  %v1423_v44 = vadd.f32 1.0, %v4481_v36 }
 0x1ae   : > { %v5616_v38 = vpop.f32.mrf.mxu1  ;;  %v4485_v33 = vpop.eup %4484  ;;  %4510 = vrcp.f32 %v1410_v59  ;;  %v1424_v36 = vadd.f32 1.0, %v4483_v17 }
 0x1af   : > { %v4487_v6 = vpop.eup %4486  ;;  %4512 = vrcp.f32 %v1419_v23  ;;  %v1425_v3 = vadd.f32 1.0, %v4485_v33 }
 0x1b0   : > { %v5618_v27 = vpop.f32.mrf.mxu1  ;;  %v4489_v5 = vpop.eup %4488  ;;  %4514 = vrcp.f32 %v1421_v0  ;;  %v1426_v0 = vadd.f32 1.0, %v4487_v6 }
 0x1b1   : > { %v4491_v22 = vpop.eup %4490  ;;  %4516 = vrcp.f32 %v1420_v24  ;;  %v1596_v37 = vmul.f32 %v4489_v5, %v5532_v42 }
 0x1b2   : > { %v1108_v58 = vpop.f32.mrf.mxu1  ;;  %v4493_v9 = vpop.eup %4492  ;;  %4518 = vrcp.f32 %v1422_v1  ;;  %v1597_v29 = vmul.f32 %v4491_v22, %v5540_v32 }
 0x1b3   : > { %v5630_v35 = vmul.f32 %v1603_v50, %v1108_v58  ;;  %v4495_v39 = vpop.eup %4494  ;;  %4520 = vrcp.f32 %v1423_v44  ;;  %v1595_v59 = vmul.f32 %v4493_v9, %v5529_v18  ;;  %v1660_v58 = vmul.f32 %v1596_v37, %v5598_v19  ;;  %v6365_v9 = vld [vmem:[#allocation49_spill] sm:$0xff] }
 0x1b4   : > { %v1110_v48 = vpop.f32.mrf.mxu1  ;;  %v4497_v46 = vpop.eup %4496  ;;  %v1598_v56 = vmul.f32 %v4495_v39, %v5544_v20  ;;  %v1661_v42 = vmul.f32 %v1597_v29, %v5602_v34  ;;  %4522 = vpow2.f32 %v3723_v25 }
 0x1b5   : > { %v5637_v31 = vmul.f32 %v1604_v2, %v1110_v48  ;;  %v4499_v23 = vpop.eup %4498  ;;  %4524 = vrcp.f32 %v1425_v3  ;;  %v1659_v44 = vmul.f32 %v1595_v59, %v5595_v8  ;;  %v1607_v18 = vmul.f32 %v4497_v46, %v5396_v43 }
 0x1b6   : > { %v1112_v40 = vpop.f32.mrf.mxu1  ;;  %v4501_v32 = vpop.eup %4500  ;;  %v1662_v20 = vmul.f32 %v1598_v56, %v5607_v28  ;;  %v1609_v34 = vmul.f32 %v4499_v23, %v5404_v47  ;;  %4526 = vpow2.f32 %v3721_v10  ;;  %v6363_v28 = vld [vmem:[#allocation51_spill] sm:$0xff]  ;;  %v6364_v10 = vld [vmem:[#allocation46_spill] sm:$0xff]  ;;  %v6366_v23 = vld [vmem:[#allocation45_spill] sm:$0xff] }
 0x1b7   : > { %v5632_v11 = vmul.f32 %v1605_v16, %v1112_v40  ;;  %v4503_v1 = vpop.eup %4502  ;;  %v1608_v19 = vmul.f32 %v4501_v32, %v5400_v45  ;;  %4528 = vrcp.f32 %v1424_v36  ;;  %v3727_v50 = vmul.f32 -1.442695, %v6363_v28 }
 0x1b8   : > { %v1114_v26 = vpop.f32.mrf.mxu1  ;;  %v4505_v6 = vpop.eup %4504  ;;  %v1712_v48 = vpack.c.bf16 %v1662_v20, %v1660_v58  ;;  %v1711_v16 = vpack.c.bf16 %v1661_v42, %v1659_v44  ;;  %v1610_v25 = vmul.f32 %v4503_v1, %v5408_v49  ;;  %4530 = vrcp.f32 %v1426_v0 }
 0x1b9   : > { %v1715_v41 = vpack.c.bf16 %v5632_v11, %v5630_v35  ;;  %v5641_v53 = vmul.f32 %v1606_v13, %v1114_v26  ;;  %v4507_v5 = vpop.eup %4506  ;;  %v3722_v40 = vmul.f32 -1.442695, %v6364_v10  ;;  %v3725_v13 = vmul.f32 -1.442695, %v6365_v9 }
 0x1ba   : > { %v1118_v24 = vpop.f32.mrf.mxu1  ;;  %v4509_v2 = vpop.eup %4508  ;;  %1939 = vmatprep.mubr.bf16.mxu0 %v1712_v48  ;;  %v1600_v45 = vmul.f32 %v4505_v6, %v5556_v60  ;;  %v1601_v39 = vmul.f32 %v4507_v5, %v5562_v62  ;;  %v3720_v36 = vmul.f32 -1.442695, %v6366_v23  ;;  %4532 = vpow2.f32 %v3727_v50 }
 0x1bb   : > { %v1716_v33 = vpack.c.bf16 %v5641_v53, %v5637_v31  ;;  %v5655_v8 = vmul.f32 %v1607_v18, %v1118_v24  ;;  %v4511_v47 = vpop.eup %4510  ;;  %1940 = vmatmul.mubr.bf16.gmra.mxu0 %v1711_v16  ;;  %v1599_v0 = vmul.f32 %v4509_v2, %v5552_v4  ;;  %4534 = vpow2.f32 %v3722_v40  ;;  %v6369_v16 = vld [vmem:[#allocation53_spill] sm:$0xff] }
 0x1bc   : > { %v1120_v17 = vpop.f32.mrf.mxu1  ;;  %v4513_v37 = vpop.eup %4512  ;;  %v1602_v49 = vmul.f32 %v4511_v47, %v5579_v14  ;;  %v1665_v60 = vmul.f32 %v1601_v39, %v5616_v38  ;;  %v1664_v42 = vmul.f32 %v1600_v45, %v5614_v12  ;;  %4536 = vpow2.f32 %v3725_v13  ;;  %v6370_v47 = vld [vmem:[#allocation48_spill] sm:$0xff] }
 0x1bd   : > { %v5664_v29 = vmul.f32 %v1608_v19, %v1120_v17  ;;  %v4515_v56 = vpop.eup %4514  ;;  %v1663_v58 = vmul.f32 %v1599_v0, %v5611_v21  ;;  %v1611_v4 = vmul.f32 %v4513_v37, %v5412_v51  ;;  %4538 = vpow2.f32 %v3720_v36  ;;  %v6367_v17 = vld [vmem:[#allocation55_spill] sm:$0xff]  ;;  %v6368_v51 = vld [vmem:[#allocation50_spill] sm:$0xff] }
 0x1be   : > { %v1122_v22 = vpop.f32.mrf.mxu1  ;;  %v4517_v59 = vpop.eup %4516  ;;  %v1666_v14 = vmul.f32 %v1602_v49, %v5618_v27  ;;  %v1613_v38 = vmul.f32 %v4515_v56, %v5418_v55  ;;  %v3731_v12 = vmul.f32 -1.442695, %v6367_v17  ;;  %v3726_v19 = vmul.f32 -1.442695, %v6368_v51 }
 0x1bf   : > { %v5657_v43 = vmul.f32 %v1609_v34, %v1122_v22  ;;  %v4519_v32 = vpop.eup %4518  ;;  %v1713_v6 = vpack.c.bf16 %v1665_v60, %v1663_v58  ;;  %v1612_v18 = vmul.f32 %v4517_v59, %v5416_v54  ;;  %v3729_v22 = vmul.f32 -1.442695, %v6369_v16 }
 0x1c0   : > { %v1124_v3 = vpop.f32.mrf.mxu1  ;;  %v4521_v1 = vpop.eup %4520  ;;  %v1714_v44 = vpack.c.bf16 %v1666_v14, %v1664_v42  ;;  %v1614_v34 = vmul.f32 %v4519_v32, %v5422_v52  ;;  %v3724_v40 = vmul.f32 -1.442695, %v6370_v47  ;;  %4540 = vpow2.f32 %v3731_v12  ;;  %v6372_v42 = vld [vmem:[#allocation54_spill] sm:$0xff]  ;;  %v6373_v14 = vld [vmem:[#allocation57_spill] sm:$0xff] }
 0x1c1   : > { %v1717_v26 = vpack.c.bf16 %v5657_v43, %v5655_v8  ;;  %v5668_v46 = vmul.f32 %v1610_v25, %v1124_v3  ;;  %v4523_v5 = vpop.eup %4522  ;;  %4542 = vpow2.f32 %v3726_v19 }
 0x1c2   : > { %v1128_v62 = vpop.f32.mrf.mxu1  ;;  %1947 = vmatprep.mubr.bf16.mxu0 %v1714_v44  ;;  %v4525_v50 = vpop.eup %4524  ;;  %v1430_v39 = vadd.f32 1.0, %v4523_v5  ;;  %4544 = vpow2.f32 %v3729_v22  ;;  %v6375_v5 = vld [vmem:[#allocation58_spill] sm:$0xff] }
 0x1c3   : > { %v1718_v24 = vpack.c.bf16 %v5668_v46, %v5664_v29  ;;  %v5683_v48 = vmul.f32 %v1611_v4, %v1128_v62  ;;  %1948 = vmatmul.mubr.bf16.gmra.mxu0 %v1713_v6  ;;  %v4527_v25 = vpop.eup %4526  ;;  %v1615_v29 = vmul.f32 %v4521_v1, %v5425_v57  ;;  %v1617_v31 = vmul.f32 %v4525_v50, %v5433_v63  ;;  %v6371_v46 = vld [vmem:[#allocation59_spill] sm:$0xff]  ;;  %v6374_v4 = vld [vmem:[#allocation52_spill] sm:$0xff] }
 0x1c4   : > { %v1130_v20 = vpop.f32.mrf.mxu1  ;;  %1955 = vmatprep.mubr.bf16.mxu0 %v1716_v33  ;;  %v4529_v45 = vpop.eup %4528  ;;  %v1428_v53 = vadd.f32 1.0, %v4527_v25  ;;  %4546 = vpow2.f32 %v3724_v40  ;;  %v3735_v56 = vmul.f32 -1.442695, %v6371_v46  ;;  %v3730_v57 = vmul.f32 -1.442695, %v6372_v42 }
 0x1c5   : > { %v1676_v54 = vmul.f32 %v1612_v18, %v1130_v20  ;;  %v4531_v37 = vpop.eup %4530  ;;  %v1616_v33 = vmul.f32 %v4529_v45, %v5430_v61  ;;  %4548 = vrcp.f32 %v1430_v39  ;;  %v3733_v63 = vmul.f32 -1.442695, %v6373_v14 }
 0x1c6   : > { %v1132_v27 = vpop.f32.mrf.mxu1  ;;  %v1618_v0 = vmul.f32 %v4531_v37, %v5438_v30  ;;  %4550 = vrcp.f32 %v1428_v53  ;;  %v3734_v19 = vmul.f32 -1.442695, %v6375_v5 }
 0x1c7   : > { %v5685_v21 = vmul.f32 %v1613_v38, %v1132_v27  ;;  %v4533_v59 = vpop.eup %4532  ;;  %v3728_v38 = vmul.f32 -1.442695, %v6374_v4  ;;  %4552 = vpow2.f32 %v3735_v56 }
 0x1c8   : > { %v1134_v55 = vpop.f32.mrf.mxu1  ;;  %v4535_v32 = vpop.eup %4534  ;;  %v1434_v6 = vadd.f32 1.0, %v4533_v59  ;;  %4554 = vpow2.f32 %v3730_v57 }
 0x1c9   : > { %v1719_v52 = vpack.c.bf16 %v5685_v21, %v5683_v48  ;;  %v1678_v2 = vmul.f32 %v1614_v34, %v1134_v55  ;;  %v4537_v1 = vpop.eup %4536  ;;  %v1429_v35 = vadd.f32 1.0, %v4535_v32  ;;  %4556 = vpow2.f32 %v3733_v63 }
 0x1ca   : > { %v1138_v13 = vpop.f32.mrf.mxu1  ;;  %v4539_v12 = vpop.eup %4538  ;;  %4558 = vpow2.f32 %v3728_v38 }
 0x1cb   : > { %v1720_v3 = vpack.c.bf16 %v1678_v2, %v1676_v54  ;;  %v5700_v60 = vmul.f32 %v1615_v29, %v1138_v13  ;;  %1956 = vmatmul.mubr.bf16.gmra.mxu0 %v1715_v41  ;;  %v1432_v41 = vadd.f32 1.0, %v4537_v1  ;;  %4560 = vrcp.f32 %v1434_v6  ;;  %v6376_v54 = vld [vmem:[#allocation56_spill] sm:$0xff] }
 0x1cc   : > { %v1140_v49 = vpop.f32.mrf.mxu1  ;;  %1963 = vmatprep.mubr.bf16.mxu0 %v1718_v24  ;;  %v1427_v24 = vadd.f32 1.0, %v4539_v12  ;;  %4562 = vrcp.f32 %v1429_v35  ;;  %v3732_v2 = vmul.f32 -1.442695, %v6376_v54 }
 0x1cd   : > { %v1680_v58 = vmul.f32 %v1616_v33, %v1140_v49  ;;  %v4541_v34 = vpop.eup %4540  ;;  %4564 = vrcp.f32 %v1432_v41 }
 0x1ce   : > { %v1142_v36 = vpop.f32.mrf.mxu1  ;;  %v4543_v50 = vpop.eup %4542  ;;  %4566 = vrcp.f32 %v1427_v24  ;;  %v1438_v13 = vadd.f32 1.0, %v4541_v34 }
 0x1cf   : > { %v5702_v62 = vmul.f32 %v1617_v31, %v1142_v36  ;;  %v4545_v22 = vpop.eup %4544  ;;  %v1433_v39 = vadd.f32 1.0, %v4543_v50  ;;  %4568 = vpow2.f32 %v3734_v19 }
 0x1d0   : > { %v1144_v61 = vpop.f32.mrf.mxu1  ;;  %v1436_v49 = vadd.f32 1.0, %v4545_v22  ;;  %4570 = vpow2.f32 %v3732_v2 }
 0x1d1   : > { %v1721_v30 = vpack.c.bf16 %v5702_v62, %v5700_v60  ;;  %v1682_v20 = vmul.f32 %v1618_v0, %v1144_v61  ;;  %v4547_v40 = vpop.eup %4546  ;;  %4572 = vrcp.f32 %v1438_v13 }
 0x1d2   : > { %v5712_v44 = vpop.f32.mrf.mxu1  ;;  %v4549_v45 = vpop.eup %4548  ;;  %v1431_v8 = vadd.f32 1.0, %v4547_v40  ;;  %4574 = vrcp.f32 %v1433_v39 }
 0x1d3   : > { %v1722_v27 = vpack.c.bf16 %v1682_v20, %v1680_v58  ;;  %1964 = vmatmul.mubr.bf16.gmra.mxu0 %v1717_v26  ;;  %v4551_v29 = vpop.eup %4550  ;;  %v1622_v26 = vmul.f32 %v4549_v45, %v6362_v7  ;;  %4576 = vrcp.f32 %v1436_v49 }
 0x1d4   : > { %v1150_v11 = vpop.f32.mrf.mxu1  ;;  %1971 = vmatprep.mubr.bf16.mxu0 %v1720_v3  ;;  %v4553_v3 = vpop.eup %4552  ;;  %v1620_v33 = vmul.f32 %v4551_v29, %v5444_v15  ;;  %4578 = vrcp.f32 %v1431_v8 }
 0x1d5   : > { %v4555_v53 = vpop.eup %4554  ;;  %v1442_v7 = vadd.f32 1.0, %v4553_v3 }
 0x1d6   : > { %v5714_v18 = vpop.f32.mrf.mxu1  ;;  %v4557_v36 = vpop.eup %4556  ;;  %v1684_v57 = vmul.f32 %v1620_v33, %v1150_v11  ;;  %v1437_v61 = vadd.f32 1.0, %v4555_v53 }
 0x1d7   : > { %v4559_v59 = vpop.eup %4558  ;;  %v1440_v48 = vadd.f32 1.0, %v4557_v36  ;;  %4580 = vrcp.f32 %v1442_v7 }
 0x1d8   : > { %v1154_v55 = vpop.f32.mrf.mxu1  ;;  %v4561_v63 = vpop.eup %4560  ;;  %v1435_v20 = vadd.f32 1.0, %v4559_v59  ;;  %4582 = vrcp.f32 %v1437_v61 }
 0x1d9   : > { %v1686_v56 = vmul.f32 %v1622_v26, %v1154_v55  ;;  %v4563_v58 = vpop.eup %4562  ;;  %v1626_v38 = vmul.f32 %v4561_v63, %v6363_v28  ;;  %4584 = vrcp.f32 %v1440_v48 }
 0x1da   : > { %v5721_v25 = vpop.f32.mrf.mxu1  ;;  %v1621_v12 = vmul.f32 %v4563_v58, %v6364_v10  ;;  %4586 = vrcp.f32 %v1435_v20 }
 0x1db   : > { %1972 = vmatmul.mubr.bf16.gmra.mxu0 %v1719_v52  ;;  %v1724_v21 = vpack.c.bf16 %v1686_v56, %v1684_v57  ;;  %v4565_v52 = vpop.eup %4564 }
 0x1dc   : > { %v1160_v37 = vpop.f32.mrf.mxu1  ;;  %1979 = vmatprep.mubr.bf16.mxu0 %v1722_v27  ;;  %v4567_v15 = vpop.eup %4566  ;;  %v1624_v35 = vmul.f32 %v4565_v52, %v6365_v9  ;;  %v1685_v28 = vmul.f32 %v1621_v12, %v5714_v18 }
 0x1dd   : > { %v4569_v27 = vpop.eup %4568  ;;  %v1619_v41 = vmul.f32 %v4567_v15, %v6366_v23 }
 0x1de   : > { %v5723_v43 = vpop.f32.mrf.mxu1  ;;  %v4571_v34 = vpop.eup %4570  ;;  %v1688_v10 = vmul.f32 %v1624_v35, %v1160_v37  ;;  %v1441_v55 = vadd.f32 1.0, %v4569_v27 }
 0x1df   : > { %v4573_v19 = vpop.eup %4572  ;;  %v1683_v60 = vmul.f32 %v1619_v41, %v5712_v44  ;;  %v1439_v22 = vadd.f32 1.0, %v4571_v34 }
 0x1e0   : > { %v1164_v31 = vpop.f32.mrf.mxu1  ;;  %v4575_v62 = vpop.eup %4574  ;;  %v1630_v13 = vmul.f32 %v4573_v19, %v6367_v17  ;;  %4588 = vrcp.f32 %v1441_v55 }
 0x1e1   : > { %v1690_v11 = vmul.f32 %v1626_v38, %v1164_v31  ;;  %v4577_v50 = vpop.eup %4576  ;;  %v1723_v9 = vpack.c.bf16 %v1685_v28, %v1683_v60  ;;  %v1625_v23 = vmul.f32 %v4575_v62, %v6368_v51  ;;  %4590 = vrcp.f32 %v1439_v22 }
 0x1e2   : > { %v5730_v0 = vpop.f32.mrf.mxu1  ;;  %v4579_v40 = vpop.eup %4578  ;;  %v1628_v18 = vmul.f32 %v4577_v50, %v6369_v16 }
 0x1e3   : > { %1980 = vmatmul.mubr.bf16.gmra.mxu0 %v1721_v30  ;;  %v1726_v30 = vpack.c.bf16 %v1690_v11, %v1688_v10  ;;  %v1623_v39 = vmul.f32 %v4579_v40, %v6370_v47  ;;  %v1689_v44 = vmul.f32 %v1625_v23, %v5723_v43 }
 0x1e4   : > { %v1170_v32 = vpop.f32.mrf.mxu1  ;;  %1987 = vmatprep.mubr.bf16.mxu0 %v1724_v21  ;;  %v4581_v29 = vpop.eup %4580 }
 0x1e5   : > { %v1692_v49 = vmul.f32 %v1628_v18, %v1170_v32  ;;  %v1687_v8 = vmul.f32 %v1623_v39, %v5721_v25  ;;  %v4583_v26 = vpop.eup %4582  ;;  %v1634_v16 = vmul.f32 %v4581_v29, %v6371_v46 }
 0x1e6   : > { %v1172_v1 = vpop.f32.mrf.mxu1  ;;  %v4585_v3 = vpop.eup %4584  ;;  %v1629_v33 = vmul.f32 %v4583_v26, %v6372_v42 }
 0x1e7   : > { %v1725_v51 = vpack.c.bf16 %v1689_v44, %v1687_v8  ;;  %v4587_v53 = vpop.eup %4586  ;;  %v1632_v47 = vmul.f32 %v4585_v3, %v6373_v14 }
 0x1e8   : > { %v1174_v6 = vpop.f32.mrf.mxu1  ;;  %v1627_v56 = vmul.f32 %v4587_v53, %v6374_v4  ;;  %v1693_v36 = vmul.f32 %v1629_v33, %v1172_v1 }
 0x1e9   : > { %v1694_v45 = vmul.f32 %v1630_v13, %v1174_v6 }
 0x1ea   : > { %v1178_v24 = vpop.f32.mrf.mxu1  ;;  %v1691_v25 = vmul.f32 %v1627_v56, %v5730_v0 }
 0x1eb   : > { %1988 = vmatmul.mubr.bf16.gmra.mxu0 %v1723_v9  ;;  %v1728_v17 = vpack.c.bf16 %v1694_v45, %v1692_v49 }
 0x1ec   : > { %v1180_v2 = vpop.f32.mrf.mxu1  ;;  %1995 = vmatprep.mubr.bf16.mxu0 %v1726_v30  ;;  %v1727_v63 = vpack.c.bf16 %v1693_v36, %v1691_v25 }
 0x1ed   : > { %v1696_v59 = vmul.f32 %v1632_v47, %v1180_v2  ;;  %v4589_v7 = vpop.eup %4588 }
 0x1ee   : > { %v1182_v37 = vpop.f32.mrf.mxu1  ;;  %v4591_v61 = vpop.eup %4590  ;;  %v1633_v32 = vmul.f32 %v4589_v7, %v6375_v5 }
 0x1ef   : > { %v1631_v46 = vmul.f32 %v4591_v61, %v6376_v54 }
 0x1f0   : > { %v1184_v31 = vpop.f32.mrf.mxu1  ;;  %v1697_v42 = vmul.f32 %v1633_v32, %v1182_v37 }
 0x1f1   : > { %v1698_v43 = vmul.f32 %v1634_v16, %v1184_v31  ;;  %v1695_v14 = vmul.f32 %v1631_v46, %v1178_v24 }
 0x1f3   : > { %1996 = vmatmul.mubr.bf16.gmra.mxu0 %v1725_v51  ;;  %v1730_v57 = vpack.c.bf16 %v1698_v43, %v1696_v59  ;;  %v1729_v58 = vpack.c.bf16 %v1697_v42, %v1695_v14 }
 0x1f4   : > { %2003 = vmatprep.mubr.bf16.mxu0 %v1728_v17 }
 0x1fb   : > { %2004 = vmatmul.mubr.bf16.gmra.mxu0 %v1727_v63 }
 0x1fc   : > { %2011 = vmatprep.mubr.bf16.mxu0 %v1730_v57 }
 0x203   : > { %2012 = vmatmul.mubr.bf16.gmra.mxu0 %v1729_v58 }
 0x23e   : > { %v3852_v48 = vpop.f32.mrf.mxu0 }
 0x240   : > { %v3853_v4 = vpop.f32.mrf.mxu0 }
 0x241   : > { %v3854_v21 = vadd.f32 %v3853_v4, %v3852_v48 }
 0x242   : > { %v3855_v52 = vpop.f32.mrf.mxu0 }
 0x243   : > { %2020 = vst [vmem:[#allocation2 + $0xb0] sm:$0xff] %v3854_v21 }
 0x244   : > { %v3856_v0 = vpop.f32.mrf.mxu0 }
 0x245   : > { %v3857_v20 = vadd.f32 %v3856_v0, %v3855_v52 }
 0x246   : > { %v3858_v1 = vpop.f32.mrf.mxu0 }
 0x247   : > { %2021 = vst [vmem:[#allocation2] sm:$0xff] %v3857_v20 }
 0x248   : > { %v3859_v15 = vpop.f32.mrf.mxu0 }
 0x249   : > { %v3860_v38 = vadd.f32 %v3859_v15, %v3858_v1 }
 0x24a   : > { %v3861_v5 = vpop.f32.mrf.mxu0 }
 0x24b   : > { %2022 = vst [vmem:[#allocation2 + $0xd8] sm:$0xff] %v3860_v38 }
 0x24c   : > { %v3862_v12 = vpop.f32.mrf.mxu0 }
 0x24d   : > { %v3863_v6 = vadd.f32 %v3862_v12, %v3861_v5 }
 0x24e   : > { %v3864_v54 = vpop.f32.mrf.mxu0 }
 0x24f   : > { %2023 = vst [vmem:[#allocation2 + $0x18] sm:$0xff] %v3863_v6 }
 0x250   : > { %v3865_v27 = vpop.f32.mrf.mxu0 }
 0x251   : > { %v3866_v35 = vadd.f32 %v3865_v27, %v3864_v54 }
 0x252   : > { %v3867_v11 = vpop.f32.mrf.mxu0 }
 0x253   : > { %2024 = vst [vmem:[#allocation2 + $0x50] sm:$0xff] %v3866_v35 }
 0x254   : > { %v3868_v41 = vpop.f32.mrf.mxu0 }
 0x255   : > { %v3869_v28 = vadd.f32 %v3868_v41, %v3867_v11 }
 0x256   : > { %v3870_v24 = vpop.f32.mrf.mxu0 }
 0x257   : > { %2025 = vst [vmem:[#allocation2 + $0x68] sm:$0xff] %v3869_v28 }
 0x258   : > { %v3871_v34 = vpop.f32.mrf.mxu0 }
 0x259   : > { %v3872_v10 = vadd.f32 %v3871_v34, %v3870_v24 }
 0x25a   : > { %v3873_v19 = vpop.f32.mrf.mxu0 }
 0x25b   : > { %2026 = vst [vmem:[#allocation2 + $0x30] sm:$0xff] %v3872_v10 }
 0x25c   : > { %v3874_v55 = vpop.f32.mrf.mxu0 }
 0x25d   : > { %v3875_v60 = vadd.f32 %v3874_v55, %v3873_v19 }
 0x25e   : > { %v3876_v62 = vpop.f32.mrf.mxu0 }
 0x25f   : > { %2027 = vst [vmem:[#allocation2 + $0x48] sm:$0xff] %v3875_v60 }
 0x260   : > { %v3877_v30 = vpop.f32.mrf.mxu0 }
 0x261   : > { %v3878_v50 = vadd.f32 %v3877_v30, %v3876_v62 }
 0x262   : > { %v3879_v22 = vpop.f32.mrf.mxu0 }
 0x263   : > { %2028 = vst [vmem:[#allocation2 + $0x80] sm:$0xff] %v3878_v50 }
 0x264   : > { %v3880_v9 = vpop.f32.mrf.mxu0 }
 0x265   : > { %v3881_v2 = vadd.f32 %v3880_v9, %v3879_v22 }
 0x266   : > { %v3882_v40 = vpop.f32.mrf.mxu0 }
 0x267   : > { %2029 = vst [vmem:[#allocation2 + $0x88] sm:$0xff] %v3881_v2 }
 0x268   : > { %v3883_v13 = vpop.f32.mrf.mxu0 }
 0x269   : > { %v3884_v23 = vadd.f32 %v3883_v13, %v3882_v40 }
 0x26a   : > { %v3885_v18 = vpop.f32.mrf.mxu0 }
 0x26b   : > { %2030 = vst [vmem:[#allocation2 + $0xe8] sm:$0xff] %v3884_v23 }
 0x26c   : > { %v3886_v45 = vpop.f32.mrf.mxu0 }
 0x26d   : > { %v3887_v39 = vadd.f32 %v3886_v45, %v3885_v18 }
 0x26f   : > { %2031 = vst [vmem:[#allocation2 + $0xb8] sm:$0xff] %v3887_v39 }
 0x27b   : > { %v3888_v44 = vpop.f32.mrf.mxu0 }
 0x27d   : > { %v3889_v37 = vpop.f32.mrf.mxu0 }
 0x27e   : > { %v3890_v49 = vadd.f32 %v3889_v37, %v3888_v44 }
 0x27f   : > { %v3891_v29 = vpop.f32.mrf.mxu0 }
 0x280   : > { %2032 = vst [vmem:[#allocation2 + $0x60] sm:$0xff] %v3890_v49 }
 0x281   : > { %v3892_v8 = vpop.f32.mrf.mxu0 }
 0x282   : > { %v3893_v26 = vadd.f32 %v3892_v8, %v3891_v29 }
 0x283   : > { %v3894_v17 = vpop.f32.mrf.mxu0 }
 0x284   : > { %2033 = vst [vmem:[#allocation2 + $0xf0] sm:$0xff] %v3893_v26 }
 0x285   : > { %v3895_v3 = vpop.f32.mrf.mxu0 }
 0x286   : > { %v3896_v51 = vadd.f32 %v3895_v3, %v3894_v17 }
 0x287   : > { %v3897_v31 = vpop.f32.mrf.mxu0 }
 0x288   : > { %2034 = vst [vmem:[#allocation2 + $0x8] sm:$0xff] %v3896_v51 }
 0x289   : > { %v3898_v53 = vpop.f32.mrf.mxu0 }
 0x28a   : > { %v3899_v16 = vadd.f32 %v3898_v53, %v3897_v31 }
 0x28b   : > { %v3900_v33 = vpop.f32.mrf.mxu0 }
 0x28c   : > { %2035 = vst [vmem:[#allocation2 + $0x78] sm:$0xff] %v3899_v16 }
 0x28d   : > { %v3901_v47 = vpop.f32.mrf.mxu0 }
 0x28e   : > { %v3902_v43 = vadd.f32 %v3901_v47, %v3900_v33 }
 0x28f   : > { %v3903_v56 = vpop.f32.mrf.mxu0 }
 0x290   : > { %2036 = vst [vmem:[#allocation2 + $0x38] sm:$0xff] %v3902_v43 }
 0x291   : > { %v3904_v36 = vpop.f32.mrf.mxu0 }
 0x292   : > { %v3905_v59 = vadd.f32 %v3904_v36, %v3903_v56 }
 0x293   : > { %v3906_v25 = vpop.f32.mrf.mxu0 }
 0x294   : > { %2037 = vst [vmem:[#allocation2 + $0x58] sm:$0xff] %v3905_v59 }
 0x295   : > { %v3907_v7 = vpop.f32.mrf.mxu0 }
 0x296   : > { %v3908_v57 = vadd.f32 %v3907_v7, %v3906_v25 }
 0x297   : > { %v3909_v63 = vpop.f32.mrf.mxu0 }
 0x298   : > { %2038 = vst [vmem:[#allocation2 + $0x40] sm:$0xff] %v3908_v57 }
 0x299   : > { %v3910_v61 = vpop.f32.mrf.mxu0 }
 0x29a   : > { %v3911_v32 = vadd.f32 %v3910_v61, %v3909_v63 }
 0x29b   : > { %v3912_v46 = vpop.f32.mrf.mxu0 }
 0x29c   : > { %2039 = vst [vmem:[#allocation2 + $0xc8] sm:$0xff] %v3911_v32 }
 0x29d   : > { %v3913_v42 = vpop.f32.mrf.mxu0 }
 0x29e   : > { %v3914_v14 = vadd.f32 %v3913_v42, %v3912_v46 }
 0x29f   : > { %v3915_v58 = vpop.f32.mrf.mxu0 }
 0x2a0   : > { %2040 = vst [vmem:[#allocation2 + $0xe0] sm:$0xff] %v3914_v14 }
 0x2a1   : > { %v3916_v48 = vpop.f32.mrf.mxu0 }
 0x2a2   : > { %v3917_v4 = vadd.f32 %v3916_v48, %v3915_v58 }
 0x2a3   : > { %v3918_v21 = vpop.f32.mrf.mxu0 }
 0x2a4   : > { %2041 = vst [vmem:[#allocation2 + $0x90] sm:$0xff] %v3917_v4 }
 0x2a5   : > { %v3919_v52 = vpop.f32.mrf.mxu0 }
 0x2a6   : > { %v3920_v0 = vadd.f32 %v3919_v52, %v3918_v21 }
 0x2a7   : > { %v3921_v20 = vpop.f32.mrf.mxu0 }
 0x2a8   : > { %2042 = vst [vmem:[#allocation2 + $0x70] sm:$0xff] %v3920_v0 }
 0x2a9   : > { %v3922_v1 = vpop.f32.mrf.mxu0 }
 0x2aa   : > { %v3923_v15 = vadd.f32 %v3922_v1, %v3921_v20 }
 0x2ab   : > { %v3924_v38 = vpop.f32.mrf.mxu0 }
 0x2ac   : > { %2043 = vst [vmem:[#allocation2 + $0xc0] sm:$0xff] %v3923_v15 }
 0x2ad   : > { %v3925_v5 = vpop.f32.mrf.mxu0 }
 0x2ae   : > { %v3926_v12 = vadd.f32 %v3925_v5, %v3924_v38 }
 0x2af   : > { %v3927_v6 = vpop.f32.mrf.mxu0 }
 0x2b0   : > { %2044 = vst [vmem:[#allocation2 + $0xa8] sm:$0xff] %v3926_v12 }
 0x2b1   : > { %v3928_v54 = vpop.f32.mrf.mxu0 }
 0x2b2   : > { %v3929_v27 = vadd.f32 %v3928_v54, %v3927_v6 }
 0x2b3   : > { %v3930_v35 = vpop.f32.mrf.mxu0 }
 0x2b4   : > { %2045 = vst [vmem:[#allocation2 + $0xd0] sm:$0xff] %v3929_v27 }
 0x2b5   : > { %v3931_v11 = vpop.f32.mrf.mxu0 }
 0x2b6   : > { %v3932_v41 = vadd.f32 %v3931_v11, %v3930_v35 }
 0x2b7   : > { %v3933_v28 = vpop.f32.mrf.mxu0 }
 0x2b8   : > { %2046 = vst [vmem:[#allocation2 + $0x10] sm:$0xff] %v3932_v41 }
 0x2b9   : > { %v3934_v24 = vpop.f32.mrf.mxu0 }
 0x2ba   : > { %v3935_v34 = vadd.f32 %v3934_v24, %v3933_v28 }
 0x2bb   : > { %v3936_v10 = vpop.f32.mrf.mxu0 }
 0x2bc   : > { %2047 = vst [vmem:[#allocation2 + $0x28] sm:$0xff] %v3935_v34 }
 0x2bd   : > { %v3937_v19 = vpop.f32.mrf.mxu0 }
 0x2be   : > { %v3938_v55 = vadd.f32 %v3937_v19, %v3936_v10 }
 0x2bf   : > { %v3939_v60 = vpop.f32.mrf.mxu0 }
 0x2c0   : > { %2048 = vst [vmem:[#allocation2 + $0xa0] sm:$0xff] %v3938_v55 }
 0x2c1   : > { %v3940_v62 = vpop.f32.mrf.mxu0 }
 0x2c2   : > { %v3941_v30 = vadd.f32 %v3940_v62, %v3939_v60 }
 0x2c3   : > { %v3942_v50 = vpop.f32.mrf.mxu0 }
 0x2c4   : > { %2049 = vst [vmem:[#allocation2 + $0xf8] sm:$0xff] %v3941_v30 }
 0x2c5   : > { %v3943_v22 = vpop.f32.mrf.mxu0 }
 0x2c6   : > { %v3944_v9 = vadd.f32 %v3943_v22, %v3942_v50 }
 0x2c7   : > { %v3945_v2 = vpop.f32.mrf.mxu0 }
 0x2c8   : > { %2050 = vst [vmem:[#allocation2 + $0x20] sm:$0xff] %v3944_v9 }
 0x2c9   : > { %v3946_v40 = vpop.f32.mrf.mxu0 }
 0x2ca   : > { %v3947_v13 = vadd.f32 %v3946_v40, %v3945_v2 }
 0x2cc   : > { %2051 = vst [vmem:[#allocation2 + $0x98] sm:$0xff] %v3947_v13 }
 0x2cd PF: > { %s2054_s11 = sld [smem:[#allocation4 + %s5008_s0]] }
 0x2d3   : > { %p3753_p0 = scmp.le.s32.totalorder %s2054_s11, 0 }
 0x2d5   : > { %2058 = sbr.rel (%p3753_p0) target bundleno = 1277 (0x4fd), region = 60 }
 0x2da   : > { %v4592_v23 = vld [vmem:[%s5104_s16 + $0x38] sm:$0xff]   ;;  %v4593_v18 = vld [vmem:[%s5104_s16 + $0x30] sm:$0xff]   ;;  %v6378_v39 = vld [vmem:[#allocation13_spill] sm:$0xff]  ;;  %vm3170_vm0 = vcmask 64512  }
 0x2db   : > { %v6377_v45 = vld [vmem:[#allocation14_spill] sm:$0xff]  ;;  %v6380_v49 = vld [vmem:[#allocation29_spill] sm:$0xff]  ;;  %4020 = vmatprep.subr.bf16.mxu0 %v4592_v23  ;;  %4180 = vmatprep.subr.bf16.mxu1 %v4592_v23  ;;  %v4595_v26 = vld [vmem:[%s5104_s16 + $0x20] sm:$0xff]  }
 0x2dc   : > { %v5759_v44 = vcombine.low %v6378_v39, %v6377_v45  ;;  %v6379_v37 = vld [vmem:[#allocation30_spill] sm:$0xff]  ;;  %4021 = vmatpush3.bf16.msra.mxu0 %v4592_v23  ;;  %4188 = vmatpush3.bf16.msra.mxu1 %v4592_v23  ;;  %v4594_v8 = vld [vmem:[%s5104_s16 + $0x28] sm:$0xff]   ;;  %v4596_v17 = vld [vmem:[%s5104_s16 + $0x18] sm:$0xff]  }
 0x2dd   : > { %v5763_v29 = vcombine.low %v6380_v49, %v6379_v37  ;;  %4022 = vmatprep.subr.bf16.mxu0 %v4593_v18  ;;  %4181 = vmatprep.subr.bf16.mxu1 %v4593_v18  ;;  %v4597_v3 = vld [vmem:[%s5104_s16 + $0x10] sm:$0xff]   ;;  %v4598_v51 = vld [vmem:[%s5104_s16 + $0x8] sm:$0xff]   ;;  %v4599_v31 = vld [vmem:[%s5104_s16] sm:$0xff]  }
 0x2de   : > { %4036 = vmatprep.mubr.bf16.mxu0 %v5759_v44  ;;  %v4600_v53 = vld [vmem:[%s5115_s21 + $0x38] sm:$0xff]   ;;  %v6381_v16 = vld [vmem:[#allocation16_spill] sm:$0xff]  ;;  %v6385_v59 = vld [vmem:[#allocation18_spill] sm:$0xff] }
 0x2df   : > { %4052 = vmatprep.mubr.bf16.mxu1 %v5763_v29  ;;  %v6382_v33 = vld [vmem:[#allocation15_spill] sm:$0xff]  ;;  %v6383_v43 = vld [vmem:[#allocation32_spill] sm:$0xff]  ;;  %v6386_v25 = vld [vmem:[#allocation17_spill] sm:$0xff] }
 0x2e0   : > { %4023 = vmatpush3.bf16.msra.mxu0 %v4593_v18  ;;  %4189 = vmatpush3.bf16.msra.mxu1 %v4593_v18  ;;  %v3755_v47 = vcombine.low %v6382_v33, %v6381_v16  ;;  %v6384_v56 = vld [vmem:[#allocation31_spill] sm:$0xff]  ;;  %v3756_v7 = vcombine.low %v6386_v25, %v6385_v59  ;;  %v4601_v57 = vld [vmem:[%s5115_s21 + $0x30] sm:$0xff]   ;;  %v6388_v61 = vld [vmem:[#allocation33_spill] sm:$0xff] }
 0x2e1   : > { %4024 = vmatprep.subr.bf16.mxu0 %v4594_v8  ;;  %4182 = vmatprep.subr.bf16.mxu1 %v4594_v8  ;;  %v3763_v36 = vcombine.low %v6384_v56, %v6383_v43  ;;  %v6387_v63 = vld [vmem:[#allocation34_spill] sm:$0xff]  ;;  %v4602_v46 = vld [vmem:[%s5115_s21 + $0x28] sm:$0xff]   ;;  %v6389_v42 = vld [vmem:[#allocation20_spill] sm:$0xff] }
 0x2e2   : > { %v3764_v32 = vcombine.low %v6388_v61, %v6387_v63  ;;  %v6390_v14 = vld [vmem:[#allocation19_spill] sm:$0xff]  ;;  %v6391_v48 = vld [vmem:[#allocation36_spill] sm:$0xff]  ;;  %v6393_v52 = vld [vmem:[#allocation22_spill] sm:$0xff] }
 0x2e3   : > { %v3757_v58 = vcombine.low %v6390_v14, %v6389_v42  ;;  %v6392_v4 = vld [vmem:[#allocation35_spill] sm:$0xff]  ;;  %v6394_v0 = vld [vmem:[#allocation21_spill] sm:$0xff]  ;;  %v4603_v1 = vld [vmem:[%s5115_s21 + $0x20] sm:$0xff]  }
 0x2e4   : > { %4025 = vmatpush3.bf16.msra.mxu0 %v4594_v8  ;;  %4190 = vmatpush3.bf16.msra.mxu1 %v4594_v8  ;;  %v3765_v21 = vcombine.low %v6392_v4, %v6391_v48  ;;  %v3758_v20 = vcombine.low %v6394_v0, %v6393_v52  ;;  %v6395_v15 = vld [vmem:[#allocation38_spill] sm:$0xff]  ;;  %v6396_v38 = vld [vmem:[#allocation37_spill] sm:$0xff]  ;;  %v4604_v12 = vld [vmem:[%s5115_s21 + $0x18] sm:$0xff]   ;;  %v3134_v8 = vlaneseq }
 0x2e5   : > { %4026 = vmatprep.subr.bf16.mxu0 %v4595_v26  ;;  %4183 = vmatprep.subr.bf16.mxu1 %v4595_v26  ;;  %v3766_v5 = vcombine.low %v6396_v38, %v6395_v15  ;;  %v6397_v6 = vld [vmem:[#allocation24_spill] sm:$0xff]  ;;  %v6398_v54 = vld [vmem:[#allocation23_spill] sm:$0xff]  ;;  %v6401_v28 = vld [vmem:[#allocation26_spill] sm:$0xff] }
 0x2e6   : > { %v3759_v27 = vcombine.low %v6398_v54, %v6397_v6  ;;  %v6399_v35 = vld [vmem:[#allocation40_spill] sm:$0xff]  ;;  %v6400_v11 = vld [vmem:[#allocation39_spill] sm:$0xff]  ;;  %v6402_v24 = vld [vmem:[#allocation25_spill] sm:$0xff] }
 0x2e7   : > { %v3767_v41 = vcombine.low %v6400_v11, %v6399_v35  ;;  %v3760_v34 = vcombine.low %v6402_v24, %v6401_v28  ;;  %v4605_v10 = vld [vmem:[%s5115_s21 + $0x10] sm:$0xff]   ;;  %v6404_v55 = vld [vmem:[#allocation41_spill] sm:$0xff]  ;;  %v6405_v30 = vld [vmem:[#allocation28_spill] sm:$0xff] }
 0x2e8   : > { %4027 = vmatpush3.bf16.msra.mxu0 %v4595_v26  ;;  %4191 = vmatpush3.bf16.msra.mxu1 %v4595_v26  ;;  %v6403_v19 = vld [vmem:[#allocation42_spill] sm:$0xff]  ;;  %v4606_v62 = vld [vmem:[%s5115_s21 + $0x8] sm:$0xff]   ;;  %v6406_v50 = vld [vmem:[#allocation27_spill] sm:$0xff]  ;;  %v3135_v26 = vand.u32 127, %v3134_v8 }
 0x2e9   : > { %4028 = vmatprep.subr.bf16.mxu0 %v4596_v17  ;;  %4184 = vmatprep.subr.bf16.mxu1 %v4596_v17  ;;  %v3768_v60 = vcombine.low %v6404_v55, %v6403_v19  ;;  %v3761_v22 = vcombine.low %v6406_v50, %v6405_v30  ;;  %v6407_v9 = vld [vmem:[#allocation44_spill] sm:$0xff]  ;;  %v6408_v2 = vld [vmem:[#allocation43_spill] sm:$0xff]  ;;  %v4609_v18 = vld [vmem:[%s5136_s15 + $0x30] sm:$0xff]  }
 0x2ea   : > { %v3769_v40 = vcombine.low %v6408_v2, %v6407_v9  ;;  %v4607_v13 = vld [vmem:[%s5115_s21] sm:$0xff]   ;;  %v4608_v23 = vld [vmem:[%s5136_s15 + $0x38] sm:$0xff]   ;;  %v4610_v45 = vld [vmem:[%s5136_s15 + $0x28] sm:$0xff]  }
 0x2eb   : > { %v4611_v39 = vld [vmem:[%s5136_s15 + $0x20] sm:$0xff]   ;;  %v4613_v37 = vld [vmem:[%s5136_s15 + $0x10] sm:$0xff]   ;;  %v4614_v49 = vld [vmem:[%s5136_s15 + $0x8] sm:$0xff]  }
 0x2ec   : > { %4029 = vmatpush3.bf16.msra.mxu0 %v4596_v17  ;;  %4192 = vmatpush3.bf16.msra.mxu1 %v4596_v17  ;;  %v3102_v17 = vld [vmem:[%s5018_s19] sm:$0xff]  ;;  %v3105_v59 = vld [vmem:[%s5018_s19 + $0x18] sm:$0xff]  ;;  %v3115_v30 = vld [vmem:[%s5018_s19 + $0x68] sm:$0xff] }
 0x2ed   : > { %4030 = vmatprep.subr.bf16.mxu0 %v4597_v3  ;;  %4185 = vmatprep.subr.bf16.mxu1 %v4597_v3  ;;  %v3106_v25 = vld [vmem:[%s5018_s19 + $0x20] sm:$0xff] }
 0x2ee   : > { %v3110_v48 = vld [vmem:[%s5018_s19 + $0x40] sm:$0xff] }
 0x2ef   : > { %v3114_v11 = vld [vmem:[%s5018_s19 + $0x60] sm:$0xff] }
 0x2f0   : > { %4031 = vmatpush3.bf16.msra.mxu0 %v4597_v3  ;;  %4193 = vmatpush3.bf16.msra.mxu1 %v4597_v3  ;;  %v3136_v3 = vstv %s4846_s24  ;;  %v3118_v8 = vld [vmem:[%s5018_s19 + $0x80] sm:$0xff] }
 0x2f1   : > { %4032 = vmatprep.subr.bf16.mxu0 %v4598_v51  ;;  %4186 = vmatprep.subr.bf16.mxu1 %v4598_v51  ;;  %vm5821_vm1 = vcmp.eq.s32.totalorder %v3135_v26, %v3136_v3 }
 0x2f2   : > { %v3138_v16 = vsel %vm5821_vm1, %v3102_v17, 0.0  ;;  %v3142_v63 = vsel %vm5821_vm1, %v3106_v25, 0.0  ;;  %v3146_v0 = vsel %vm5821_vm1, %v3110_v48, 0.0 }
 0x2f3   : > { %v3171_v43 = vsel %vm3170_vm0, %v3138_v16, 0.0  ;;  %v3183_v42 = vsel %vm3170_vm0, %v3142_v63, 0.0  ;;  %v3195_v38 = vsel %vm3170_vm0, %v3146_v0, 0.0  ;;  %v3121_v0 = vld [vmem:[%s5018_s19 + $0x98] sm:$0xff] }
 0x2f4   : > { %4033 = vmatpush3.bf16.msra.mxu0 %v4598_v51  ;;  %4194 = vmatpush3.bf16.msra.mxu1 %v4598_v51 }
 0x2f5   : > { %4034 = vmatprep.subr.bf16.mxu0 %v4599_v31  ;;  %4187 = vmatprep.subr.bf16.mxu1 %v4599_v31 }
 0x2f6   : > { %3172 = vadd.xlane.f32.xlu0 %v3171_v43 }
 0x2f8   : > { %4035 = vmatpush3.bf16.msra.mxu0 %v4599_v31  ;;  %4195 = vmatpush3.bf16.msra.mxu1 %v4599_v31  ;;  %v3104_v31 = vld [vmem:[%s5018_s19 + $0x10] sm:$0xff] }
 0x2f9   : > { %4068 = vmatprep.subr.bf16.mxu1 %v4600_v53  ;;  %4116 = vmatprep.subr.bf16.mxu0 %v4608_v23  ;;  %v3140_v33 = vsel %vm5821_vm1, %v3104_v31, 0.0 }
 0x2fa   : > { %v3177_v56 = vsel %vm3170_vm0, %v3140_v33, 0.0 }
 0x2fb   : > { %4037 = vmatmul.mubr.bf16.vlgmr.msra.gmra.mxu0 %v3755_v47  ;;  %4053 = vmatmul.mubr.bf16.vlgmr.msra.gmra.mxu1 %v3763_v36 }
 0x2fc   : > { %4069 = vmatpush3.bf16.msra.mxu1 %v4600_v53  ;;  %4040 = vmatprep.mubr.bf16.mxu0 %v3756_v7  ;;  %v3103_v53 = vld [vmem:[%s5018_s19 + $0x8] sm:$0xff] }
 0x2fd   : > { %4070 = vmatprep.subr.bf16.mxu1 %v4601_v57  ;;  %4056 = vmatprep.mubr.bf16.mxu1 %v3764_v32 }
 0x2fe   : > { %4117 = vmatpush3.bf16.msra.mxu0 %v4608_v23  ;;  %3178 = vadd.xlane.f32.xlu1 %v3177_v56 }
 0x2ff   : > { %4118 = vmatprep.subr.bf16.mxu0 %v4609_v18 }
 0x300   : > { %4071 = vmatpush3.bf16.msra.mxu1 %v4601_v57  ;;  %v3141_v57 = vsel %vm5821_vm1, %v3105_v59, 0.0  ;;  %v3119_v59 = vld [vmem:[%s5018_s19 + $0x88] sm:$0xff] }
 0x301   : > { %4072 = vmatprep.subr.bf16.mxu1 %v4602_v46 }
 0x302   : > { %4119 = vmatpush3.bf16.msra.mxu0 %v4609_v18  ;;  %v3151_v18 = vsel %vm5821_vm1, %v3115_v30, 0.0  ;;  %v3124_v30 = vld [vmem:[%s5018_s19 + $0xb0] sm:$0xff] }
 0x303   : > { %4041 = vmatmul.mubr.bf16.gmra.mxu0 %v3757_v58  ;;  %4057 = vmatmul.mubr.bf16.gmra.mxu1 %v3765_v21  ;;  %v3210_v31 = vsel %vm3170_vm0, %v3151_v18, 0.0 }
 0x304   : > { %4073 = vmatpush3.bf16.msra.mxu1 %v4602_v46  ;;  %4044 = vmatprep.mubr.bf16.mxu0 %v3758_v20  ;;  %v3180_v46 = vsel %vm3170_vm0, %v3141_v57, 0.0 }
 0x305   : > { %4074 = vmatprep.subr.bf16.mxu1 %v4603_v1  ;;  %4060 = vmatprep.mubr.bf16.mxu1 %v3766_v5 }
 0x306   : > { %4120 = vmatprep.subr.bf16.mxu0 %v4610_v45  ;;  %3181 = vadd.xlane.f32.xlu1 %v3180_v46 }
 0x307   : > { %4121 = vmatpush3.bf16.msra.mxu0 %v4610_v45 }
 0x308   : > { %4075 = vmatpush3.bf16.msra.mxu1 %v4603_v1  ;;  %4122 = vmatprep.subr.bf16.mxu0 %v4611_v39  ;;  %v3112_v1 = vld [vmem:[%s5018_s19 + $0x50] sm:$0xff] }
 0x309   : > { %4076 = vmatprep.subr.bf16.mxu1 %v4604_v12  ;;  %v3148_v54 = vsel %vm5821_vm1, %v3112_v1, 0.0 }
 0x30b   : > { %4045 = vmatmul.mubr.bf16.gmra.mxu0 %v3759_v27  ;;  %4061 = vmatmul.mubr.bf16.gmra.mxu1 %v3767_v41 }
 0x30c   : > { %4077 = vmatpush3.bf16.msra.mxu1 %v4604_v12  ;;  %4048 = vmatprep.mubr.bf16.mxu0 %v3760_v34 }
 0x30d   : > { %4078 = vmatprep.subr.bf16.mxu1 %v4605_v10  ;;  %4064 = vmatprep.mubr.bf16.mxu1 %v3768_v60 }
 0x30e   : > { %4123 = vmatpush3.bf16.msra.mxu0 %v4611_v39 }
 0x310   : > { %4079 = vmatpush3.bf16.msra.mxu1 %v4605_v10  ;;  %v3201_v10 = vsel %vm3170_vm0, %v3148_v54, 0.0 }
 0x311   : > { %4080 = vmatprep.subr.bf16.mxu1 %v4606_v62 }
 0x313   : > { %4049 = vmatmul.mubr.bf16.gmra.mxu0 %v3761_v22  ;;  %4065 = vmatmul.mubr.bf16.gmra.mxu1 %v3769_v40 }
 0x314   : > { %4081 = vmatpush3.bf16.msra.mxu1 %v4606_v62  ;;  %4084 = vmatprep.mubr.bf16.mxu1 %v5759_v44  ;;  %v4612_v44 = vld [vmem:[%s5136_s15 + $0x18] sm:$0xff]   ;;  %v3150_v62 = vsel %vm5821_vm1, %v3114_v11, 0.0  ;;  %v3157_v11 = vsel %vm5821_vm1, %v3121_v0, 0.0 }
 0x315   : > { %4082 = vmatprep.subr.bf16.mxu1 %v4607_v13  ;;  %4124 = vmatprep.subr.bf16.mxu0 %v4612_v44  ;;  %v3207_v23 = vsel %vm3170_vm0, %v3150_v62, 0.0 }
 0x316   : > { %4125 = vmatpush3.bf16.msra.mxu0 %v4612_v44 }
 0x317   : > { %4126 = vmatprep.subr.bf16.mxu0 %v4613_v37 }
 0x318   : > { %4083 = vmatpush3.bf16.msra.mxu1 %v4607_v13 }
 0x31a   : > { %4127 = vmatpush3.bf16.msra.mxu0 %v4613_v37 }
 0x31b   : > { %4085 = vmatmul.mubr.bf16.vlgmr.msra.gmra.mxu1 %v3755_v47  ;;  %4128 = vmatprep.subr.bf16.mxu0 %v4614_v49  ;;  %v3139_v47 = vsel %vm5821_vm1, %v3103_v53, 0.0 }
 0x31c   : > { %4088 = vmatprep.mubr.bf16.mxu1 %v3756_v7  ;;  %v3107_v7 = vld [vmem:[%s5018_s19 + $0x28] sm:$0xff] }
 0x31d   : > { %v3143_v61 = vsel %vm5821_vm1, %v3107_v7, 0.0  ;;  %v3120_v7 = vld [vmem:[%s5018_s19 + $0x90] sm:$0xff] }
 0x31e   : > { %4129 = vmatpush3.bf16.msra.mxu0 %v4614_v49  ;;  %v3186_v4 = vsel %vm3170_vm0, %v3143_v61, 0.0  ;;  %v3117_v49 = vld [vmem:[%s5018_s19 + $0x78] sm:$0xff] }
 0x31f   : > { %3187 = vadd.xlane.f32.xlu1 %v3186_v4  ;;  %v3153_v33 = vsel %vm5821_vm1, %v3117_v49, 0.0 }
 0x323   : > { %4089 = vmatmul.mubr.bf16.gmra.mxu1 %v3757_v58  ;;  %v3109_v58 = vld [vmem:[%s5018_s19 + $0x38] sm:$0xff] }
 0x324   : > { %4092 = vmatprep.mubr.bf16.mxu1 %v3758_v20  ;;  %v3145_v52 = vsel %vm5821_vm1, %v3109_v58, 0.0  ;;  %v3111_v20 = vld [vmem:[%s5018_s19 + $0x48] sm:$0xff] }
 0x325   : > { %v3192_v15 = vsel %vm3170_vm0, %v3145_v52, 0.0  ;;  %v3156_v52 = vsel %vm5821_vm1, %v3120_v7, 0.0 }
 0x326   : > { %3193 = vadd.xlane.f32.xlu1 %v3192_v15 }
 0x32b   : > { %4093 = vmatmul.mubr.bf16.gmra.mxu1 %v3759_v27  ;;  %v3113_v27 = vld [vmem:[%s5018_s19 + $0x58] sm:$0xff] }
 0x32c   : > { %4096 = vmatprep.mubr.bf16.mxu1 %v3760_v34  ;;  %v3149_v19 = vsel %vm5821_vm1, %v3113_v27, 0.0 }
 0x333   : > { %4097 = vmatmul.mubr.bf16.gmra.mxu1 %v3761_v22  ;;  %v3116_v22 = vld [vmem:[%s5018_s19 + $0x70] sm:$0xff] }
 0x334   : > { %4100 = vmatprep.mubr.bf16.mxu1 %v5763_v29  ;;  %v4615_v29 = vld [vmem:[%s5136_s15] sm:$0xff]   ;;  %v3152_v37 = vsel %vm5821_vm1, %v3116_v22, 0.0 }
 0x335   : > { %4130 = vmatprep.subr.bf16.mxu0 %v4615_v29  ;;  %v3213_v16 = vsel %vm3170_vm0, %v3152_v37, 0.0 }
 0x336   : > { %4131 = vmatpush3.bf16.msra.mxu0 %v4615_v29 }
 0x33b   : > { %4101 = vmatmul.mubr.bf16.gmra.mxu1 %v3763_v36  ;;  %v3174_v36 = vsel %vm3170_vm0, %v3139_v47, 0.0 }
 0x33c   : > { %4104 = vmatprep.mubr.bf16.mxu1 %v3764_v32  ;;  %3175 = vadd.xlane.f32.xlu0 %v3174_v36  ;;  %v3108_v32 = vld [vmem:[%s5018_s19 + $0x30] sm:$0xff]  ;;  %v3154_v36 = vsel %vm5821_vm1, %v3118_v8, 0.0 }
 0x33d   : > { %v3144_v14 = vsel %vm5821_vm1, %v3108_v32, 0.0  ;;  %v3216_v32 = vsel %vm3170_vm0, %v3153_v33, 0.0  ;;  %v3126_v33 = vld [vmem:[%s5018_s19 + $0xc0] sm:$0xff] }
 0x33e   : > { %v3162_v0 = vsel %vm5821_vm1, %v3126_v33, 0.0 }
 0x340   : > { %3184 = vadd.xlane.f32.xlu0 %v3183_v42  ;;  %v3219_v42 = vsel %vm3170_vm0, %v3154_v36, 0.0 }
 0x343   : > { %4105 = vmatmul.mubr.bf16.gmra.mxu1 %v3765_v21  ;;  %v3189_v21 = vsel %vm3170_vm0, %v3144_v14, 0.0  ;;  %v3155_v14 = vsel %vm5821_vm1, %v3119_v59, 0.0 }
 0x344   : > { %4108 = vmatprep.mubr.bf16.mxu1 %v3766_v5  ;;  %3190 = vadd.xlane.f32.xlu0 %v3189_v21  ;;  %v3147_v5 = vsel %vm5821_vm1, %v3111_v20, 0.0  ;;  %v3122_v20 = vld [vmem:[%s5018_s19 + $0xa0] sm:$0xff]  ;;  %v3222_v54 = vsel %vm3170_vm0, %v3155_v14, 0.0  ;;  %v3127_v14 = vld [vmem:[%s5018_s19 + $0xc8] sm:$0xff] }
 0x345   : > { %v3198_v24 = vsel %vm3170_vm0, %v3147_v5, 0.0 }
 0x346   : > { %3199 = vadd.xlane.f32.xlu1 %v3198_v24  ;;  %v3123_v24 = vld [vmem:[%s5018_s19 + $0xa8] sm:$0xff] }
 0x347   : > { %v3159_v18 = vsel %vm5821_vm1, %v3123_v24, 0.0 }
 0x348   : > { %3196 = vadd.xlane.f32.xlu0 %v3195_v38  ;;  %v3234_v7 = vsel %vm3170_vm0, %v3159_v18, 0.0 }
 0x34b   : > { %4109 = vmatmul.mubr.bf16.gmra.mxu1 %v3767_v41 }
 0x34c   : > { %4112 = vmatprep.mubr.bf16.mxu1 %v3768_v60  ;;  %3202 = vadd.xlane.f32.xlu0 %v3201_v10 }
 0x350   : > { %3208 = vadd.xlane.f32.xlu0 %v3207_v23  ;;  %v3228_v23 = vsel %vm3170_vm0, %v3157_v11, 0.0 }
 0x353   : > { %4113 = vmatmul.mubr.bf16.gmra.mxu1 %v3769_v40  ;;  %v3204_v40 = vsel %vm3170_vm0, %v3149_v19, 0.0  ;;  %v3158_v19 = vsel %vm5821_vm1, %v3122_v20, 0.0 }
 0x354   : > { %3205 = vadd.xlane.f32.xlu1 %v3204_v40  ;;  %3214 = vadd.xlane.f32.xlu0 %v3213_v16  ;;  %v3231_v49 = vsel %vm3170_vm0, %v3158_v19, 0.0  ;;  %v3163_v19 = vsel %vm5821_vm1, %v3127_v14, 0.0 }
 0x358   : > { %3211 = vadd.xlane.f32.xlu1 %v3210_v31  ;;  %3220 = vadd.xlane.f32.xlu0 %v3219_v42  ;;  %v3160_v31 = vsel %vm5821_vm1, %v3124_v30, 0.0 }
 0x35c   : > { %3217 = vadd.xlane.f32.xlu1 %v3216_v32 }
 0x360   : > { %3223 = vadd.xlane.f32.xlu1 %v3222_v54  ;;  %v3129_v54 = vld [vmem:[%s5018_s19 + $0xd8] sm:$0xff] }
 0x364   : > { %3229 = vadd.xlane.f32.xlu1 %v3228_v23 }
 0x368   : > { %3235 = vadd.xlane.f32.xlu1 %v3234_v7 }
 0x3bb   : > { %v5864_v12 = vpop.f32.mrf.mxu0  ;;  %v5866_v6 = vpop.f32.mrf.mxu1 }
 0x3bc   : > { %v3788_v35 = vmul.f32 -1.442695, %v5864_v12  ;;  %v3804_v45 = vmul.f32 -1.442695, %v5866_v6 }
 0x3bd   : > { %v5873_v41 = vpop.f32.mrf.mxu0  ;;  %v5875_v28 = vpop.f32.mrf.mxu1 }
 0x3be   : > { %4616 = vpow2.f32 %v3788_v35  ;;  %v3786_v34 = vmul.f32 -1.442695, %v5873_v41  ;;  %v3802_v26 = vmul.f32 -1.442695, %v5875_v28  ;;  %v3225_v35 = vsel %vm3170_vm0, %v3156_v52, 0.0 }
 0x3bf   : > { %v5882_v55 = vpop.f32.mrf.mxu0  ;;  %v5884_v60 = vpop.f32.mrf.mxu1  ;;  %3226 = vadd.xlane.f32.xlu0 %v3225_v35 }
 0x3c0   : > { %4618 = vpow2.f32 %v3786_v34  ;;  %v3789_v50 = vmul.f32 -1.442695, %v5882_v55  ;;  %v3805_v47 = vmul.f32 -1.442695, %v5884_v60 }
 0x3c1   : > { %v5891_v9 = vpop.f32.mrf.mxu0  ;;  %v5893_v2 = vpop.f32.mrf.mxu1 }
 0x3c2   : > { %4620 = vpow2.f32 %v3789_v50  ;;  %v3787_v13 = vmul.f32 -1.442695, %v5891_v9  ;;  %v3803_v57 = vmul.f32 -1.442695, %v5893_v2 }
 0x3c3   : > { %v5901_v39 = vpop.f32.mrf.mxu0  ;;  %v5903_v44 = vpop.f32.mrf.mxu1  ;;  %3232 = vadd.xlane.f32.xlu0 %v3231_v49 }
 0x3c4   : > { %4622 = vpow2.f32 %v3787_v13  ;;  %v3792_v29 = vmul.f32 -1.442695, %v5901_v39  ;;  %v3808_v48 = vmul.f32 -1.442695, %v5903_v44 }
 0x3c5   : > { %v5911_v17 = vpop.f32.mrf.mxu0  ;;  %v5913_v3 = vpop.f32.mrf.mxu1 }
 0x3c6   : > { %4624 = vpow2.f32 %v3792_v29  ;;  %v3790_v53 = vmul.f32 -1.442695, %v5911_v17  ;;  %v3806_v22 = vmul.f32 -1.442695, %v5913_v3 }
 0x3c7   : > { %4626 = vpow2.f32 %v3804_v45  ;;  %v5921_v43 = vpop.f32.mrf.mxu0  ;;  %v5923_v56 = vpop.f32.mrf.mxu1 }
 0x3c8   : > { %4628 = vpow2.f32 %v3790_v53  ;;  %v3793_v25 = vmul.f32 -1.442695, %v5921_v43  ;;  %v3809_v37 = vmul.f32 -1.442695, %v5923_v56  ;;  %v3125_v53 = vld [vmem:[%s5018_s19 + $0xb8] sm:$0xff] }
 0x3c9   : > { %4630 = vpow2.f32 %v3802_v26  ;;  %v5931_v63 = vpop.f32.mrf.mxu0  ;;  %v5933_v61 = vpop.f32.mrf.mxu1  ;;  %v3161_v42 = vsel %vm5821_vm1, %v3125_v53, 0.0 }
 0x3ca   : > { %4632 = vpow2.f32 %v3793_v25  ;;  %v3791_v46 = vmul.f32 -1.442695, %v5931_v63  ;;  %v3807_v8 = vmul.f32 -1.442695, %v5933_v61 }
 0x3cb   : > { %v4617_v58 = vpop.eup %4616  ;;  %4634 = vpow2.f32 %v3805_v47  ;;  %v5941_v4 = vpop.f32.mrf.mxu0 }
 0x3cc   : > { %v5943_v21 = vpop.f32.mrf.mxu1  ;;  %4636 = vpow2.f32 %v3791_v46  ;;  %v2703_v15 = vadd.f32 1.0, %v4617_v58  ;;  %v3237_v46 = vsel %vm3170_vm0, %v3160_v31, 0.0  ;;  %v3131_v31 = vld [vmem:[%s5018_s19 + $0xe8] sm:$0xff] }
 0x3cd   : > { %v4619_v1 = vpop.eup %4618  ;;  %4638 = vpow2.f32 %v3803_v57  ;;  %v5949_v38 = vpop.f32.mrf.mxu0  ;;  %3238 = vadd.xlane.f32.xlu0 %v3237_v46 }
 0x3ce   : > { %v5951_v5 = vpop.f32.mrf.mxu1  ;;  %v2701_v27 = vadd.f32 1.0, %v4619_v1  ;;  %4640 = vpow2.f32 %v3808_v48 }
 0x3cf   : > { %v4621_v34 = vpop.eup %4620  ;;  %v5964_v40 = vpop.f32.mrf.mxu0 }
 0x3d0   : > { %v5958_v10 = vpop.f32.mrf.mxu1  ;;  %4642 = vrcp.f32 %v2701_v27  ;;  %v2704_v62 = vadd.f32 1.0, %v4621_v34  ;;  %v3240_v34 = vsel %vm3170_vm0, %v3161_v42, 0.0  ;;  %v3132_v42 = vld [vmem:[%s5018_s19 + $0xf0] sm:$0xff] }
 0x3d1   : > { %v4623_v50 = vpop.eup %4622  ;;  %4644 = vrcp.f32 %v2703_v15  ;;  %v5980_v59 = vpop.f32.mrf.mxu0  ;;  %v3128_v15 = vld [vmem:[%s5018_s19 + $0xd0] sm:$0xff]  ;;  %3241 = vadd.xlane.f32.xlu1 %v3240_v34  ;;  %v3812_v34 = vmul.f32 -1.442695, %v5943_v21 }
 0x3d2   : > { %v5966_v13 = vpop.f32.mrf.mxu1  ;;  %4646 = vrcp.f32 %v2704_v62  ;;  %v2702_v45 = vadd.f32 1.0, %v4623_v50  ;;  %v3796_v50 = vmul.f32 -1.442695, %v5941_v4 }
 0x3d3   : > { %v4625_v29 = vpop.eup %4624  ;;  %v5995_v11 = vpop.f32.mrf.mxu0 }
 0x3d4   : > { %v5974_v26 = vpop.f32.mrf.mxu1  ;;  %v4627_v16 = vpop.eup %4626  ;;  %4648 = vrcp.f32 %v2702_v45  ;;  %v2707_v36 = vadd.f32 1.0, %v4625_v29  ;;  %v3164_v45 = vsel %vm5821_vm1, %v3128_v15, 0.0  ;;  %v3794_v29 = vmul.f32 -1.442695, %v5949_v38 }
 0x3d5   : > { %v4629_v47 = vpop.eup %4628  ;;  %4650 = vpow2.f32 %v3806_v22  ;;  %v2719_v48 = vadd.f32 1.0, %v4627_v16  ;;  %v3243_v22 = vsel %vm3170_vm0, %v3162_v0, 0.0  ;;  %v6013_v33 = vpop.f32.mrf.mxu0 }
 0x3d6   : > { %v5982_v25 = vpop.f32.mrf.mxu1  ;;  %v4631_v57 = vpop.eup %4630  ;;  %v2705_v32 = vadd.f32 1.0, %v4629_v47  ;;  %4652 = vpow2.f32 %v3809_v37  ;;  %v3165_v37 = vsel %vm5821_vm1, %v3129_v54, 0.0  ;;  %3244 = vadd.xlane.f32.xlu0 %v3243_v22  ;;  %v3795_v54 = vmul.f32 -1.442695, %v5980_v59 }
 0x3d7   : > { %v4633_v58 = vpop.eup %4632  ;;  %4654 = vpow2.f32 %v3807_v8  ;;  %v2717_v35 = vadd.f32 1.0, %v4631_v57  ;;  %v3130_v8 = vld [vmem:[%s5018_s19 + $0xe0] sm:$0xff]  ;;  %v3797_v57 = vmul.f32 -1.442695, %v5964_v40  ;;  %v3252_v46 = vsel %vm3170_vm0, %v3165_v37, 0.0 }
 0x3d8   : > { %v5989_v52 = vpop.f32.mrf.mxu1  ;;  %v4635_v20 = vpop.eup %4634  ;;  %4656 = vrcp.f32 %v2705_v32  ;;  %v2708_v1 = vadd.f32 1.0, %v4633_v58  ;;  %v3249_v32 = vsel %vm3170_vm0, %v3164_v45, 0.0  ;;  %v3166_v0 = vsel %vm5821_vm1, %v3130_v8, 0.0 }
 0x3d9   : > { %v4637_v27 = vpop.eup %4636  ;;  %4658 = vrcp.f32 %v2707_v36  ;;  %v2720_v23 = vadd.f32 1.0, %v4635_v20  ;;  %v3246_v36 = vsel %vm3170_vm0, %v3163_v19, 0.0  ;;  %v3167_v20 = vsel %vm5821_vm1, %v3131_v31, 0.0  ;;  %v6029_v19 = vpop.f32.mrf.mxu0 }
 0x3da   : > { %v5997_v24 = vpop.f32.mrf.mxu1  ;;  %v4639_v62 = vpop.eup %4638  ;;  %4660 = vrcp.f32 %v2708_v1  ;;  %v2706_v30 = vadd.f32 1.0, %v4637_v27  ;;  %3247 = vadd.xlane.f32.xlu1 %v3246_v36  ;;  %3250 = vadd.xlane.f32.xlu0 %v3249_v32  ;;  %v3813_v36 = vmul.f32 -1.442695, %v5958_v10 }
 0x3db   : > { %4662 = vrcp.f32 %v2719_v48  ;;  %v4641_v49 = vpop.eup %4640  ;;  %v2718_v16 = vadd.f32 1.0, %v4639_v62 }
 0x3dc   : > { %v6004_v18 = vpop.f32.mrf.mxu1  ;;  %4664 = vrcp.f32 %v2706_v30  ;;  %v2723_v58 = vadd.f32 1.0, %v4641_v49  ;;  %v3258_v49 = vsel %vm3170_vm0, %v3167_v20, 0.0 }
 0x3dd   : > { %v4643_v53 = vpop.eup %4642  ;;  %4666 = vrcp.f32 %v2717_v35 }
 0x3de   : > { %v2478_v47 = vpop.f32.mrf.mxu1  ;;  %v4645_v7 = vpop.eup %4644  ;;  %4668 = vpow2.f32 %v3796_v50  ;;  %v2797_v1 = vmul.f32 %v4643_v53, %v5873_v41  ;;  %v3168_v41 = vsel %vm5821_vm1, %v3132_v42, 0.0  ;;  %v3800_v50 = vmul.f32 -1.442695, %v5995_v11  ;;  %3253 = vadd.xlane.f32.xlu1 %v3252_v46 }
 0x3df   : > { %v4647_v14 = vpop.eup %4646  ;;  %4670 = vrcp.f32 %v2720_v23  ;;  %v2799_v35 = vmul.f32 %v4645_v7, %v5864_v12  ;;  %v3255_v12 = vsel %vm3170_vm0, %v3166_v0, 0.0  ;;  %v3810_v23 = vmul.f32 -1.442695, %v5951_v5  ;;  %v6047_v7 = vpop.f32.mrf.mxu0 }
 0x3e0   : > { %v4087_v48 = vpop.f32.mrf.mxu1  ;;  %v2800_v15 = vmul.f32 %v4647_v14, %v5882_v55  ;;  %4672 = vpow2.f32 %v3794_v29  ;;  %v3133_v29 = vld [vmem:[%s5018_s19 + $0xf8] sm:$0xff]  ;;  %v2829_v31 = vmul.f32 %v2797_v1, %v2478_v47  ;;  %3256 = vadd.xlane.f32.xlu0 %v3255_v12  ;;  %v3261_v42 = vsel %vm3170_vm0, %v3168_v41, 0.0 }
 0x3e1   : > { %v4649_v27 = vpop.eup %4648  ;;  %4674 = vrcp.f32 %v2718_v16  ;;  %v3169_v47 = vsel %vm5821_vm1, %v3133_v29, 0.0  ;;  %v3811_v0 = vmul.f32 -1.442695, %v5966_v13  ;;  %v3817_v12 = vmul.f32 -1.442695, %v5989_v52 }
 0x3e2   : > { %v2481_v62 = vpop.f32.mrf.mxu1  ;;  %v6033_v30 = vpop.eup %4650  ;;  %v2798_v55 = vmul.f32 %v4649_v27, %v5891_v9  ;;  %4676 = vpow2.f32 %v3797_v57  ;;  %v2832_v45 = vmul.f32 %v4087_v48, %v2800_v15  ;;  %v3798_v9 = vmul.f32 -1.442695, %v6013_v33  ;;  %3259 = vadd.xlane.f32.xlu1 %v3258_v49 }
 0x3e3   : > { %v6038_v22 = vpop.eup %4652  ;;  %4678 = vrcp.f32 %v2723_v58  ;;  %v2831_v57 = vmul.f32 %v6004_v18, %v2799_v35  ;;  %v3801_v58 = vmul.f32 -1.442695, %v6029_v19  ;;  %v3799_v27 = vmul.f32 -1.442695, %v6047_v7 }
 0x3e4   : > { %v4090_v37 = vpop.f32.mrf.mxu1  ;;  %v6043_v8 = vpop.eup %4654  ;;  %4680 = vpow2.f32 %v3795_v54  ;;  %v2830_v53 = vmul.f32 %v2798_v55, %v2481_v62  ;;  %3262 = vadd.xlane.f32.xlu0 %v3261_v42  ;;  %v3264_v41 = vsel %vm3170_vm0, %v3169_v47, 0.0 }
 0x3e5   : > { %v4657_v16 = vpop.eup %4656  ;;  %4682 = vpow2.f32 %v3812_v34  ;;  %v2862_v20 = vpack.c.bf16 %v2832_v45, %v2831_v57  ;;  %v3816_v34 = vmul.f32 -1.442695, %v5974_v26 }
 0x3e6   : > { %v2494_v32 = vpop.f32.mrf.mxu1  ;;  %v4659_v14 = vpop.eup %4658  ;;  %4684 = vpow2.f32 %v3800_v50  ;;  %v2861_v48 = vpack.c.bf16 %v2830_v53, %v2829_v31  ;;  %v2801_v18 = vmul.f32 %v4657_v16, %v5911_v17  ;;  %3265 = vadd.xlane.f32.xlu1 %v3264_v41 }
 0x3e7   : > { %v4661_v46 = vpop.eup %4660  ;;  %4686 = vpow2.f32 %v3810_v23  ;;  %v2803_v51 = vmul.f32 %v4659_v14, %v5901_v39  ;;  %v3815_v14 = vmul.f32 -1.442695, %v5997_v24 }
 0x3e8   : > { %v4091_v1 = vpop.f32.mrf.mxu1  ;;  %v6055_v15 = vpop.eup %4662  ;;  %v2804_v54 = vmul.f32 %v4661_v46, %v5921_v43  ;;  %4688 = vpow2.f32 %v3798_v9  ;;  %4132 = vmatprep.mubr.bf16.mxu0 %v2861_v48  ;;  %v3814_v43 = vmul.f32 -1.442695, %v5982_v25  ;;  %v2833_v49 = vmul.f32 %v2801_v18, %v2494_v32 }
 0x3e9   : > { %v4665_v35 = vpop.eup %4664  ;;  %4690 = vpow2.f32 %v3813_v36  ;;  %4133 = vmatmul.mubr.bf16.vlgmr.msra.gmra.mxu0 %v2862_v20  ;;  %v2721_v46 = vadd.f32 1.0, %v6033_v30 }
 0x3ea   : > { %v2497_v62 = vpop.f32.mrf.mxu1  ;;  %v6063_v55 = vpop.eup %4666  ;;  %v2802_v17 = vmul.f32 %v4665_v35, %v5931_v63  ;;  %4692 = vpow2.f32 %v3801_v58  ;;  %v2836_v39 = vmul.f32 %v4091_v1, %v2804_v54  ;;  %v2835_v63 = vmul.f32 %v4090_v37, %v2803_v51 }
 0x3eb   : > { %v4669_v50 = vpop.eup %4668  ;;  %4694 = vpow2.f32 %v3811_v0  ;;  %v2724_v1 = vadd.f32 1.0, %v6038_v22 }
 0x3ec   : > { %v6068_v23 = vpop.f32.mrf.mxu1  ;;  %v6070_v45 = vpop.eup %4670  ;;  %4696 = vpow2.f32 %v3799_v27  ;;  %v2834_v29 = vmul.f32 %v2802_v17, %v2497_v62  ;;  %v2711_v31 = vadd.f32 1.0, %v4669_v50  ;;  %v2864_v58 = vpack.c.bf16 %v2836_v39, %v2835_v63 }
 0x3ed   : > { %v4673_v9 = vpop.eup %4672  ;;  %4698 = vpow2.f32 %v3816_v34  ;;  %v2722_v27 = vadd.f32 1.0, %v6043_v8 }
 0x3ee   : > { %v6072_v53 = vpop.f32.mrf.mxu1  ;;  %v6074_v16 = vpop.eup %4674  ;;  %v2709_v36 = vadd.f32 1.0, %v4673_v9  ;;  %4700 = vpow2.f32 %v3814_v43  ;;  %v2863_v57 = vpack.c.bf16 %v2834_v29, %v2833_v49 }
 0x3ef   : > { %v4677_v42 = vpop.eup %4676  ;;  %4702 = vpow2.f32 %v3817_v12 }
 0x3f0   : > { %v6077_v48 = vpop.f32.mrf.mxu1  ;;  %v6079_v32 = vpop.eup %4678  ;;  %4704 = vrcp.f32 %v2709_v36  ;;  %v2712_v47 = vadd.f32 1.0, %v4677_v42  ;;  %4136 = vmatprep.mubr.bf16.mxu0 %v2863_v57 }
 0x3f1   : > { %v4681_v37 = vpop.eup %4680  ;;  %4706 = vrcp.f32 %v2711_v31  ;;  %4137 = vmatmul.mubr.bf16.gmra.mxu0 %v2864_v58 }
 0x3f2   : > { %v6082_v0 = vpop.f32.mrf.mxu1  ;;  %v4683_v20 = vpop.eup %4682  ;;  %4708 = vrcp.f32 %v2712_v47  ;;  %v2710_v18 = vadd.f32 1.0, %v4681_v37 }
 0x3f3   : > { %v4685_v54 = vpop.eup %4684  ;;  %4710 = vpow2.f32 %v3815_v14  ;;  %v2727_v22 = vadd.f32 1.0, %v4683_v20  ;;  %v2816_v20 = vmul.f32 %v6070_v45, %v5884_v60 }
 0x3f4   : > { %v6086_v35 = vpop.f32.mrf.mxu1  ;;  %v4687_v51 = vpop.eup %4686  ;;  %4712 = vrcp.f32 %v2710_v18  ;;  %v2715_v30 = vadd.f32 1.0, %v4685_v54  ;;  %v2813_v18 = vmul.f32 %v6063_v55, %v5875_v28  ;;  %v2814_v54 = vmul.f32 %v6074_v16, %v5893_v2 }
 0x3f5   : > { %v4689_v34 = vpop.eup %4688  ;;  %4714 = vrcp.f32 %v2721_v46  ;;  %v2725_v49 = vadd.f32 1.0, %v4687_v51  ;;  %v2815_v46 = vmul.f32 %v6055_v15, %v5866_v6 }
 0x3f6   : > { %v6088_v62 = vpop.f32.mrf.mxu1  ;;  %v4691_v41 = vpop.eup %4690  ;;  %4716 = vrcp.f32 %v2724_v1  ;;  %v2713_v17 = vadd.f32 1.0, %v4689_v34 }
 0x3f7   : > { %v4693_v43 = vpop.eup %4692  ;;  %4718 = vrcp.f32 %v2722_v27  ;;  %v2728_v31 = vadd.f32 1.0, %v4691_v41 }
 0x3f8   : > { %v6090_v50 = vpop.f32.mrf.mxu1  ;;  %v4695_v12 = vpop.eup %4694  ;;  %4720 = vrcp.f32 %v2713_v17  ;;  %v2716_v8 = vadd.f32 1.0, %v4693_v43 }
 0x3f9   : > { %v4697_v39 = vpop.eup %4696  ;;  %4722 = vrcp.f32 %v2715_v30  ;;  %v2726_v57 = vadd.f32 1.0, %v4695_v12 }
 0x3fa   : > { %v6092_v29 = vpop.f32.mrf.mxu1  ;;  %v4699_v9 = vpop.eup %4698  ;;  %4724 = vrcp.f32 %v2716_v8  ;;  %v2714_v63 = vadd.f32 1.0, %v4697_v39 }
 0x3fb   : > { %v4701_v36 = vpop.eup %4700  ;;  %4726 = vrcp.f32 %v2727_v22  ;;  %v2731_v27 = vadd.f32 1.0, %v4699_v9 }
 0x3fc   : > { %v4102_v42 = vpop.f32.mrf.mxu1  ;;  %v4703_v14 = vpop.eup %4702  ;;  %4728 = vrcp.f32 %v2714_v63  ;;  %v2729_v17 = vadd.f32 1.0, %v4701_v36 }
 0x3fd   : > { %v4705_v58 = vpop.eup %4704  ;;  %4730 = vrcp.f32 %v2725_v49  ;;  %v6104_v6 = vmul.f32 %v4102_v42, %v2815_v46  ;;  %v2732_v28 = vadd.f32 1.0, %v4703_v14  ;;  %v2819_v42 = vmul.f32 %v6079_v32, %v5903_v44 }
 0x3fe   : > { %v2542_v47 = vpop.f32.mrf.mxu1  ;;  %v4707_v37 = vpop.eup %4706  ;;  %4732 = vrcp.f32 %v2728_v31  ;;  %v2805_v30 = vmul.f32 %v4705_v58, %v5949_v38 }
 0x3ff   : > { %v4709_v1 = vpop.eup %4708  ;;  %4734 = vrcp.f32 %v2726_v57  ;;  %v2807_v45 = vmul.f32 %v4707_v37, %v5941_v4  ;;  %v6110_v16 = vmul.f32 %v2813_v18, %v2542_v47 }
 0x400   : > { %v4103_v51 = vpop.f32.mrf.mxu1  ;;  %v4711_v34 = vpop.eup %4710  ;;  %v2808_v41 = vmul.f32 %v4709_v1, %v5964_v40  ;;  %4736 = vrcp.f32 %v2731_v27  ;;  %v2837_v4 = vmul.f32 %v2805_v30, %v6072_v53 }
 0x401   : > { %v6106_v15 = vmul.f32 %v4103_v51, %v2816_v20  ;;  %v4713_v60 = vpop.eup %4712  ;;  %v2730_v12 = vadd.f32 1.0, %v4711_v34  ;;  %4738 = vrcp.f32 %v2729_v17  ;;  %v2839_v63 = vmul.f32 %v6068_v23, %v2807_v45 }
 0x402   : > { %v2545_v55 = vpop.f32.mrf.mxu1  ;;  %v4715_v43 = vpop.eup %4714  ;;  %v2806_v2 = vmul.f32 %v4713_v60, %v5980_v59  ;;  %v2840_v8 = vmul.f32 %v6077_v48, %v2808_v41  ;;  %4740 = vrcp.f32 %v2732_v28 }
 0x403   : > { %v2870_v38 = vpack.c.bf16 %v6106_v15, %v6104_v6  ;;  %v6114_v22 = vmul.f32 %v2814_v54, %v2545_v55  ;;  %v4717_v40 = vpop.eup %4716  ;;  %v2817_v53 = vmul.f32 %v4715_v43, %v5913_v3  ;;  %4742 = vrcp.f32 %v2730_v12  ;;  %v3269_v15 = vld [vmem:[#allocation2 + $0xd8] sm:$0xff] }
 0x404   : > { %v4106_v39 = vpop.f32.mrf.mxu1  ;;  %v4719_v49 = vpop.eup %4718  ;;  %v2838_v9 = vmul.f32 %v2806_v2, %v6082_v0  ;;  %v2820_v48 = vmul.f32 %v4717_v40, %v5923_v56  ;;  %v2866_v47 = vpack.c.bf16 %v2840_v8, %v2839_v63 }
 0x405   : > { %v2869_v59 = vpack.c.bf16 %v6114_v22, %v6110_v16  ;;  %v4721_v31 = vpop.eup %4720  ;;  %v2818_v0 = vmul.f32 %v4719_v49, %v5933_v61  ;;  %v2851_v1 = vmul.f32 %v4106_v39, %v2819_v42 }
 0x406   : > { %v2558_v36 = vpop.f32.mrf.mxu1  ;;  %v4723_v57 = vpop.eup %4722  ;;  %v2865_v14 = vpack.c.bf16 %v2838_v9, %v2837_v4  ;;  %v2809_v23 = vmul.f32 %v4721_v31, %v6013_v33 }
 0x407   : > { %v4725_v58 = vpop.eup %4724  ;;  %v2811_v56 = vmul.f32 %v4723_v57, %v5995_v11  ;;  %v2849_v61 = vmul.f32 %v2817_v53, %v2558_v36 }
 0x408   : > { %v4107_v37 = vpop.f32.mrf.mxu1  ;;  %v4727_v46 = vpop.eup %4726  ;;  %v2812_v20 = vmul.f32 %v4725_v58, %v6029_v19  ;;  %4140 = vmatprep.mubr.bf16.mxu0 %v2865_v14  ;;  %v2841_v19 = vmul.f32 %v2809_v23, %v6088_v62  ;;  %v3267_v23 = vld [vmem:[#allocation2 + $0xb0] sm:$0xff] }
 0x409   : > { %v2852_v44 = vmul.f32 %v4107_v37, %v2820_v48  ;;  %v4729_v32 = vpop.eup %4728  ;;  %4141 = vmatmul.mubr.bf16.gmra.mxu0 %v2866_v47  ;;  %v2843_v11 = vmul.f32 %v6086_v35, %v2811_v56  ;;  %v2823_v28 = vmul.f32 %v4727_v46, %v5943_v21  ;;  %v3270_v56 = vld [vmem:[#allocation2 + $0x18] sm:$0xff] }
 0x40a   : > { %v2561_v18 = vpop.f32.mrf.mxu1  ;;  %v4731_v54 = vpop.eup %4730  ;;  %v2810_v3 = vmul.f32 %v4729_v32, %v6047_v7  ;;  %v2844_v30 = vmul.f32 %v6090_v50, %v2812_v20 }
 0x40b   : > { %v2872_v27 = vpack.c.bf16 %v2852_v44, %v2851_v1  ;;  %v2850_v51 = vmul.f32 %v2818_v0, %v2561_v18  ;;  %v4733_v34 = vpop.eup %4732  ;;  %v2821_v16 = vmul.f32 %v4731_v54, %v5951_v5 }
 0x40c   : > { %v4110_v33 = vpop.f32.mrf.mxu1  ;;  %v4735_v41 = vpop.eup %4734  ;;  %v2842_v60 = vmul.f32 %v2810_v3, %v6092_v29  ;;  %v2824_v7 = vmul.f32 %v4733_v34, %v5958_v10  ;;  %v2868_v43 = vpack.c.bf16 %v2844_v30, %v2843_v11  ;;  %v3271_v11 = vld [vmem:[#allocation2 + $0x50] sm:$0xff] }
 0x40d   : > { %v2871_v45 = vpack.c.bf16 %v2850_v51, %v2849_v61  ;;  %v2822_v50 = vmul.f32 %v4735_v41, %v5966_v13  ;;  %v2855_v22 = vmul.f32 %v4110_v33, %v2823_v28  ;;  %v4737_v40 = vpop.eup %4736  ;;  %v3273_v33 = vld [vmem:[#allocation2 + $0x30] sm:$0xff] }
 0x40e   : > { %v2574_v17 = vpop.f32.mrf.mxu1  ;;  %v2867_v55 = vpack.c.bf16 %v2842_v60, %v2841_v19  ;;  %v4739_v12 = vpop.eup %4738  ;;  %v2827_v5 = vmul.f32 %v4737_v40, %v5974_v26 }
 0x40f   : > { %v2853_v35 = vmul.f32 %v2821_v16, %v2574_v17  ;;  %v4741_v39 = vpop.eup %4740  ;;  %v2825_v63 = vmul.f32 %v4739_v12, %v5982_v25  ;;  %v3173_v26 = vpop.xlane.xlu0 %3172 }
 0x410   : > { %v4111_v2 = vpop.f32.mrf.mxu1  ;;  %4144 = vmatprep.mubr.bf16.mxu0 %v2867_v55  ;;  %v4743_v49 = vpop.eup %4742  ;;  %v2828_v13 = vmul.f32 %v4741_v39, %v5989_v52 }
 0x411   : > { %v2856_v62 = vmul.f32 %v4111_v2, %v2824_v7  ;;  %4145 = vmatmul.mubr.bf16.gmra.mxu0 %v2868_v43  ;;  %v2826_v36 = vmul.f32 %v4743_v49, %v5997_v24  ;;  %v3179_v25 = vpop.xlane.xlu1 %3178  ;;  %v3274_v43 = vld [vmem:[#allocation2 + $0x48] sm:$0xff] }
 0x412   : > { %v2577_v29 = vpop.f32.mrf.mxu1  ;;  %4148 = vmatprep.mubr.bf16.mxu0 %v2869_v59 }
 0x413   : > { %v2874_v8 = vpack.c.bf16 %v2856_v62, %v2855_v22  ;;  %v2854_v21 = vmul.f32 %v2822_v50, %v2577_v29  ;;  %v3176_v52 = vpop.xlane.xlu0 %3175  ;;  %v3272_v22 = vld [vmem:[#allocation2 + $0x68] sm:$0xff] }
 0x414   : > { %v4114_v10 = vpop.f32.mrf.mxu1 }
 0x415   : > { %v2873_v4 = vpack.c.bf16 %v2854_v21, %v2853_v35  ;;  %v2859_v57 = vmul.f32 %v4114_v10, %v2827_v5  ;;  %v3182_v24 = vpop.xlane.xlu1 %3181 }
 0x416   : > { %v2590_v9 = vpop.f32.mrf.mxu1 }
 0x417   : > { %v2857_v48 = vmul.f32 %v2825_v63, %v2590_v9  ;;  %v3185_v0 = vpop.xlane.xlu0 %3184 }
 0x418   : > { %v4115_v31 = vpop.f32.mrf.mxu1 }
 0x419   : > { %v2860_v42 = vmul.f32 %v4115_v31, %v2828_v13  ;;  %4149 = vmatmul.mubr.bf16.gmra.mxu0 %v2870_v38  ;;  %v3188_v47 = vpop.xlane.xlu1 %3187  ;;  %v3275_v31 = vld [vmem:[#allocation2 + $0x80] sm:$0xff] }
 0x41a   : > { %v2593_v59 = vpop.f32.mrf.mxu1  ;;  %4152 = vmatprep.mubr.bf16.mxu0 %v2871_v45 }
 0x41b   : > { %v2876_v14 = vpack.c.bf16 %v2860_v42, %v2859_v57  ;;  %v2858_v58 = vmul.f32 %v2826_v36, %v2593_v59  ;;  %v3191_v37 = vpop.xlane.xlu0 %3190  ;;  %v3278_v59 = vld [vmem:[#allocation2 + $0xb8] sm:$0xff] }
 0x41d   : > { %v2875_v53 = vpack.c.bf16 %v2858_v58, %v2857_v48  ;;  %v3194_v20 = vpop.xlane.xlu1 %3193 }
 0x41f   : > { %v3197_v18 = vpop.xlane.xlu0 %3196 }
 0x421   : > { %4153 = vmatmul.mubr.bf16.gmra.mxu0 %v2872_v27  ;;  %v3268_v27 = vld [vmem:[#allocation2] sm:$0xff]  ;;  %v3200_v41 = vpop.xlane.xlu1 %3199 }
 0x422   : > { %4156 = vmatprep.mubr.bf16.mxu0 %v2873_v4  ;;  %v3277_v4 = vld [vmem:[#allocation2 + $0xe8] sm:$0xff] }
 0x423   : > { %v3203_v17 = vpop.xlane.xlu0 %3202 }
 0x425   : > { %v3206_v62 = vpop.xlane.xlu1 %3205 }
 0x427   : > { %v3209_v12 = vpop.xlane.xlu0 %3208 }
 0x429   : > { %4157 = vmatmul.mubr.bf16.gmra.mxu0 %v2874_v8  ;;  %v3212_v8 = vpop.xlane.xlu1 %3211 }
 0x42a   : > { %4160 = vmatprep.mubr.bf16.mxu0 %v2875_v53  ;;  %v3276_v53 = vld [vmem:[#allocation2 + $0x88] sm:$0xff] }
 0x42b   : > { %v3215_v21 = vpop.xlane.xlu0 %3214 }
 0x42d   : > { %v3218_v39 = vpop.xlane.xlu1 %3217 }
 0x42f   : > { %v3221_v10 = vpop.xlane.xlu0 %3220 }
 0x431   : > { %4161 = vmatmul.mubr.bf16.gmra.mxu0 %v2876_v14  ;;  %v3224_v9 = vpop.xlane.xlu1 %3223 }
 0x448   : > { %v3227_v63 = vpop.xlane.xlu0 %3226 }
 0x4a9   : > { %v4134_v6 = vpop.f32.mrf.mxu0 }
 0x4aa   : > { %v3301_v38 = vmul.f32 %v4134_v6, %v3179_v25 }
 0x4ab   : > { %v2975_v46 = vpop.f32.mrf.mxu0 }
 0x4ac   : > { %v3333_v1 = vadd.f32 %v3301_v38, %v3269_v15  ;;  %v3299_v44 = vmul.f32 %v3173_v26, %v2975_v46  ;;  %v3230_v26 = vpop.xlane.xlu1 %3229  ;;  %v3279_v38 = vld [vmem:[#allocation2 + $0x60] sm:$0xff] }
 0x4ad   : > { %v4135_v32 = vpop.f32.mrf.mxu0 }
 0x4ae   : > { %3365 = vst [vmem:[#allocation2 + $0xd8] sm:$0xff] %v3333_v1  ;;  %v3331_v54 = vadd.f32 %v3299_v44, %v3267_v23  ;;  %v3302_v3 = vmul.f32 %v4135_v32, %v3182_v24  ;;  %v3282_v1 = vld [vmem:[#allocation2 + $0x78] sm:$0xff] }
 0x4af   : > { %v2978_v61 = vpop.f32.mrf.mxu0 }
 0x4b0   : > { %3363 = vst [vmem:[#allocation2 + $0xb0] sm:$0xff] %v3331_v54  ;;  %v3334_v51 = vadd.f32 %v3302_v3, %v3270_v56  ;;  %v3300_v34 = vmul.f32 %v3176_v52, %v2978_v61  ;;  %v3236_v44 = vpop.xlane.xlu1 %3235  ;;  %v3280_v54 = vld [vmem:[#allocation2 + $0xf0] sm:$0xff] }
 0x4b1   : > { %v4138_v30 = vpop.f32.mrf.mxu0 }
 0x4b2   : > { %3366 = vst [vmem:[#allocation2 + $0x18] sm:$0xff] %v3334_v51  ;;  %v3332_v19 = vadd.f32 %v3300_v34, %v3268_v27  ;;  %v3305_v60 = vmul.f32 %v4138_v30, %v3191_v37  ;;  %v3285_v34 = vld [vmem:[#allocation2 + $0x40] sm:$0xff] }
 0x4b3   : > { %v2991_v45 = vpop.f32.mrf.mxu0 }
 0x4b4   : > { %3364 = vst [vmem:[#allocation2] sm:$0xff] %v3332_v19  ;;  %v3337_v28 = vadd.f32 %v3305_v60, %v3273_v33  ;;  %v3303_v7 = vmul.f32 %v3185_v0, %v2991_v45  ;;  %v3281_v0 = vld [vmem:[#allocation2 + $0x8] sm:$0xff]  ;;  %v3283_v19 = vld [vmem:[#allocation2 + $0x38] sm:$0xff]  ;;  %v3242_v60 = vpop.xlane.xlu1 %3241 }
 0x4b5   : > { %v4139_v55 = vpop.f32.mrf.mxu0 }
 0x4b6   : > { %3369 = vst [vmem:[#allocation2 + $0x30] sm:$0xff] %v3337_v28  ;;  %v3335_v2 = vadd.f32 %v3303_v7, %v3271_v11  ;;  %v3306_v16 = vmul.f32 %v4139_v55, %v3194_v20  ;;  %v3286_v28 = vld [vmem:[#allocation2 + $0xc8] sm:$0xff] }
 0x4b7   : > { %v2994_v50 = vpop.f32.mrf.mxu0 }
 0x4b8   : > { %3367 = vst [vmem:[#allocation2 + $0x50] sm:$0xff] %v3335_v2  ;;  %v3338_v40 = vadd.f32 %v3306_v16, %v3274_v43  ;;  %v3304_v29 = vmul.f32 %v3188_v47, %v2994_v50  ;;  %v3233_v47 = vpop.xlane.xlu0 %3232  ;;  %v3284_v16 = vld [vmem:[#allocation2 + $0x58] sm:$0xff] }
 0x4ba   : > { %3370 = vst [vmem:[#allocation2 + $0x48] sm:$0xff] %v3338_v40  ;;  %v3336_v35 = vadd.f32 %v3304_v29, %v3272_v22  ;;  %v3289_v40 = vld [vmem:[#allocation2 + $0x70] sm:$0xff]  ;;  %v3248_v29 = vpop.xlane.xlu1 %3247 }
 0x4bc   : > { %3368 = vst [vmem:[#allocation2 + $0x68] sm:$0xff] %v3336_v35  ;;  %v3239_v3 = vpop.xlane.xlu0 %3238 }
 0x4c0   : > { %v3245_v7 = vpop.xlane.xlu0 %3244 }
 0x4c9   : > { %v4142_v49 = vpop.f32.mrf.mxu0 }
 0x4ca   : > { %v3309_v5 = vmul.f32 %v4142_v49, %v3203_v17 }
 0x4cb   : > { %v3007_v13 = vpop.f32.mrf.mxu0 }
 0x4cc   : > { %v3341_v36 = vadd.f32 %v3309_v5, %v3277_v4  ;;  %v3307_v57 = vmul.f32 %v3197_v18, %v3007_v13  ;;  %v3290_v5 = vld [vmem:[#allocation2 + $0xc0] sm:$0xff] }
 0x4cd   : > { %v4143_v42 = vpop.f32.mrf.mxu0 }
 0x4ce   : > { %3373 = vst [vmem:[#allocation2 + $0xe8] sm:$0xff] %v3341_v36  ;;  %v3339_v48 = vadd.f32 %v3307_v57, %v3275_v31  ;;  %v3310_v14 = vmul.f32 %v4143_v42, %v3206_v62  ;;  %v3288_v36 = vld [vmem:[#allocation2 + $0x90] sm:$0xff] }
 0x4cf   : > { %v3010_v58 = vpop.f32.mrf.mxu0 }
 0x4d0   : > { %3371 = vst [vmem:[#allocation2 + $0x80] sm:$0xff] %v3339_v48  ;;  %v3342_v25 = vadd.f32 %v3310_v14, %v3278_v59  ;;  %v3308_v52 = vmul.f32 %v3200_v41, %v3010_v58  ;;  %v3293_v48 = vld [vmem:[#allocation2 + $0x10] sm:$0xff] }
 0x4d1   : > { %v4146_v24 = vpop.f32.mrf.mxu0 }
 0x4d2   : > { %3374 = vst [vmem:[#allocation2 + $0xb8] sm:$0xff] %v3342_v25  ;;  %v3340_v37 = vadd.f32 %v3308_v52, %v3276_v53  ;;  %v3313_v6 = vmul.f32 %v4146_v24, %v3215_v21  ;;  %v3287_v21 = vld [vmem:[#allocation2 + $0xe0] sm:$0xff]  ;;  %v3291_v25 = vld [vmem:[#allocation2 + $0xa8] sm:$0xff] }
 0x4d3   : > { %v3023_v15 = vpop.f32.mrf.mxu0 }
 0x4d4   : > { %3372 = vst [vmem:[#allocation2 + $0x88] sm:$0xff] %v3340_v37  ;;  %v3345_v46 = vadd.f32 %v3313_v6, %v3281_v0  ;;  %v3311_v23 = vmul.f32 %v3209_v12, %v3023_v15 }
 0x4d5   : > { %v4147_v20 = vpop.f32.mrf.mxu0 }
 0x4d6   : > { %3377 = vst [vmem:[#allocation2 + $0x8] sm:$0xff] %v3345_v46  ;;  %v3343_v32 = vadd.f32 %v3311_v23, %v3279_v38  ;;  %v3314_v56 = vmul.f32 %v4147_v20, %v3218_v39  ;;  %v3251_v39 = vpop.xlane.xlu0 %3250  ;;  %v3292_v46 = vld [vmem:[#allocation2 + $0xd0] sm:$0xff] }
 0x4d7   : > { %v3026_v18 = vpop.f32.mrf.mxu0 }
 0x4d8   : > { %3375 = vst [vmem:[#allocation2 + $0x60] sm:$0xff] %v3343_v32  ;;  %v3346_v61 = vadd.f32 %v3314_v56, %v3282_v1  ;;  %v3312_v27 = vmul.f32 %v3212_v8, %v3026_v18  ;;  %v3297_v32 = vld [vmem:[#allocation2 + $0x20] sm:$0xff] }
 0x4d9   : > { %v4150_v51 = vpop.f32.mrf.mxu0 }
 0x4da   : > { %3378 = vst [vmem:[#allocation2 + $0x78] sm:$0xff] %v3346_v61  ;;  %v3344_v30 = vadd.f32 %v3312_v27, %v3280_v54  ;;  %v3317_v33 = vmul.f32 %v4150_v51, %v3227_v63  ;;  %v3257_v14 = vpop.xlane.xlu0 %3256 }
 0x4db   : > { %v3039_v41 = vpop.f32.mrf.mxu0 }
 0x4dc   : > { %3376 = vst [vmem:[#allocation2 + $0xf0] sm:$0xff] %v3344_v30  ;;  %v3349_v45 = vadd.f32 %v3317_v33, %v3285_v34  ;;  %v3315_v11 = vmul.f32 %v3221_v10, %v3039_v41  ;;  %v3298_v30 = vld [vmem:[#allocation2 + $0x98] sm:$0xff] }
 0x4dd   : > { %v4151_v17 = vpop.f32.mrf.mxu0 }
 0x4de   : > { %3381 = vst [vmem:[#allocation2 + $0x40] sm:$0xff] %v3349_v45  ;;  %v3347_v55 = vadd.f32 %v3315_v11, %v3283_v19  ;;  %v3318_v43 = vmul.f32 %v4151_v17, %v3230_v26  ;;  %v3263_v23 = vpop.xlane.xlu0 %3262 }
 0x4df   : > { %v3042_v2 = vpop.f32.mrf.mxu0 }
 0x4e0   : > { %3379 = vst [vmem:[#allocation2 + $0x38] sm:$0xff] %v3347_v55  ;;  %v3350_v50 = vadd.f32 %v3318_v43, %v3286_v28  ;;  %v3316_v22 = vmul.f32 %v3224_v9, %v3042_v2  ;;  %v3254_v9 = vpop.xlane.xlu1 %3253 }
 0x4e1   : > { %v4154_v62 = vpop.f32.mrf.mxu0 }
 0x4e2   : > { %3382 = vst [vmem:[#allocation2 + $0xc8] sm:$0xff] %v3350_v50  ;;  %v3348_v12 = vadd.f32 %v3316_v22, %v3284_v16  ;;  %v3321_v35 = vmul.f32 %v4154_v62, %v3239_v3  ;;  %v3295_v3 = vld [vmem:[#allocation2 + $0xa0] sm:$0xff] }
 0x4e3   : > { %v3055_v8 = vpop.f32.mrf.mxu0 }
 0x4e4   : > { %3380 = vst [vmem:[#allocation2 + $0x58] sm:$0xff] %v3348_v12  ;;  %v3353_v10 = vadd.f32 %v3321_v35, %v3289_v40  ;;  %v3319_v49 = vmul.f32 %v3233_v47, %v3055_v8  ;;  %v3294_v47 = vld [vmem:[#allocation2 + $0x28] sm:$0xff]  ;;  %v3260_v37 = vpop.xlane.xlu1 %3259 }
 0x4e5   : > { %v4155_v4 = vpop.f32.mrf.mxu0 }
 0x4e6   : > { %3385 = vst [vmem:[#allocation2 + $0x70] sm:$0xff] %v3353_v10  ;;  %v3351_v13 = vadd.f32 %v3319_v49, %v3287_v21  ;;  %v3322_v31 = vmul.f32 %v4155_v4, %v3242_v60  ;;  %v3296_v60 = vld [vmem:[#allocation2 + $0xf8] sm:$0xff] }
 0x4e7   : > { %v3058_v63 = vpop.f32.mrf.mxu0 }
 0x4e8   : > { %3383 = vst [vmem:[#allocation2 + $0xe0] sm:$0xff] %v3351_v13  ;;  %v3354_v57 = vadd.f32 %v3322_v31, %v3290_v5  ;;  %v3320_v42 = vmul.f32 %v3236_v44, %v3058_v63  ;;  %v3266_v61 = vpop.xlane.xlu1 %3265 }
 0x4e9   : > { %v4158_v59 = vpop.f32.mrf.mxu0 }
 0x4ea   : > { %3386 = vst [vmem:[#allocation2 + $0xc0] sm:$0xff] %v3354_v57  ;;  %v3352_v58 = vadd.f32 %v3320_v42, %v3288_v36  ;;  %v3325_v53 = vmul.f32 %v4158_v59, %v3251_v39 }
 0x4eb   : > { %v3071_v26 = vpop.f32.mrf.mxu0 }
 0x4ec   : > { %3384 = vst [vmem:[#allocation2 + $0x90] sm:$0xff] %v3352_v58  ;;  %v3357_v52 = vadd.f32 %v3325_v53, %v3293_v48  ;;  %v3323_v24 = vmul.f32 %v3245_v7, %v3071_v26 }
 0x4ed   : > { %v4159_v0 = vpop.f32.mrf.mxu0 }
 0x4ee   : > { %3389 = vst [vmem:[#allocation2 + $0x10] sm:$0xff] %v3357_v52  ;;  %v3355_v6 = vadd.f32 %v3323_v24, %v3291_v25  ;;  %v3326_v15 = vmul.f32 %v4159_v0, %v3254_v9 }
 0x4ef   : > { %v3074_v38 = vpop.f32.mrf.mxu0 }
 0x4f0   : > { %3387 = vst [vmem:[#allocation2 + $0xa8] sm:$0xff] %v3355_v6  ;;  %v3358_v20 = vadd.f32 %v3326_v15, %v3294_v47  ;;  %v3324_v1 = vmul.f32 %v3248_v29, %v3074_v38 }
 0x4f1   : > { %v4162_v44 = vpop.f32.mrf.mxu0 }
 0x4f2   : > { %3390 = vst [vmem:[#allocation2 + $0x28] sm:$0xff] %v3358_v20  ;;  %v3356_v56 = vadd.f32 %v3324_v1, %v3292_v46  ;;  %v3329_v18 = vmul.f32 %v4162_v44, %v3263_v23 }
 0x4f3   : > { %v3087_v54 = vpop.f32.mrf.mxu0 }
 0x4f4   : > { %3388 = vst [vmem:[#allocation2 + $0xd0] sm:$0xff] %v3356_v56  ;;  %v3361_v27 = vadd.f32 %v3329_v18, %v3297_v32  ;;  %v3327_v51 = vmul.f32 %v3257_v14, %v3087_v54 }
 0x4f5   : > { %v4163_v34 = vpop.f32.mrf.mxu0 }
 0x4f6   : > { %3393 = vst [vmem:[#allocation2 + $0x20] sm:$0xff] %v3361_v27  ;;  %v3359_v33 = vadd.f32 %v3327_v51, %v3295_v3  ;;  %v3330_v41 = vmul.f32 %v4163_v34, %v3266_v61 }
 0x4f7   : > { %v3090_v19 = vpop.f32.mrf.mxu0 }
 0x4f8   : > { %3391 = vst [vmem:[#allocation2 + $0xa0] sm:$0xff] %v3359_v33  ;;  %v3362_v45 = vadd.f32 %v3330_v41, %v3298_v30  ;;  %v3328_v11 = vmul.f32 %v3260_v37, %v3090_v19 }
 0x4fa   : > { %3394 = vst [vmem:[#allocation2 + $0x98] sm:$0xff] %v3362_v45  ;;  %v3360_v17 = vadd.f32 %v3328_v11, %v3296_v60 }
 0x4fc   : > { %3392 = vst [vmem:[#allocation2 + $0xf8] sm:$0xff] %v3360_v17 }
 0x4fd PF: > { %p3826_p1 = scmp.ne.s32.totalorder %s4846_s24, 7 }
 0x4ff   : > { %3398 = sbr.rel (%p3826_p1) target bundleno = 1301 (0x515), region = 64 }
 0x504   : > { %v3399_v28 = vld [vmem:[#allocation2 + $0xb0] sm:$0xff]  ;;  %v3400_v7 = vld [vmem:[#allocation2] sm:$0xff]  ;;  %v3401_v55 = vld [vmem:[#allocation2 + $0xd8] sm:$0xff] }
 0x505   : > { %3431 = vst [vmem:[%s5139_s2] sm:$0xff] %v3399_v28  ;;  %3432 = vst [vmem:[%s5139_s2 + $0x8] sm:$0xff] %v3400_v7  ;;  %v3402_v43 = vld [vmem:[#allocation2 + $0x18] sm:$0xff]  ;;  %v3403_v2 = vld [vmem:[#allocation2 + $0x50] sm:$0xff] }
 0x506   : > { %3433 = vst [vmem:[%s5139_s2 + $0x10] sm:$0xff] %v3401_v55  ;;  %v3404_v16 = vld [vmem:[#allocation2 + $0x68] sm:$0xff]  ;;  %3434 = vst [vmem:[%s5139_s2 + $0x18] sm:$0xff] %v3402_v43  ;;  %v3405_v50 = vld [vmem:[#allocation2 + $0x30] sm:$0xff] }
 0x507   : > { %3435 = vst [vmem:[%s5139_s2 + $0x20] sm:$0xff] %v3403_v2  ;;  %3436 = vst [vmem:[%s5139_s2 + $0x28] sm:$0xff] %v3404_v16  ;;  %v3406_v22 = vld [vmem:[#allocation2 + $0x48] sm:$0xff]  ;;  %v3407_v62 = vld [vmem:[#allocation2 + $0x80] sm:$0xff] }
 0x508   : > { %3437 = vst [vmem:[%s5139_s2 + $0x30] sm:$0xff] %v3405_v50  ;;  %3438 = vst [vmem:[%s5139_s2 + $0x38] sm:$0xff] %v3406_v22  ;;  %v3408_v40 = vld [vmem:[#allocation2 + $0x88] sm:$0xff]  ;;  %v3410_v12 = vld [vmem:[#allocation2 + $0xb8] sm:$0xff] }
 0x509   : > { %3439 = vst [vmem:[%s5139_s2 + $0x40] sm:$0xff] %v3407_v62  ;;  %v3409_v29 = vld [vmem:[#allocation2 + $0xe8] sm:$0xff]  ;;  %3440 = vst [vmem:[%s5139_s2 + $0x48] sm:$0xff] %v3408_v40  ;;  %v3411_v35 = vld [vmem:[#allocation2 + $0x60] sm:$0xff] }
 0x50a   : > { %3441 = vst [vmem:[%s5139_s2 + $0x50] sm:$0xff] %v3409_v29  ;;  %3442 = vst [vmem:[%s5139_s2 + $0x58] sm:$0xff] %v3410_v12  ;;  %v3412_v8 = vld [vmem:[#allocation2 + $0xf0] sm:$0xff]  ;;  %v3413_v21 = vld [vmem:[#allocation2 + $0x8] sm:$0xff] }
 0x50b   : > { %3443 = vst [vmem:[%s5139_s2 + $0x60] sm:$0xff] %v3411_v35  ;;  %3444 = vst [vmem:[%s5139_s2 + $0x68] sm:$0xff] %v3412_v8  ;;  %v3414_v39 = vld [vmem:[#allocation2 + $0x78] sm:$0xff]  ;;  %v3417_v4 = vld [vmem:[#allocation2 + $0x40] sm:$0xff] }
 0x50c   : > { %3445 = vst [vmem:[%s5139_s2 + $0x70] sm:$0xff] %v3413_v21  ;;  %v3415_v10 = vld [vmem:[#allocation2 + $0x38] sm:$0xff]  ;;  %3446 = vst [vmem:[%s5139_s2 + $0x78] sm:$0xff] %v3414_v39  ;;  %v3418_v5 = vld [vmem:[#allocation2 + $0xc8] sm:$0xff] }
 0x50d   : > { %v3416_v49 = vld [vmem:[#allocation2 + $0x58] sm:$0xff]  ;;  %3447 = vst [vmem:[%s5139_s2 + $0x80] sm:$0xff] %v3415_v10  ;;  %v3419_v13 = vld [vmem:[#allocation2 + $0xe0] sm:$0xff]  ;;  %3449 = vst [vmem:[%s5139_s2 + $0x90] sm:$0xff] %v3417_v4 }
 0x50e   : > { %3448 = vst [vmem:[%s5139_s2 + $0x88] sm:$0xff] %v3416_v49  ;;  %3450 = vst [vmem:[%s5139_s2 + $0x98] sm:$0xff] %v3418_v5  ;;  %v3420_v31 = vld [vmem:[#allocation2 + $0x90] sm:$0xff]  ;;  %v3422_v36 = vld [vmem:[#allocation2 + $0xc0] sm:$0xff] }
 0x50f   : > { %3451 = vst [vmem:[%s5139_s2 + $0xa0] sm:$0xff] %v3419_v13  ;;  %v3421_v63 = vld [vmem:[#allocation2 + $0x70] sm:$0xff]  ;;  %3452 = vst [vmem:[%s5139_s2 + $0xa8] sm:$0xff] %v3420_v31  ;;  %v3423_v9 = vld [vmem:[#allocation2 + $0xa8] sm:$0xff] }
 0x510   : > { %3453 = vst [vmem:[%s5139_s2 + $0xb0] sm:$0xff] %v3421_v63  ;;  %3454 = vst [vmem:[%s5139_s2 + $0xb8] sm:$0xff] %v3422_v36  ;;  %v3424_v57 = vld [vmem:[#allocation2 + $0xd0] sm:$0xff]  ;;  %v3426_v59 = vld [vmem:[#allocation2 + $0x28] sm:$0xff] }
 0x511   : > { %v3425_v42 = vld [vmem:[#allocation2 + $0x10] sm:$0xff]  ;;  %3455 = vst [vmem:[%s5139_s2 + $0xc0] sm:$0xff] %v3423_v9  ;;  %3456 = vst [vmem:[%s5139_s2 + $0xc8] sm:$0xff] %v3424_v57  ;;  %v3427_v48 = vld [vmem:[#allocation2 + $0xa0] sm:$0xff] }
 0x512   : > { %3457 = vst [vmem:[%s5139_s2 + $0xd0] sm:$0xff] %v3425_v42  ;;  %v3428_v14 = vld [vmem:[#allocation2 + $0xf8] sm:$0xff]  ;;  %3458 = vst [vmem:[%s5139_s2 + $0xd8] sm:$0xff] %v3426_v59  ;;  %v3429_v58 = vld [vmem:[#allocation2 + $0x20] sm:$0xff] }
 0x513   : > { %3459 = vst [vmem:[%s5139_s2 + $0xe0] sm:$0xff] %v3427_v48  ;;  %3460 = vst [vmem:[%s5139_s2 + $0xe8] sm:$0xff] %v3428_v14  ;;  %v3430_v53 = vld [vmem:[#allocation2 + $0x98] sm:$0xff] }
 0x514   : > { %3461 = vst [vmem:[%s5139_s2 + $0xf0] sm:$0xff] %v3429_v58  ;;  %3462 = vst [vmem:[%s5139_s2 + $0xf8] sm:$0xff] %v3430_v53 }
 0x515 PF: > { %s3835_s24 = sshll.u32 %s4850_s25, 12  ;;  %s3477_s21 = sshll.u32 %s5139_s2, 4  ;;  %s6186_s21 = int_to_ptr.vmem [resolvable:$true] %s3477_s21 }
 0x516   : > { %s6183_s16 = scalar_lea.hbm %s6250_s10, %s3835_s24  ;;  %s6411_s15 = sand.u32 1, %s4838_s22  }
 0x517   : > { %s6190_s27 = scalar_lea.sflag [#allocation7], %s6411_s15  ;;  %s4768_s4 = scalar_lea.vmem %s6186_s21, 4096 }
 0x518   : > { %p4769_p2 = scmp.ne.s32.totalorder %s6186_s21, %s4768_s4  ;;  %s4867_s25 = smov [#allocation6]  }
 0x519   : > { %s4772_s5 = sshll.u32 %s4867_s25, 4  ;;  %s4773_s5 = int_to_ptr.vmem [resolvable:$false] %s4772_s5 }
 0x51a   : > { %p4770_p3 = pnand %p4769_p2, %p4980_p13  ;;  %s4774_s29 = scalar_lea.vmem %s4773_s5, 8192 }
 0x51b   : > { %p4775_p6 = scmp.lt.s32.totalorder %s6186_s21, %s4773_s5  ;;  %p4776_p7 = scmp.lt.s32.totalorder %s4774_s29, %s4768_s4 }
 0x51c   : > { %p4771_p4 = pneg %p4770_p3 }
 0x51d   : > { %p4777_p8 = por %p4776_p7, %p4775_p6 }
 0x51f   : > { %p4778_p9 = pnand %p4777_p8, %p4771_p4 }
 0x521   : > { %4781 = shalt.err (!%p4778_p9)
}
 0x522   : > { %s4782_s2 = scalar_lea.hbm %s6183_s16, 4096  ;;  %s4786_s18 = scalar_lea.hbm %s6250_s10, 8192 }
 0x523   : > { %p4783_p10 = scmp.ne.s32.totalorder %s6183_s16, %s4782_s2  ;;  %p4787_p0 = scmp.lt.s32.totalorder %s6183_s16, %s6250_s10 }
 0x524   : > { %p4788_p1 = scmp.lt.s32.totalorder %s4786_s18, %s4782_s2 }
 0x525   : > { %p4784_p11 = pnand %p4783_p10, %p4980_p13 }
 0x526   : > { %p4789_p2 = por %p4788_p1, %p4787_p0 }
 0x527   : > { %p4785_p12 = pneg %p4784_p11 }
 0x529   : > { %p4790_p3 = pnand %p4789_p2, %p4785_p12 }
 0x52b   : > { %4793 = shalt.err (!%p4790_p3)
}
 0x52c   : > { %s4868_s11 = smov 128   ;;  %s4869_s24 = smov 8  }
 0x52d   : > { %4196 = dma.vmem_to_hbm [thread:$0]  (%p4980_p13), %s6186_s21, 4096, %s6183_s16, %s6190_s27, %s4868_s11, %s4868_s11, %s4869_s24  }
 0x52e PF: > { %p4202_p4 = scmp.ge.s32.totalorder %s4862_s28, 2  ;;  %s3492_s0 = sand.u32 1, %s4834_s1  }
 0x52f   : > { %s3493_s19 = scalar_lea.sflag [#allocation7], %s3492_s0 }
 0x530   : > { %p4199_p6 = pnand %p4202_p4, %p4990_p5 }
 0x532   : > { %p4200_p7 = pneg %p4199_p6 }
 0x534   : > { %4829 = dma.done.wait (%p4200_p7), %s3493_s19, 4096  }
 0x535   : > { %4831 = vsyncadd (%p4200_p7), %s3493_s19, 4294963200  ;;  %s33_s28 = sadd.s32 1, %s4862_s28   ;;  %s6412_s25 = sld [smem:[#allocation10_spill]] }
 0x536   : > { %p30_p8 = scmp.ge.s32.totalorder %s33_s28, 18   ;;  %s6413_s13 = sld [smem:[#allocation11_spill]] }
 0x537   : > { %s6414_s27 = sld [smem:[#allocation12_spill]]  ;;  %s6415_s1 = smov %s4838_s22 }
 0x538   : > { %s6416_s22 = smov %s4842_s23  ;;  %s6417_s23 = smov %s4998_s17 }
 0x539   : > { %s6418_s24 = smov %s4854_s26  ;;  %32 = sbr.rel (!%p30_p8) target bundleno = 32 (0x20), region = 111 }
 0x53c   : > { %s6419_s26 = smov %s6413_s13 }
 0x53e   :  { %3498 = vsyncpa [#allocation7], 1 }
 0x53f   :  { %3500 = vsyncpa [#allocation7 + $0x1], 1 }

</bundles_post_ra>
